<compile_context>
chip_gen: v5e
topology: v5e:2x2
jax: 0.10.0
libtpu: 0.0.40
codegen_flags: <defaults>
</compile_context>

<pallas_src>
import jax
import jax.numpy as jnp
from jax.experimental import pallas as pl
from jax.experimental.pallas import tpu as pltpu

VMEM_LIMIT = 48 * 1024 * 1024


def _round_up(x, m):
    return (x + m - 1) // m * m


# ---------------------------------------------------------------------------
# Kernels
# ---------------------------------------------------------------------------
def _conv_relu_pool_kernel(t_ref, w_ref, b_ref, o_ref):
    """t_ref: (4, tm, Kp) bf16 -- the 4 pooling taps of im2col rows
       w_ref: (Kp, Np) bf16    -- conv weight (K zero-padded, N lane-padded)
       b_ref: (1, Np) f32
       o_ref: (tm, Np) bf16    -- pooled, ReLU'd conv output (lane-dense)"""
    w = w_ref[...]
    acc = jnp.dot(t_ref[0], w, preferred_element_type=jnp.float32)
    for j in range(1, 4):   # 2x2/2 max-pool == max over 4 taps (bias/ReLU commute)
        acc = jnp.maximum(acc, jnp.dot(t_ref[j], w, preferred_element_type=jnp.float32))
    o_ref[...] = jnp.maximum(acc + b_ref[...], 0.0).astype(o_ref.dtype)


def _tail_kernel(p3_ref, w3_ref, b3_ref, w4_ref, b4_ref,
                 w1_ref, b1_ref, w2_ref, b2_ref, o_ref):
    """Fused conv3+ReLU+pool + conv4+ReLU+pool + fc1+ReLU + fc2 for ONE image.
       p3_ref: (1, 16, K3) bf16  -- conv3 im2col rows (4x4 output positions)
       w3_ref: (K3, 128) bf16    b3_ref: (1, 128) f32
       w4_ref: (512, 512) bf16   -- conv4 block-rearranged (4 pooled taps x 4 positions)
       b4_ref: (1, 512) f32      -- conv4 bias tiled per position
       w1_ref: (128, 512) bf16   b1_ref: (1, 512) f32
       w2_ref: (512, 128) bf16   b2_ref: (1, 128) f32
       o_ref : (1, 1, 128) f32"""
    # conv3 + bias + ReLU: rows are the 4x4 output positions (row = h*4 + w)
    a3 = jnp.dot(p3_ref[0], w3_ref[...], preferred_element_type=jnp.float32)
    a3 = jnp.maximum(a3 + b3_ref[...], 0.0)                        # (16, 128)

    def pool4(r0, r1, r2, r3):   # 2x2 max-pool over conv3 output rows
        return jnp.maximum(jnp.maximum(a3[r0:r0 + 1], a3[r1:r1 + 1]),
                           jnp.maximum(a3[r2:r2 + 1], a3[r3:r3 + 1]))
    p00 = pool4(0, 1, 4, 5)
    p01 = pool4(2, 3, 6, 7)
    p10 = pool4(8, 9, 12, 13)
    p11 = pool4(10, 11, 14, 15)
    pflat = jnp.concatenate([p00, p01, p10, p11], axis=1).astype(jnp.bfloat16)  # (1, 512)

    # conv4: all 4 (pre-pool) output positions at once, then bias + ReLU + final pool
    a4 = jnp.dot(pflat, w4_ref[...], preferred_element_type=jnp.float32)
    a4 = jnp.maximum(a4 + b4_ref[...], 0.0)                        # (1, 512) = 4 pos x 128ch
    feat = jnp.maximum(jnp.maximum(a4[:, 0:128], a4[:, 128:256]),
                       jnp.maximum(a4[:, 256:384], a4[:, 384:512]))  # (1, 128)

    # fc1 + ReLU + fc2
    h = jnp.dot(feat.astype(jnp.bfloat16), w1_ref[...], preferred_element_type=jnp.float32)
    h = jnp.maximum(h + b1_ref[...], 0.0)                          # (1, 512)
    o = jnp.dot(h.astype(jnp.bfloat16), w2_ref[...], preferred_element_type=jnp.float32)
    o_ref[0] = o + b2_ref[...]                                     # (1, 128)


# ---------------------------------------------------------------------------
# Conv + ReLU + 2x2/2 max-pool stage (one pallas_call)
# ---------------------------------------------------------------------------
def conv_relu_pool(x, w, b, *, kh, kw, rows_per_tile=512):
    """x: (B, H, W, Cin) activations (real channels only)
       w: (Kp, Np) bf16 pre-padded weight with Kp >= kh*kw*Cin;  b: (1, Np) f32
       Returns (B, Ho//2, Wo//2, Np) bf16; channels beyond the real Cout are zero."""
    B, H, W, Cin = x.shape
    Kp, Np = w.shape
    Kr = kh * kw * Cin
    assert Kr <= Kp
    Ho, Wo = H - kh + 1, W - kw + 1
    assert Ho % 2 == 0 and Wo % 2 == 0, "2x2 pool requires even conv output"
    Hp, Wp = Ho // 2, Wo // 2

    x = x.astype(jnp.bfloat16)
    # im2col; the K zero-padding is folded into this single concatenate.
    slabs = [x[:, dy:dy + Ho, dx:dx + Wo, :] for dy in range(kh) for dx in range(kw)]
    if Kp > Kr:
        slabs.append(jnp.zeros((B, Ho, Wo, Kp - Kr), jnp.bfloat16))
    P = jnp.concatenate(slabs, axis=-1)                            # (B, Ho, Wo, Kp)

    # Group conv rows by their 2x2 pooling tap: (4, M, Kp)
    M = B * Hp * Wp
    taps = jnp.stack([P[:, py::2, px::2, :].reshape(M, Kp)
                      for py in range(2) for px in range(2)], axis=0)

    # M tiling: ~512-row tiles, rounded to multiples of 16 (bf16 sublane packing)
    steps = pl.cdiv(M, rows_per_tile)
    tm = _round_up(pl.cdiv(M, steps), 16)
    Mpad = steps * tm
    if Mpad > M:
        taps = jnp.pad(taps, ((0, 0), (0, Mpad - M), (0, 0)))

    out = pl.pallas_call(
        _conv_relu_pool_kernel,
        grid=(steps,),
        in_specs=[pl.BlockSpec((4, tm, Kp), lambda i: (0, i, 0)),
                  pl.BlockSpec((Kp, Np), lambda i: (0, 0)),
                  pl.BlockSpec((1, Np), lambda i: (0, 0))],
        out_specs=pl.BlockSpec((tm, Np), lambda i: (i, 0)),
        out_shape=jax.ShapeDtypeStruct((Mpad, Np), jnp.bfloat16),
        compiler_params=pltpu.CompilerParams(
            dimension_semantics=("parallel",),
            vmem_limit_bytes=VMEM_LIMIT),
    )(taps, w, b)
    return out[:M].reshape(B, Hp, Wp, Np)


# ---------------------------------------------------------------------------
# Fused tail: conv3 + pool + conv4 + pool + fc1 + fc2 (one pallas_call)
# ---------------------------------------------------------------------------
def tail_head(x, prep):
    """x: (B, 4, 4, C) bf16 conv2 pooled output (real channels = first 50)."""
    B = x.shape[0]
    xs = x[:, :, :, :50]                                           # drop padded channels
    xp = jnp.pad(xs, ((0, 0), (1, 1), (1, 1), (0, 0)))             # conv3 padding=1 -> (B,6,6,50)
    slabs = [xp[:, dy:dy + 4, dx:dx + 4, :] for dy in range(3) for dx in range(3)]
    K3 = prep["c3_w"].shape[0]
    K3r = 9 * 50
    if K3 > K3r:
        slabs.append(jnp.zeros((B, 4, 4, K3 - K3r), jnp.bfloat16))
    p3 = jnp.concatenate(slabs, axis=-1).reshape(B, 16, K3)        # (B, 16, 512)

    out = pl.pallas_call(
        _tail_kernel,
        grid=(B,),
        in_specs=[pl.BlockSpec((1, 16, K3), lambda i: (i, 0, 0)),
                  pl.BlockSpec(prep["c3_w"].shape, lambda i: (0, 0)),
                  pl.BlockSpec(prep["c3_b"].shape, lambda i: (0, 0)),
                  pl.BlockSpec(prep["c4_w"].shape, lambda i: (0, 0)),
                  pl.BlockSpec(prep["c4_b"].shape, lambda i: (0, 0)),
                  pl.BlockSpec(prep["f1_w"].shape, lambda i: (0, 0)),
                  pl.BlockSpec(prep["f1_b"].shape, lambda i: (0, 0)),
                  pl.BlockSpec(prep["f2_w"].shape, lambda i: (0, 0)),
                  pl.BlockSpec(prep["f2_b"].shape, lambda i: (0, 0))],
        out_specs=pl.BlockSpec((1, 1, 128), lambda i: (i, 0, 0)),
        out_shape=jax.ShapeDtypeStruct((B, 1, 128), jnp.float32),
        compiler_params=pltpu.CompilerParams(
            dimension_semantics=("parallel",),
            vmem_limit_bytes=VMEM_LIMIT),
    )(p3, prep["c3_w"], prep["c3_b"], prep["c4_w"], prep["c4_b"],
      prep["f1_w"], prep["f1_b"], prep["f2_w"], prep["f2_b"])
    return out[:, 0, :10]


# ---------------------------------------------------------------------------
# Parameters (deterministic, synthetic) — shapes match Net_l.__init__
# ---------------------------------------------------------------------------
def init_params(key):
    def winit(k, shape, fan_in):
        return jax.random.normal(k, shape, jnp.float32) / jnp.sqrt(float(fan_in))

    ks = jax.random.split(key, 12)
    return {
        # conv weights stored as (kh, kw, Cin, Cout)
        "conv1_w": winit(ks[0], (5, 5, 1, 20), 5 * 5 * 1),
        "conv1_b": winit(ks[1], (1, 20), 5 * 5 * 1),
        "conv2_w": winit(ks[2], (5, 5, 20, 50), 5 * 5 * 20),
        "conv2_b": winit(ks[3], (1, 50), 5 * 5 * 20),
        "conv3_w": winit(ks[4], (3, 3, 50, 50), 3 * 3 * 50),
        "conv3_b": winit(ks[5], (1, 50), 3 * 3 * 50),
        "conv4_w": winit(ks[6], (3, 3, 50, 50), 3 * 3 * 50),
        "conv4_b": winit(ks[7], (1, 50), 3 * 3 * 50),
        # fc weights stored as (in, out)
        "fc1_w": winit(ks[8], (50, 500), 50),
        "fc1_b": winit(ks[9], (1, 500), 50),
        "fc2_w": winit(ks[10], (500, 10), 500),
        "fc2_b": winit(ks[11], (1, 10), 500),
    }


def prepare_params(params):
    """One-time weight prep: padding, bf16 casts, conv4 block rearrangement."""
    bf16, f32 = jnp.bfloat16, jnp.float32

    def pad2(a, rows, cols, dtype):
        r, c = a.shape
        return jnp.pad(a, ((0, rows - r), (0, cols - c))).astype(dtype)

    prep = {}
    # conv1: 5x5x1 -> 20.  K left unpadded at 25 (largest-M stage: ~5x fewer taps bytes).
    prep["c1_w"] = pad2(params["conv1_w"].reshape(25, 20), 25, 128, bf16)
    prep["c1_b"] = pad2(params["conv1_b"], 1, 128, f32)
    # conv2: 5x5x20 -> 50.  K = 500 -> 512 (not 3200: input sliced to real 20 channels).
    prep["c2_w"] = pad2(params["conv2_w"].reshape(500, 50), 512, 128, bf16)
    prep["c2_b"] = pad2(params["conv2_b"], 1, 128, f32)
    # conv3: 3x3x50 -> 50.  K = 450 -> 512 (im2col layout).
    prep["c3_w"] = pad2(params["conv3_w"].reshape(450, 50), 512, 128, bf16)
    prep["c3_b"] = pad2(params["conv3_b"], 1, 128, f32)
    # conv4 (3x3, pad 1, on a 2x2 map): out[h,w] = sum_{a,b} pooled[a,b] @ W[a+1-h, b+1-w].
    # Rearrange into one (4*128, 4*128) matrix so the kernel does a single matmul whose
    # input is [p00|p01|p10|p11] and whose output lanes are the 4 positions (128 ch each).
    w4 = jnp.pad(params["conv4_w"], ((0, 0), (0, 0), (0, 78), (0, 78)))   # (3,3,128,128)
    cols = []
    for h in range(2):
        for w in range(2):
            cols.append(jnp.concatenate(
                [w4[1 - h, 1 - w], w4[1 - h, 2 - w],
                 w4[2 - h, 1 - w], w4[2 - h, 2 - w]], axis=0))            # (512, 128)
    prep["c4_w"] = jnp.concatenate(cols, axis=1).astype(bf16)             # (512, 512)
    prep["c4_b"] = jnp.tile(pad2(params["conv4_b"], 1, 128, f32), (1, 4)) # (1, 512)
    # fc1: 50 -> 500 ; fc2: 500 -> 10
    prep["f1_w"] = pad2(params["fc1_w"], 128, 512, bf16)
    prep["f1_b"] = pad2(params["fc1_b"], 1, 512, f32)
    prep["f2_w"] = pad2(params["fc2_w"], 512, 128, bf16)
    prep["f2_b"] = pad2(params["fc2_b"], 1, 128, f32)
    return prep


# ---------------------------------------------------------------------------
# Forward pass (mirrors Net_l.forward) — 3 pallas_calls total
# ---------------------------------------------------------------------------
def forward(prep, x_nchw):
    x = jnp.transpose(x_nchw, (0, 2, 3, 1))                                 # NCHW -> NHWC
    x = conv_relu_pool(x, prep["c1_w"], prep["c1_b"], kh=5, kw=5)           # 28 -> 24 -> 12
    x = conv_relu_pool(x[..., :20], prep["c2_w"], prep["c2_b"], kh=5, kw=5) # 12 ->  8 ->  4
    return tail_head(x, prep)   # conv3+pool+conv4+pool+fc1+fc2, fused; == view(-1,50) head


if __name__ == "__main__":
    key = jax.random.PRNGKey(0)
    pkey, xkey = jax.random.split(key)
    params = init_params(pkey)
    prep = prepare_params(params)          # one-time weight prep, hoisted out of forward
    # 1-channel 28x28 input (spatial becomes 1x1 after the 4 conv/pool stages).
    x = jax.random.normal(xkey, (2, 1, 28, 28), jnp.float32)
    out = jax.jit(forward)(prep, x)
    out = jax.block_until_ready(out)
    assert out.shape == (2, 10) and out.dtype == jnp.float32
    print("KERNEL_OK")
</pallas_src>

<mosaic_0001>
module attributes {stable_mosaic.version = 11 : i64} {
  func.func @_conv_relu_pool_kernel(%arg0: i32, %arg1: memref<4x288x25xbf16, #tpu.memory_space<vmem>>, %arg2: memref<25x128xbf16, #tpu.memory_space<vmem>>, %arg3: memref<1x128xf32, #tpu.memory_space<vmem>>, %arg4: memref<288x128xbf16, #tpu.memory_space<vmem>>) attributes {dimension_semantics = [#tpu.dimension_semantics<parallel>], iteration_bounds = array<i64: 1>, scalar_prefetch = 0 : i64, scratch_operands = 0 : i64, tpu.core_type = #tpu.core_type<tc>, window_params = [{transform_indices = @transform_0, window_bounds = array<i64: 4, 288, 25>}, {pipeline_mode = #tpu.pipeline_mode<synchronous>, transform_indices = @transform_1, window_bounds = array<i64: 25, 128>}, {pipeline_mode = #tpu.pipeline_mode<synchronous>, transform_indices = @transform_2, window_bounds = array<i64: 1, 128>}, {transform_indices = @transform_3, window_bounds = array<i64: 288, 128>}]} {
    %c0 = arith.constant 0 : index
    %c0_0 = arith.constant 0 : index
    %0 = vector.load %arg2[%c0, %c0_0] : memref<25x128xbf16, #tpu.memory_space<vmem>>, vector<25x128xbf16>
    %c0_1 = arith.constant 0 : index
    %c0_2 = arith.constant 0 : index
    %c0_3 = arith.constant 0 : index
    %1 = vector.load %arg1[%c0_1, %c0_2, %c0_3] : memref<4x288x25xbf16, #tpu.memory_space<vmem>>, vector<1x288x25xbf16>
    %2 = vector.shape_cast %1 : vector<1x288x25xbf16> to vector<288x25xbf16>
    %cst = arith.constant dense<0.000000e+00> : vector<288x128xf32>
    %3 = tpu.matmul %2, %0, %cst {dimension_numbers = #tpu.dot_dimension_numbers<[1], [0], [0], [1], [0, 0, 1, 1], [], []>} : vector<288x25xbf16>, vector<25x128xbf16>, vector<288x128xf32> -> vector<288x128xf32>
    %c1 = arith.constant 1 : index
    %c0_4 = arith.constant 0 : index
    %c0_5 = arith.constant 0 : index
    %4 = vector.load %arg1[%c1, %c0_4, %c0_5] : memref<4x288x25xbf16, #tpu.memory_space<vmem>>, vector<1x288x25xbf16>
    %5 = vector.shape_cast %4 : vector<1x288x25xbf16> to vector<288x25xbf16>
    %cst_6 = arith.constant dense<0.000000e+00> : vector<288x128xf32>
    %6 = tpu.matmul %5, %0, %cst_6 {dimension_numbers = #tpu.dot_dimension_numbers<[1], [0], [0], [1], [0, 0, 1, 1], [], []>} : vector<288x25xbf16>, vector<25x128xbf16>, vector<288x128xf32> -> vector<288x128xf32>
    %7 = arith.maximumf %3, %6 : vector<288x128xf32>
    %c2 = arith.constant 2 : index
    %c0_7 = arith.constant 0 : index
    %c0_8 = arith.constant 0 : index
    %8 = vector.load %arg1[%c2, %c0_7, %c0_8] : memref<4x288x25xbf16, #tpu.memory_space<vmem>>, vector<1x288x25xbf16>
    %9 = vector.shape_cast %8 : vector<1x288x25xbf16> to vector<288x25xbf16>
    %cst_9 = arith.constant dense<0.000000e+00> : vector<288x128xf32>
    %10 = tpu.matmul %9, %0, %cst_9 {dimension_numbers = #tpu.dot_dimension_numbers<[1], [0], [0], [1], [0, 0, 1, 1], [], []>} : vector<288x25xbf16>, vector<25x128xbf16>, vector<288x128xf32> -> vector<288x128xf32>
    %11 = arith.maximumf %7, %10 : vector<288x128xf32>
    %c3 = arith.constant 3 : index
    %c0_10 = arith.constant 0 : index
    %c0_11 = arith.constant 0 : index
    %12 = vector.load %arg1[%c3, %c0_10, %c0_11] : memref<4x288x25xbf16, #tpu.memory_space<vmem>>, vector<1x288x25xbf16>
    %13 = vector.shape_cast %12 : vector<1x288x25xbf16> to vector<288x25xbf16>
    %cst_12 = arith.constant dense<0.000000e+00> : vector<288x128xf32>
    %14 = tpu.matmul %13, %0, %cst_12 {dimension_numbers = #tpu.dot_dimension_numbers<[1], [0], [0], [1], [0, 0, 1, 1], [], []>} : vector<288x25xbf16>, vector<25x128xbf16>, vector<288x128xf32> -> vector<288x128xf32>
    %15 = arith.maximumf %11, %14 : vector<288x128xf32>
    %c0_13 = arith.constant 0 : index
    %c0_14 = arith.constant 0 : index
    %16 = vector.load %arg3[%c0_13, %c0_14] : memref<1x128xf32, #tpu.memory_space<vmem>>, vector<1x128xf32>
    %17 = vector.broadcast %16 : vector<1x128xf32> to vector<288x128xf32>
    %18 = arith.addf %15, %17 : vector<288x128xf32>
    %cst_15 = arith.constant 0.000000e+00 : f32
    %19 = vector.broadcast %cst_15 : f32 to vector<288x128xf32>
    %20 = arith.maximumf %18, %19 : vector<288x128xf32>
    %21 = arith.truncf %20 : vector<288x128xf32> to vector<288x128xbf16>
    %c0_16 = arith.constant 0 : index
    %c0_17 = arith.constant 0 : index
    %22 = vector.load %arg4[%c0_16, %c0_17] : memref<288x128xbf16, #tpu.memory_space<vmem>>, vector<288x128xbf16>
    tpu.vector_store %arg4[%c0_16, %c0_17], %21 {strides = array<i32>} : memref<288x128xbf16, #tpu.memory_space<vmem>>, vector<288x128xbf16>,
    return
  }
  func.func @transform_0(%arg0: i32) -> (i32, i32, i32) {
    %c0_i32 = arith.constant 0 : i32
    %c0_i32_0 = arith.constant 0 : i32
    %c0_i32_1 = arith.constant 0 : i32
    return %c0_i32, %arg0, %c0_i32_0 : i32, i32, i32
  }
  func.func @transform_1(%arg0: i32) -> (i32, i32) {
    %c0_i32 = arith.constant 0 : i32
    %c0_i32_0 = arith.constant 0 : i32
    %c0_i32_1 = arith.constant 0 : i32
    return %c0_i32, %c0_i32_0 : i32, i32
  }
  func.func @transform_2(%arg0: i32) -> (i32, i32) {
    %c0_i32 = arith.constant 0 : i32
    %c0_i32_0 = arith.constant 0 : i32
    %c0_i32_1 = arith.constant 0 : i32
    return %c0_i32, %c0_i32_0 : i32, i32
  }
  func.func @transform_3(%arg0: i32) -> (i32, i32) {
    %c0_i32 = arith.constant 0 : i32
    %c0_i32_0 = arith.constant 0 : i32
    return %arg0, %c0_i32 : i32, i32
  }
}

module attributes {stable_mosaic.version = 11 : i64} {
  func.func @_conv_relu_pool_kernel(%arg0: i32, %arg1: memref<4x32x512xbf16, #tpu.memory_space<vmem>>, %arg2: memref<512x128xbf16, #tpu.memory_space<vmem>>, %arg3: memref<1x128xf32, #tpu.memory_space<vmem>>, %arg4: memref<32x128xbf16, #tpu.memory_space<vmem>>) attributes {dimension_semantics = [#tpu.dimension_semantics<parallel>], iteration_bounds = array<i64: 1>, scalar_prefetch = 0 : i64, scratch_operands = 0 : i64, tpu.core_type = #tpu.core_type<tc>, window_params = [{transform_indices = @transform_0, window_bounds = array<i64: 4, 32, 512>}, {pipeline_mode = #tpu.pipeline_mode<synchronous>, transform_indices = @transform_1, window_bounds = array<i64: 512, 128>}, {pipeline_mode = #tpu.pipeline_mode<synchronous>, transform_indices = @transform_2, window_bounds = array<i64: 1, 128>}, {transform_indices = @transform_3, window_bounds = array<i64: 32, 128>}]} {
    %c0 = arith.constant 0 : index
    %c0_0 = arith.constant 0 : index
    %0 = vector.load %arg2[%c0, %c0_0] : memref<512x128xbf16, #tpu.memory_space<vmem>>, vector<512x128xbf16>
    %c0_1 = arith.constant 0 : index
    %c0_2 = arith.constant 0 : index
    %c0_3 = arith.constant 0 : index
    %1 = vector.load %arg1[%c0_1, %c0_2, %c0_3] : memref<4x32x512xbf16, #tpu.memory_space<vmem>>, vector<1x32x512xbf16>
    %2 = vector.shape_cast %1 : vector<1x32x512xbf16> to vector<32x512xbf16>
    %cst = arith.constant dense<0.000000e+00> : vector<32x128xf32>
    %3 = tpu.matmul %2, %0, %cst {dimension_numbers = #tpu.dot_dimension_numbers<[1], [0], [0], [1], [0, 0, 1, 1], [], []>} : vector<32x512xbf16>, vector<512x128xbf16>, vector<32x128xf32> -> vector<32x128xf32>
    %c1 = arith.constant 1 : index
    %c0_4 = arith.constant 0 : index
    %c0_5 = arith.constant 0 : index
    %4 = vector.load %arg1[%c1, %c0_4, %c0_5] : memref<4x32x512xbf16, #tpu.memory_space<vmem>>, vector<1x32x512xbf16>
    %5 = vector.shape_cast %4 : vector<1x32x512xbf16> to vector<32x512xbf16>
    %cst_6 = arith.constant dense<0.000000e+00> : vector<32x128xf32>
    %6 = tpu.matmul %5, %0, %cst_6 {dimension_numbers = #tpu.dot_dimension_numbers<[1], [0], [0], [1], [0, 0, 1, 1], [], []>} : vector<32x512xbf16>, vector<512x128xbf16>, vector<32x128xf32> -> vector<32x128xf32>
    %7 = arith.maximumf %3, %6 : vector<32x128xf32>
    %c2 = arith.constant 2 : index
    %c0_7 = arith.constant 0 : index
    %c0_8 = arith.constant 0 : index
    %8 = vector.load %arg1[%c2, %c0_7, %c0_8] : memref<4x32x512xbf16, #tpu.memory_space<vmem>>, vector<1x32x512xbf16>
    %9 = vector.shape_cast %8 : vector<1x32x512xbf16> to vector<32x512xbf16>
    %cst_9 = arith.constant dense<0.000000e+00> : vector<32x128xf32>
    %10 = tpu.matmul %9, %0, %cst_9 {dimension_numbers = #tpu.dot_dimension_numbers<[1], [0], [0], [1], [0, 0, 1, 1], [], []>} : vector<32x512xbf16>, vector<512x128xbf16>, vector<32x128xf32> -> vector<32x128xf32>
    %11 = arith.maximumf %7, %10 : vector<32x128xf32>
    %c3 = arith.constant 3 : index
    %c0_10 = arith.constant 0 : index
    %c0_11 = arith.constant 0 : index
    %12 = vector.load %arg1[%c3, %c0_10, %c0_11] : memref<4x32x512xbf16, #tpu.memory_space<vmem>>, vector<1x32x512xbf16>
    %13 = vector.shape_cast %12 : vector<1x32x512xbf16> to vector<32x512xbf16>
    %cst_12 = arith.constant dense<0.000000e+00> : vector<32x128xf32>
    %14 = tpu.matmul %13, %0, %cst_12 {dimension_numbers = #tpu.dot_dimension_numbers<[1], [0], [0], [1], [0, 0, 1, 1], [], []>} : vector<32x512xbf16>, vector<512x128xbf16>, vector<32x128xf32> -> vector<32x128xf32>
    %15 = arith.maximumf %11, %14 : vector<32x128xf32>
    %c0_13 = arith.constant 0 : index
    %c0_14 = arith.constant 0 : index
    %16 = vector.load %arg3[%c0_13, %c0_14] : memref<1x128xf32, #tpu.memory_space<vmem>>, vector<1x128xf32>
    %17 = vector.broadcast %16 : vector<1x128xf32> to vector<32x128xf32>
    %18 = arith.addf %15, %17 : vector<32x128xf32>
    %cst_15 = arith.constant 0.000000e+00 : f32
    %19 = vector.broadcast %cst_15 : f32 to vector<32x128xf32>
    %20 = arith.maximumf %18, %19 : vector<32x128xf32>
    %21 = arith.truncf %20 : vector<32x128xf32> to vector<32x128xbf16>
    %c0_16 = arith.constant 0 : index
    %c0_17 = arith.constant 0 : index
    %22 = vector.load %arg4[%c0_16, %c0_17] : memref<32x128xbf16, #tpu.memory_space<vmem>>, vector<32x128xbf16>
    tpu.vector_store %arg4[%c0_16, %c0_17], %21 {strides = array<i32>} : memref<32x128xbf16, #tpu.memory_space<vmem>>, vector<32x128xbf16>,
    return
  }
  func.func @transform_0(%arg0: i32) -> (i32, i32, i32) {
    %c0_i32 = arith.constant 0 : i32
    %c0_i32_0 = arith.constant 0 : i32
    %c0_i32_1 = arith.constant 0 : i32
    return %c0_i32, %arg0, %c0_i32_0 : i32, i32, i32
  }
  func.func @transform_1(%arg0: i32) -> (i32, i32) {
    %c0_i32 = arith.constant 0 : i32
    %c0_i32_0 = arith.constant 0 : i32
    %c0_i32_1 = arith.constant 0 : i32
    return %c0_i32, %c0_i32_0 : i32, i32
  }
  func.func @transform_2(%arg0: i32) -> (i32, i32) {
    %c0_i32 = arith.constant 0 : i32
    %c0_i32_0 = arith.constant 0 : i32
    %c0_i32_1 = arith.constant 0 : i32
    return %c0_i32, %c0_i32_0 : i32, i32
  }
  func.func @transform_3(%arg0: i32) -> (i32, i32) {
    %c0_i32 = arith.constant 0 : i32
    %c0_i32_0 = arith.constant 0 : i32
    return %arg0, %c0_i32 : i32, i32
  }
}

module attributes {stable_mosaic.version = 11 : i64} {
  func.func @_tail_kernel(%arg0: i32, %arg1: memref<1x16x512xbf16, #tpu.memory_space<vmem>>, %arg2: memref<512x128xbf16, #tpu.memory_space<vmem>>, %arg3: memref<1x128xf32, #tpu.memory_space<vmem>>, %arg4: memref<512x512xbf16, #tpu.memory_space<vmem>>, %arg5: memref<1x512xf32, #tpu.memory_space<vmem>>, %arg6: memref<128x512xbf16, #tpu.memory_space<vmem>>, %arg7: memref<1x512xf32, #tpu.memory_space<vmem>>, %arg8: memref<512x128xbf16, #tpu.memory_space<vmem>>, %arg9: memref<1x128xf32, #tpu.memory_space<vmem>>, %arg10: memref<1x1x128xf32, #tpu.memory_space<vmem>>) attributes {dimension_semantics = [#tpu.dimension_semantics<parallel>], iteration_bounds = array<i64: 2>, scalar_prefetch = 0 : i64, scratch_operands = 0 : i64, tpu.core_type = #tpu.core_type<tc>, window_params = [{transform_indices = @transform_0, window_bounds = array<i64: 1, 16, 512>}, {pipeline_mode = #tpu.pipeline_mode<synchronous>, transform_indices = @transform_1, window_bounds = array<i64: 512, 128>}, {pipeline_mode = #tpu.pipeline_mode<synchronous>, transform_indices = @transform_2, window_bounds = array<i64: 1, 128>}, {pipeline_mode = #tpu.pipeline_mode<synchronous>, transform_indices = @transform_3, window_bounds = array<i64: 512, 512>}, {pipeline_mode = #tpu.pipeline_mode<synchronous>, transform_indices = @transform_4, window_bounds = array<i64: 1, 512>}, {pipeline_mode = #tpu.pipeline_mode<synchronous>, transform_indices = @transform_5, window_bounds = array<i64: 128, 512>}, {pipeline_mode = #tpu.pipeline_mode<synchronous>, transform_indices = @transform_6, window_bounds = array<i64: 1, 512>}, {pipeline_mode = #tpu.pipeline_mode<synchronous>, transform_indices = @transform_7, window_bounds = array<i64: 512, 128>}, {pipeline_mode = #tpu.pipeline_mode<synchronous>, transform_indices = @transform_8, window_bounds = array<i64: 1, 128>}, {transform_indices = @transform_9, window_bounds = array<i64: 1, 1, 128>}]} {
    %c0 = arith.constant 0 : index
    %c0_0 = arith.constant 0 : index
    %c0_1 = arith.constant 0 : index
    %0 = vector.load %arg1[%c0, %c0_0, %c0_1] : memref<1x16x512xbf16, #tpu.memory_space<vmem>>, vector<1x16x512xbf16>
    %1 = vector.shape_cast %0 : vector<1x16x512xbf16> to vector<16x512xbf16>
    %c0_2 = arith.constant 0 : index
    %c0_3 = arith.constant 0 : index
    %2 = vector.load %arg2[%c0_2, %c0_3] : memref<512x128xbf16, #tpu.memory_space<vmem>>, vector<512x128xbf16>
    %cst = arith.constant dense<0.000000e+00> : vector<16x128xf32>
    %3 = tpu.matmul %1, %2, %cst {dimension_numbers = #tpu.dot_dimension_numbers<[1], [0], [0], [1], [0, 0, 1, 1], [], []>} : vector<16x512xbf16>, vector<512x128xbf16>, vector<16x128xf32> -> vector<16x128xf32>
    %c0_4 = arith.constant 0 : index
    %c0_5 = arith.constant 0 : index
    %4 = vector.load %arg3[%c0_4, %c0_5] : memref<1x128xf32, #tpu.memory_space<vmem>>, vector<1x128xf32>
    %5 = vector.broadcast %4 : vector<1x128xf32> to vector<16x128xf32>
    %6 = arith.addf %3, %5 : vector<16x128xf32>
    %cst_6 = arith.constant 0.000000e+00 : f32
    %7 = vector.broadcast %cst_6 : f32 to vector<16x128xf32>
    %8 = arith.maximumf %6, %7 : vector<16x128xf32>
    %9 = vector.extract_strided_slice %8 {offsets = [0, 0], sizes = [1, 128], strides = [1, 1]} : vector<16x128xf32> to vector<1x128xf32>
    %10 = vector.extract_strided_slice %8 {offsets = [1, 0], sizes = [1, 128], strides = [1, 1]} : vector<16x128xf32> to vector<1x128xf32>
    %11 = arith.maximumf %9, %10 : vector<1x128xf32>
    %12 = vector.extract_strided_slice %8 {offsets = [4, 0], sizes = [1, 128], strides = [1, 1]} : vector<16x128xf32> to vector<1x128xf32>
    %13 = vector.extract_strided_slice %8 {offsets = [5, 0], sizes = [1, 128], strides = [1, 1]} : vector<16x128xf32> to vector<1x128xf32>
    %14 = arith.maximumf %12, %13 : vector<1x128xf32>
    %15 = arith.maximumf %11, %14 : vector<1x128xf32>
    %16 = vector.extract_strided_slice %8 {offsets = [2, 0], sizes = [1, 128], strides = [1, 1]} : vector<16x128xf32> to vector<1x128xf32>
    %17 = vector.extract_strided_slice %8 {offsets = [3, 0], sizes = [1, 128], strides = [1, 1]} : vector<16x128xf32> to vector<1x128xf32>
    %18 = arith.maximumf %16, %17 : vector<1x128xf32>
    %19 = vector.extract_strided_slice %8 {offsets = [6, 0], sizes = [1, 128], strides = [1, 1]} : vector<16x128xf32> to vector<1x128xf32>
    %20 = vector.extract_strided_slice %8 {offsets = [7, 0], sizes = [1, 128], strides = [1, 1]} : vector<16x128xf32> to vector<1x128xf32>
    %21 = arith.maximumf %19, %20 : vector<1x128xf32>
    %22 = arith.maximumf %18, %21 : vector<1x128xf32>
    %23 = vector.extract_strided_slice %8 {offsets = [8, 0], sizes = [1, 128], strides = [1, 1]} : vector<16x128xf32> to vector<1x128xf32>
    %24 = vector.extract_strided_slice %8 {offsets = [9, 0], sizes = [1, 128], strides = [1, 1]} : vector<16x128xf32> to vector<1x128xf32>
    %25 = arith.maximumf %23, %24 : vector<1x128xf32>
    %26 = vector.extract_strided_slice %8 {offsets = [12, 0], sizes = [1, 128], strides = [1, 1]} : vector<16x128xf32> to vector<1x128xf32>
    %27 = vector.extract_strided_slice %8 {offsets = [13, 0], sizes = [1, 128], strides = [1, 1]} : vector<16x128xf32> to vector<1x128xf32>
    %28 = arith.maximumf %26, %27 : vector<1x128xf32>
    %29 = arith.maximumf %25, %28 : vector<1x128xf32>
    %30 = vector.extract_strided_slice %8 {offsets = [10, 0], sizes = [1, 128], strides = [1, 1]} : vector<16x128xf32> to vector<1x128xf32>
    %31 = vector.extract_strided_slice %8 {offsets = [11, 0], sizes = [1, 128], strides = [1, 1]} : vector<16x128xf32> to vector<1x128xf32>
    %32 = arith.maximumf %30, %31 : vector<1x128xf32>
    %33 = vector.extract_strided_slice %8 {offsets = [14, 0], sizes = [1, 128], strides = [1, 1]} : vector<16x128xf32> to vector<1x128xf32>
    %34 = vector.extract_strided_slice %8 {offsets = [15, 0], sizes = [1, 128], strides = [1, 1]} : vector<16x128xf32> to vector<1x128xf32>
    %35 = arith.maximumf %33, %34 : vector<1x128xf32>
    %36 = arith.maximumf %32, %35 : vector<1x128xf32>
    %37 = tpu.concatenate %15, %22, %29, %36 in 1 : vector<1x128xf32>, vector<1x128xf32>, vector<1x128xf32>, vector<1x128xf32> -> vector<1x512xf32>
    %38 = arith.truncf %37 : vector<1x512xf32> to vector<1x512xbf16>
    %c0_7 = arith.constant 0 : index
    %c0_8 = arith.constant 0 : index
    %39 = vector.load %arg4[%c0_7, %c0_8] : memref<512x512xbf16, #tpu.memory_space<vmem>>, vector<512x512xbf16>
    %cst_9 = arith.constant dense<0.000000e+00> : vector<1x512xf32>
    %40 = tpu.matmul %38, %39, %cst_9 {dimension_numbers = #tpu.dot_dimension_numbers<[1], [0], [0], [1], [0, 0, 1, 1], [], []>} : vector<1x512xbf16>, vector<512x512xbf16>, vector<1x512xf32> -> vector<1x512xf32>
    %c0_10 = arith.constant 0 : index
    %c0_11 = arith.constant 0 : index
    %41 = vector.load %arg5[%c0_10, %c0_11] : memref<1x512xf32, #tpu.memory_space<vmem>>, vector<1x512xf32>
    %42 = arith.addf %40, %41 : vector<1x512xf32>
    %cst_12 = arith.constant 0.000000e+00 : f32
    %43 = vector.broadcast %cst_12 : f32 to vector<1x512xf32>
    %44 = arith.maximumf %42, %43 : vector<1x512xf32>
    %45 = vector.extract_strided_slice %44 {offsets = [0, 0], sizes = [1, 128], strides = [1, 1]} : vector<1x512xf32> to vector<1x128xf32>
    %46 = vector.extract_strided_slice %44 {offsets = [0, 128], sizes = [1, 128], strides = [1, 1]} : vector<1x512xf32> to vector<1x128xf32>
    %47 = arith.maximumf %45, %46 : vector<1x128xf32>
    %48 = vector.extract_strided_slice %44 {offsets = [0, 256], sizes = [1, 128], strides = [1, 1]} : vector<1x512xf32> to vector<1x128xf32>
    %49 = vector.extract_strided_slice %44 {offsets = [0, 384], sizes = [1, 128], strides = [1, 1]} : vector<1x512xf32> to vector<1x128xf32>
    %50 = arith.maximumf %48, %49 : vector<1x128xf32>
    %51 = arith.maximumf %47, %50 : vector<1x128xf32>
    %52 = arith.truncf %51 : vector<1x128xf32> to vector<1x128xbf16>
    %c0_13 = arith.constant 0 : index
    %c0_14 = arith.constant 0 : index
    %53 = vector.load %arg6[%c0_13, %c0_14] : memref<128x512xbf16, #tpu.memory_space<vmem>>, vector<128x512xbf16>
    %cst_15 = arith.constant dense<0.000000e+00> : vector<1x512xf32>
    %54 = tpu.matmul %52, %53, %cst_15 {dimension_numbers = #tpu.dot_dimension_numbers<[1], [0], [0], [1], [0, 0, 1, 1], [], []>} : vector<1x128xbf16>, vector<128x512xbf16>, vector<1x512xf32> -> vector<1x512xf32>
    %c0_16 = arith.constant 0 : index
    %c0_17 = arith.constant 0 : index
    %55 = vector.load %arg7[%c0_16, %c0_17] : memref<1x512xf32, #tpu.memory_space<vmem>>, vector<1x512xf32>
    %56 = arith.addf %54, %55 : vector<1x512xf32>
    %cst_18 = arith.constant 0.000000e+00 : f32
    %57 = vector.broadcast %cst_18 : f32 to vector<1x512xf32>
    %58 = arith.maximumf %56, %57 : vector<1x512xf32>
    %59 = arith.truncf %58 : vector<1x512xf32> to vector<1x512xbf16>
    %c0_19 = arith.constant 0 : index
    %c0_20 = arith.constant 0 : index
    %60 = vector.load %arg8[%c0_19, %c0_20] : memref<512x128xbf16, #tpu.memory_space<vmem>>, vector<512x128xbf16>
    %cst_21 = arith.constant dense<0.000000e+00> : vector<1x128xf32>
    %61 = tpu.matmul %59, %60, %cst_21 {dimension_numbers = #tpu.dot_dimension_numbers<[1], [0], [0], [1], [0, 0, 1, 1], [], []>} : vector<1x512xbf16>, vector<512x128xbf16>, vector<1x128xf32> -> vector<1x128xf32>
    %c0_22 = arith.constant 0 : index
    %c0_23 = arith.constant 0 : index
    %62 = vector.load %arg9[%c0_22, %c0_23] : memref<1x128xf32, #tpu.memory_space<vmem>>, vector<1x128xf32>
    %63 = arith.addf %61, %62 : vector<1x128xf32>
    %c0_24 = arith.constant 0 : index
    %c0_25 = arith.constant 0 : index
    %c0_26 = arith.constant 0 : index
    %64 = vector.load %arg10[%c0_24, %c0_25, %c0_26] : memref<1x1x128xf32, #tpu.memory_space<vmem>>, vector<1x1x128xf32>
    %65 = vector.shape_cast %64 : vector<1x1x128xf32> to vector<1x128xf32>
    %66 = vector.shape_cast %63 : vector<1x128xf32> to vector<1x1x128xf32>
    tpu.vector_store %arg10[%c0_24, %c0_25, %c0_26], %66 {strides = array<i32>} : memref<1x1x128xf32, #tpu.memory_space<vmem>>, vector<1x1x128xf32>,
    return
  }
  func.func @transform_0(%arg0: i32) -> (i32, i32, i32) {
    %c0_i32 = arith.constant 0 : i32
    %c0_i32_0 = arith.constant 0 : i32
    %c0_i32_1 = arith.constant 0 : i32
    return %arg0, %c0_i32, %c0_i32_0 : i32, i32, i32
  }
  func.func @transform_1(%arg0: i32) -> (i32, i32) {
    %c0_i32 = arith.constant 0 : i32
    %c0_i32_0 = arith.constant 0 : i32
    %c0_i32_1 = arith.constant 0 : i32
    return %c0_i32, %c0_i32_0 : i32, i32
  }
  func.func @transform_2(%arg0: i32) -> (i32, i32) {
    %c0_i32 = arith.constant 0 : i32
    %c0_i32_0 = arith.constant 0 : i32
    %c0_i32_1 = arith.constant 0 : i32
    return %c0_i32, %c0_i32_0 : i32, i32
  }
  func.func @transform_3(%arg0: i32) -> (i32, i32) {
    %c0_i32 = arith.constant 0 : i32
    %c0_i32_0 = arith.constant 0 : i32
    %c0_i32_1 = arith.constant 0 : i32
    return %c0_i32, %c0_i32_0 : i32, i32
  }
  func.func @transform_4(%arg0: i32) -> (i32, i32) {
    %c0_i32 = arith.constant 0 : i32
    %c0_i32_0 = arith.constant 0 : i32
    %c0_i32_1 = arith.constant 0 : i32
    return %c0_i32, %c0_i32_0 : i32, i32
  }
  func.func @transform_5(%arg0: i32) -> (i32, i32) {
    %c0_i32 = arith.constant 0 : i32
    %c0_i32_0 = arith.constant 0 : i32
    %c0_i32_1 = arith.constant 0 : i32
    return %c0_i32, %c0_i32_0 : i32, i32
  }
  func.func @transform_6(%arg0: i32) -> (i32, i32) {
    %c0_i32 = arith.constant 0 : i32
    %c0_i32_0 = arith.constant 0 : i32
    %c0_i32_1 = arith.constant 0 : i32
    return %c0_i32, %c0_i32_0 : i32, i32
  }
  func.func @transform_7(%arg0: i32) -> (i32, i32) {
    %c0_i32 = arith.constant 0 : i32
    %c0_i32_0 = arith.constant 0 : i32
    %c0_i32_1 = arith.constant 0 : i32
    return %c0_i32, %c0_i32_0 : i32, i32
  }
  func.func @transform_8(%arg0: i32) -> (i32, i32) {
    %c0_i32 = arith.constant 0 : i32
    %c0_i32_0 = arith.constant 0 : i32
    %c0_i32_1 = arith.constant 0 : i32
    return %c0_i32, %c0_i32_0 : i32, i32
  }
  func.func @transform_9(%arg0: i32) -> (i32, i32, i32) {
    %c0_i32 = arith.constant 0 : i32
    %c0_i32_0 = arith.constant 0 : i32
    %c0_i32_1 = arith.constant 0 : i32
    return %arg0, %c0_i32, %c0_i32_0 : i32, i32, i32
  }
}

</mosaic_0001>

<bundles_post_ra>
// kernel: forward.3
= control target key start
LH: loop header
LB: loop body
LE: loop exit
PB: predicated region body
PF: predicated region fallthrough
CT: control target
= control target key end

     0   :  { %vm211_vm0 = vcmask 1043456   ;;  %vm212_vm1 = vcmask 1044480   ;;  %v2076_v2 = vmov 65535   ;;  %vm156_vm2 = vcmask 203776   ;;  %s2489_s1 = inlined_call_operand.vmem [shape: bf16[25,128], index: 1, kind: input, shape index: {}]   ;;  %s2490_s0 = inlined_call_operand.vmem [shape: bf16[4,288,25], index: 0, kind: input, shape index: {}]   ;;  %s2491_s2 = inlined_call_operand.vmem [shape: f32[1,128], index: 2, kind: input, shape index: {}]   ;;  %s2492_s3 = inlined_call_operand.vmem [shape: bf16[288,128], index: 3, kind: output, shape index: {}]  }
   0x1   :  { %v1495_v0 = vld [vmem:[%s2489_s1 + $0x8] sm:$0xf]  ;;  %v1894_v1 = vld [vmem:[%s2489_s1 + $0x8] sm:$0x10]  ;;  %v213_v3 = vsel %vm211_vm0, 4294967295, %v2076_v2  ;;  %v1893_v7 = vld [vmem:[%s2489_s1] sm:$0xff] }
   0x2   :  { %v1496_v4 = vor.u32 %v1894_v1, %v1495_v0  ;;  %v214_v5 = vsel %vm212_vm1, %v213_v3, 0  ;;  %v1895_v8 = vld [vmem:[%s2490_s0] sm:$0xff]  ;;  %v1913_v9 = vld [vmem:[%s2490_s0 + $0x90] sm:$0xff]  ;;  %v1896_v12 = vld [vmem:[%s2490_s0 + $0x8] sm:$0xff] }
   0x3   :  { %v1931_v10 = vld [vmem:[%s2490_s0 + $0x120] sm:$0xff]  ;;  %v1949_v11 = vld [vmem:[%s2490_s0 + $0x1b0] sm:$0xff]  ;;  %v1914_v13 = vld [vmem:[%s2490_s0 + $0x98] sm:$0xff] }
   0x4   :  { %v216_v6 = vand.u32 %v1496_v4, %v214_v5  ;;  %v1932_v14 = vld [vmem:[%s2490_s0 + $0x128] sm:$0xff]  ;;  %v1950_v15 = vld [vmem:[%s2490_s0 + $0x1b8] sm:$0xff]  ;;  %v1897_v16 = vld [vmem:[%s2490_s0 + $0x10] sm:$0xff] }
   0x5   :  { %v1915_v17 = vld [vmem:[%s2490_s0 + $0xa0] sm:$0xff]  ;;  %v1933_v18 = vld [vmem:[%s2490_s0 + $0x130] sm:$0xff]  ;;  %v1898_v20 = vld [vmem:[%s2490_s0 + $0x18] sm:$0xff] }
   0x6   :  { %224 = vmatpush.bf16.msra.mxu0 %v216_v6  ;;  %504 = vmatpush.bf16.msra.mxu1 %v216_v6  ;;  %v1951_v19 = vld [vmem:[%s2490_s0 + $0x1c0] sm:$0xff]  ;;  %v1916_v21 = vld [vmem:[%s2490_s0 + $0xa8] sm:$0xff]  ;;  %v1934_v22 = vld [vmem:[%s2490_s0 + $0x138] sm:$0xff] }
   0x7   :  { %820 = vmatpush.bf16.msra.mxu2 %v216_v6  ;;  %1136 = vmatpush.bf16.msra.mxu3 %v216_v6  ;;  %v1952_v23 = vld [vmem:[%s2490_s0 + $0x1c8] sm:$0xff]  ;;  %v1899_v24 = vld [vmem:[%s2490_s0 + $0x20] sm:$0xff]  ;;  %v1917_v25 = vld [vmem:[%s2490_s0 + $0xb0] sm:$0xff] }
   0x8   :  { %v1935_v26 = vld [vmem:[%s2490_s0 + $0x140] sm:$0xff]  ;;  %v1953_v27 = vld [vmem:[%s2490_s0 + $0x1d0] sm:$0xff]  ;;  %v1900_v28 = vld [vmem:[%s2490_s0 + $0x28] sm:$0xff] }
   0x9   :  { %v1918_v29 = vld [vmem:[%s2490_s0 + $0xb8] sm:$0xff]  ;;  %v1936_v30 = vld [vmem:[%s2490_s0 + $0x148] sm:$0xff]  ;;  %v1901_v32 = vld [vmem:[%s2490_s0 + $0x30] sm:$0xff] }
   0xa   :  { %225 = vmatpush.bf16.msra.mxu0 %v1893_v7  ;;  %505 = vmatpush.bf16.msra.mxu1 %v1893_v7  ;;  %v1954_v31 = vld [vmem:[%s2490_s0 + $0x1d8] sm:$0xff]  ;;  %v1919_v33 = vld [vmem:[%s2490_s0 + $0xc0] sm:$0xff]  ;;  %v1937_v34 = vld [vmem:[%s2490_s0 + $0x150] sm:$0xff] }
   0xb   :  { %821 = vmatpush.bf16.msra.mxu2 %v1893_v7  ;;  %1137 = vmatpush.bf16.msra.mxu3 %v1893_v7  ;;  %v1955_v35 = vld [vmem:[%s2490_s0 + $0x1e0] sm:$0xff]  ;;  %v1902_v36 = vld [vmem:[%s2490_s0 + $0x38] sm:$0xff]  ;;  %v1920_v37 = vld [vmem:[%s2490_s0 + $0xc8] sm:$0xff] }
   0xc   :  { %v1938_v38 = vld [vmem:[%s2490_s0 + $0x158] sm:$0xff]  ;;  %v1956_v39 = vld [vmem:[%s2490_s0 + $0x1e8] sm:$0xff]  ;;  %v1903_v40 = vld [vmem:[%s2490_s0 + $0x40] sm:$0xff] }
   0xd   :  { %1497 = vmatmul.msk.bf16.vlgmr.msra.gmra.mxu0 %vm156_vm2, %v1895_v8  ;;  %1623 = vmatmul.msk.bf16.vlgmr.msra.gmra.mxu1 %vm156_vm2, %v1913_v9  ;;  %v1921_v41 = vld [vmem:[%s2490_s0 + $0xd0] sm:$0xff]  ;;  %v1939_v44 = vld [vmem:[%s2490_s0 + $0x160] sm:$0xff]  ;;  %v1904_v57 = vld [vmem:[%s2490_s0 + $0x48] sm:$0xff] }
   0xe   :  { %1749 = vmatmul.msk.bf16.vlgmr.msra.gmra.mxu2 %vm156_vm2, %v1931_v10  ;;  %1875 = vmatmul.msk.bf16.vlgmr.msra.gmra.mxu3 %vm156_vm2, %v1949_v11  ;;  %v1957_v45 = vld [vmem:[%s2490_s0 + $0x1f0] sm:$0xff]  ;;  %v2253_v53 = vld [vmem:[%s2491_s2] ss:$0 sm:$0xff]  ;;  %v1922_v58 = vld [vmem:[%s2490_s0 + $0xd8] sm:$0xff] }
   0xf   :  { %v1940_v62 = vld [vmem:[%s2490_s0 + $0x168] sm:$0xff]  ;;  %v1958_v63 = vld [vmem:[%s2490_s0 + $0x1f8] sm:$0xff] }
  0x1d   :  { %1498 = vmatmul.msk.bf16.gmra.mxu0 %vm156_vm2, %v1896_v12  ;;  %1624 = vmatmul.msk.bf16.gmra.mxu1 %vm156_vm2, %v1914_v13 }
  0x1e   :  { %1750 = vmatmul.msk.bf16.gmra.mxu2 %vm156_vm2, %v1932_v14  ;;  %1876 = vmatmul.msk.bf16.gmra.mxu3 %vm156_vm2, %v1950_v15 }
  0x2d   :  { %1499 = vmatmul.msk.bf16.gmra.mxu0 %vm156_vm2, %v1897_v16  ;;  %1625 = vmatmul.msk.bf16.gmra.mxu1 %vm156_vm2, %v1915_v17  ;;  %v1905_v16 = vld [vmem:[%s2490_s0 + $0x50] sm:$0xff]  ;;  %v1923_v17 = vld [vmem:[%s2490_s0 + $0xe0] sm:$0xff] }
  0x2e   :  { %1751 = vmatmul.msk.bf16.gmra.mxu2 %vm156_vm2, %v1933_v18  ;;  %1877 = vmatmul.msk.bf16.gmra.mxu3 %vm156_vm2, %v1951_v19 }
  0x3d   :  { %1500 = vmatmul.msk.bf16.gmra.mxu0 %vm156_vm2, %v1898_v20  ;;  %1626 = vmatmul.msk.bf16.gmra.mxu1 %vm156_vm2, %v1916_v21  ;;  %v1941_v21 = vld [vmem:[%s2490_s0 + $0x170] sm:$0xff] }
  0x3e   :  { %1752 = vmatmul.msk.bf16.gmra.mxu2 %vm156_vm2, %v1934_v22  ;;  %1878 = vmatmul.msk.bf16.gmra.mxu3 %vm156_vm2, %v1952_v23  ;;  %v1959_v22 = vld [vmem:[%s2490_s0 + $0x200] sm:$0xff] }
  0x4d   :  { %1501 = vmatmul.msk.bf16.gmra.mxu0 %vm156_vm2, %v1899_v24  ;;  %1627 = vmatmul.msk.bf16.gmra.mxu1 %vm156_vm2, %v1917_v25 }
  0x4e   :  { %1753 = vmatmul.msk.bf16.gmra.mxu2 %vm156_vm2, %v1935_v26  ;;  %1879 = vmatmul.msk.bf16.gmra.mxu3 %vm156_vm2, %v1953_v27 }
  0x5d   :  { %1502 = vmatmul.msk.bf16.gmra.mxu0 %vm156_vm2, %v1900_v28  ;;  %1628 = vmatmul.msk.bf16.gmra.mxu1 %vm156_vm2, %v1918_v29 }
  0x5e   :  { %1754 = vmatmul.msk.bf16.gmra.mxu2 %vm156_vm2, %v1936_v30  ;;  %1880 = vmatmul.msk.bf16.gmra.mxu3 %vm156_vm2, %v1954_v31 }
  0x6d   :  { %1503 = vmatmul.msk.bf16.gmra.mxu0 %vm156_vm2, %v1901_v32  ;;  %1629 = vmatmul.msk.bf16.gmra.mxu1 %vm156_vm2, %v1919_v33 }
  0x6e   :  { %1755 = vmatmul.msk.bf16.gmra.mxu2 %vm156_vm2, %v1937_v34  ;;  %1881 = vmatmul.msk.bf16.gmra.mxu3 %vm156_vm2, %v1955_v35 }
  0x7d   :  { %1504 = vmatmul.msk.bf16.gmra.mxu0 %vm156_vm2, %v1902_v36  ;;  %1630 = vmatmul.msk.bf16.gmra.mxu1 %vm156_vm2, %v1920_v37 }
  0x7e   :  { %1756 = vmatmul.msk.bf16.gmra.mxu2 %vm156_vm2, %v1938_v38  ;;  %1882 = vmatmul.msk.bf16.gmra.mxu3 %vm156_vm2, %v1956_v39  ;;  %v1906_v39 = vld [vmem:[%s2490_s0 + $0x58] sm:$0xff] }
  0x8a   :  { %v227_v42 = vpop.f32.mrf.mxu0  ;;  %v507_v43 = vpop.f32.mrf.mxu1 }
  0x8b   :  { %v597_v46 = vmax.f32 %v227_v42, %v507_v43 }
  0x8d   :  { %1505 = vmatmul.msk.bf16.gmra.mxu0 %vm156_vm2, %v1903_v40  ;;  %1631 = vmatmul.msk.bf16.gmra.mxu1 %vm156_vm2, %v1921_v41  ;;  %v1924_v40 = vld [vmem:[%s2490_s0 + $0xe8] sm:$0xff] }
  0x8e   :  { %1757 = vmatmul.msk.bf16.gmra.mxu2 %vm156_vm2, %v1939_v44  ;;  %1883 = vmatmul.msk.bf16.gmra.mxu3 %vm156_vm2, %v1957_v45  ;;  %v1942_v44 = vld [vmem:[%s2490_s0 + $0x178] sm:$0xff]  ;;  %v1960_v45 = vld [vmem:[%s2490_s0 + $0x208] sm:$0xff] }
  0x91   :  { %v823_v47 = vpop.f32.mrf.mxu2  ;;  %v1139_v48 = vpop.f32.mrf.mxu3 }
  0x92   :  { %v229_v49 = vpop.f32.mrf.mxu0  ;;  %v509_v50 = vpop.f32.mrf.mxu1  ;;  %v913_v51 = vmax.f32 %v597_v46, %v823_v47 }
  0x93   :  { %v598_v54 = vmax.f32 %v229_v49, %v509_v50 }
  0x94   :  { %v1229_v52 = vmax.f32 %v913_v51, %v1139_v48 }
  0x96   :  { %v1269_v0 = vadd.f32 %v2253_v53, %v1229_v52 }
  0x98   :  { %v1305_v3 = vmax.f32 %v1269_v0, 0.0  ;;  %v1925_v0 = vld [vmem:[%s2490_s0 + $0xf0] sm:$0xff] }
  0x99   :  { %v825_v55 = vpop.f32.mrf.mxu2  ;;  %v1141_v56 = vpop.f32.mrf.mxu3 }
  0x9a   :  { %v914_v59 = vmax.f32 %v598_v54, %v825_v55  ;;  %v232_v60 = vpop.f32.mrf.mxu0  ;;  %v512_v61 = vpop.f32.mrf.mxu1 }
  0x9b   :  { %v599_v5 = vmax.f32 %v232_v60, %v512_v61 }
  0x9c   :  { %v1230_v1 = vmax.f32 %v914_v59, %v1141_v56 }
  0x9d   :  { %1506 = vmatmul.msk.bf16.gmra.mxu0 %vm156_vm2, %v1904_v57  ;;  %1632 = vmatmul.msk.bf16.gmra.mxu1 %vm156_vm2, %v1922_v58 }
  0x9e   :  { %v1270_v2 = vadd.f32 %v2253_v53, %v1230_v1  ;;  %1758 = vmatmul.msk.bf16.gmra.mxu2 %vm156_vm2, %v1940_v62  ;;  %1884 = vmatmul.msk.bf16.gmra.mxu3 %vm156_vm2, %v1958_v63  ;;  %v1907_v63 = vld [vmem:[%s2490_s0 + $0x60] sm:$0xff] }
  0xa0   :  { %v1306_v4 = vmax.f32 %v1270_v2, 0.0 }
  0xa1   :  { %v828_v6 = vpop.f32.mrf.mxu2  ;;  %v1144_v7 = vpop.f32.mrf.mxu3 }
  0xa2   :  { %v1970_v8 = vpack.c.bf16 %v1306_v4, %v1305_v3  ;;  %v234_v9 = vpop.f32.mrf.mxu0  ;;  %v514_v10 = vpop.f32.mrf.mxu1  ;;  %v915_v11 = vmax.f32 %v599_v5, %v828_v6  ;;  %v1943_v4 = vld [vmem:[%s2490_s0 + $0x180] sm:$0xff]  ;;  %v1961_v5 = vld [vmem:[%s2490_s0 + $0x210] sm:$0xff] }
  0xa3   :  { %v600_v13 = vmax.f32 %v234_v9, %v514_v10 }
  0xa4   :  { %1971 = vst [vmem:[%s2492_s3] sm:$0xff] %v1970_v8   ;;  %v1231_v12 = vmax.f32 %v915_v11, %v1144_v7 }
  0xa6   :  { %v1271_v23 = vadd.f32 %v2253_v53, %v1231_v12 }
  0xa8   :  { %v1307_v26 = vmax.f32 %v1271_v23, 0.0  ;;  %v1926_v23 = vld [vmem:[%s2490_s0 + $0xf8] sm:$0xff] }
  0xa9   :  { %v830_v14 = vpop.f32.mrf.mxu2  ;;  %v1146_v15 = vpop.f32.mrf.mxu3 }
  0xaa   :  { %v916_v18 = vmax.f32 %v600_v13, %v830_v14  ;;  %v237_v19 = vpop.f32.mrf.mxu0  ;;  %v517_v20 = vpop.f32.mrf.mxu1 }
  0xab   :  { %v601_v28 = vmax.f32 %v237_v19, %v517_v20 }
  0xac   :  { %v1232_v24 = vmax.f32 %v916_v18, %v1146_v15 }
  0xad   :  { %1507 = vmatmul.msk.bf16.gmra.mxu0 %vm156_vm2, %v1905_v16  ;;  %1633 = vmatmul.msk.bf16.gmra.mxu1 %vm156_vm2, %v1923_v17 }
  0xae   :  { %v1272_v25 = vadd.f32 %v2253_v53, %v1232_v24  ;;  %1759 = vmatmul.msk.bf16.gmra.mxu2 %vm156_vm2, %v1941_v21  ;;  %1885 = vmatmul.msk.bf16.gmra.mxu3 %vm156_vm2, %v1959_v22  ;;  %v1908_v22 = vld [vmem:[%s2490_s0 + $0x68] sm:$0xff] }
  0xb0   :  { %v1308_v27 = vmax.f32 %v1272_v25, 0.0 }
  0xb1   :  { %v833_v29 = vpop.f32.mrf.mxu2  ;;  %v1149_v30 = vpop.f32.mrf.mxu3 }
  0xb2   :  { %v1975_v31 = vpack.c.bf16 %v1308_v27, %v1307_v26  ;;  %v239_v32 = vpop.f32.mrf.mxu0  ;;  %v519_v33 = vpop.f32.mrf.mxu1  ;;  %v917_v34 = vmax.f32 %v601_v28, %v833_v29  ;;  %v1944_v27 = vld [vmem:[%s2490_s0 + $0x188] sm:$0xff]  ;;  %v1962_v28 = vld [vmem:[%s2490_s0 + $0x218] sm:$0xff] }
  0xb3   :  { %v602_v36 = vmax.f32 %v239_v32, %v519_v33 }
  0xb4   :  { %2057 = vst [vmem:[%s2492_s3 + $0x8] sm:$0xff] %v1975_v31   ;;  %v1233_v35 = vmax.f32 %v917_v34, %v1149_v30 }
  0xb6   :  { %v1273_v46 = vadd.f32 %v2253_v53, %v1233_v35 }
  0xb8   :  { %v1309_v49 = vmax.f32 %v1273_v46, 0.0  ;;  %v1927_v46 = vld [vmem:[%s2490_s0 + $0x100] sm:$0xff] }
  0xb9   :  { %v835_v37 = vpop.f32.mrf.mxu2  ;;  %v1151_v38 = vpop.f32.mrf.mxu3 }
  0xba   :  { %v918_v41 = vmax.f32 %v602_v36, %v835_v37  ;;  %v242_v42 = vpop.f32.mrf.mxu0  ;;  %v522_v43 = vpop.f32.mrf.mxu1 }
  0xbb   :  { %v603_v51 = vmax.f32 %v242_v42, %v522_v43 }
  0xbc   :  { %v1234_v47 = vmax.f32 %v918_v41, %v1151_v38 }
  0xbd   :  { %1508 = vmatmul.msk.bf16.gmra.mxu0 %vm156_vm2, %v1906_v39  ;;  %1634 = vmatmul.msk.bf16.gmra.mxu1 %vm156_vm2, %v1924_v40 }
  0xbe   :  { %v1274_v48 = vadd.f32 %v2253_v53, %v1234_v47  ;;  %1760 = vmatmul.msk.bf16.gmra.mxu2 %vm156_vm2, %v1942_v44  ;;  %1886 = vmatmul.msk.bf16.gmra.mxu3 %vm156_vm2, %v1960_v45  ;;  %v1909_v45 = vld [vmem:[%s2490_s0 + $0x70] sm:$0xff] }
  0xc0   :  { %v1310_v50 = vmax.f32 %v1274_v48, 0.0 }
  0xc1   :  { %v838_v52 = vpop.f32.mrf.mxu2  ;;  %v1154_v54 = vpop.f32.mrf.mxu3 }
  0xc2   :  { %v1980_v55 = vpack.c.bf16 %v1310_v50, %v1309_v49  ;;  %v244_v56 = vpop.f32.mrf.mxu0  ;;  %v524_v57 = vpop.f32.mrf.mxu1  ;;  %v919_v58 = vmax.f32 %v603_v51, %v838_v52  ;;  %v1945_v50 = vld [vmem:[%s2490_s0 + $0x190] sm:$0xff]  ;;  %v1963_v51 = vld [vmem:[%s2490_s0 + $0x220] sm:$0xff] }
  0xc3   :  { %v604_v60 = vmax.f32 %v244_v56, %v524_v57 }
  0xc4   :  { %2058 = vst [vmem:[%s2492_s3 + $0x10] sm:$0xff] %v1980_v55   ;;  %v1235_v59 = vmax.f32 %v919_v58, %v1154_v54 }
  0xc6   :  { %v1275_v6 = vadd.f32 %v2253_v53, %v1235_v59 }
  0xc8   :  { %v1311_v9 = vmax.f32 %v1275_v6, 0.0  ;;  %v1928_v6 = vld [vmem:[%s2490_s0 + $0x108] sm:$0xff] }
  0xc9   :  { %v840_v61 = vpop.f32.mrf.mxu2  ;;  %v1156_v62 = vpop.f32.mrf.mxu3 }
  0xca   :  { %v920_v1 = vmax.f32 %v604_v60, %v840_v61  ;;  %v247_v2 = vpop.f32.mrf.mxu0  ;;  %v527_v3 = vpop.f32.mrf.mxu1 }
  0xcb   :  { %v605_v11 = vmax.f32 %v247_v2, %v527_v3 }
  0xcc   :  { %v1236_v7 = vmax.f32 %v920_v1, %v1156_v62 }
  0xcd   :  { %1509 = vmatmul.msk.bf16.gmra.mxu0 %vm156_vm2, %v1907_v63  ;;  %1635 = vmatmul.msk.bf16.gmra.mxu1 %vm156_vm2, %v1925_v0 }
  0xce   :  { %v1276_v8 = vadd.f32 %v2253_v53, %v1236_v7  ;;  %1761 = vmatmul.msk.bf16.gmra.mxu2 %vm156_vm2, %v1943_v4  ;;  %1887 = vmatmul.msk.bf16.gmra.mxu3 %vm156_vm2, %v1961_v5  ;;  %v1910_v5 = vld [vmem:[%s2490_s0 + $0x78] sm:$0xff] }
  0xd0   :  { %v1312_v10 = vmax.f32 %v1276_v8, 0.0 }
  0xd1   :  { %v843_v12 = vpop.f32.mrf.mxu2  ;;  %v1159_v13 = vpop.f32.mrf.mxu3 }
  0xd2   :  { %v1985_v14 = vpack.c.bf16 %v1312_v10, %v1311_v9  ;;  %v249_v15 = vpop.f32.mrf.mxu0  ;;  %v529_v16 = vpop.f32.mrf.mxu1  ;;  %v921_v17 = vmax.f32 %v605_v11, %v843_v12  ;;  %v1946_v10 = vld [vmem:[%s2490_s0 + $0x198] sm:$0xff]  ;;  %v1964_v11 = vld [vmem:[%s2490_s0 + $0x228] sm:$0xff] }
  0xd3   :  { %v606_v19 = vmax.f32 %v249_v15, %v529_v16 }
  0xd4   :  { %2059 = vst [vmem:[%s2492_s3 + $0x18] sm:$0xff] %v1985_v14   ;;  %v1237_v18 = vmax.f32 %v921_v17, %v1159_v13 }
  0xd6   :  { %v1277_v29 = vadd.f32 %v2253_v53, %v1237_v18 }
  0xd8   :  { %v1313_v32 = vmax.f32 %v1277_v29, 0.0  ;;  %v1929_v29 = vld [vmem:[%s2490_s0 + $0x110] sm:$0xff] }
  0xd9   :  { %v845_v20 = vpop.f32.mrf.mxu2  ;;  %v1161_v21 = vpop.f32.mrf.mxu3 }
  0xda   :  { %v922_v24 = vmax.f32 %v606_v19, %v845_v20  ;;  %v252_v25 = vpop.f32.mrf.mxu0  ;;  %v532_v26 = vpop.f32.mrf.mxu1 }
  0xdb   :  { %v607_v34 = vmax.f32 %v252_v25, %v532_v26 }
  0xdc   :  { %v1238_v30 = vmax.f32 %v922_v24, %v1161_v21 }
  0xdd   :  { %1510 = vmatmul.msk.bf16.gmra.mxu0 %vm156_vm2, %v1908_v22  ;;  %1636 = vmatmul.msk.bf16.gmra.mxu1 %vm156_vm2, %v1926_v23 }
  0xde   :  { %v1278_v31 = vadd.f32 %v2253_v53, %v1238_v30  ;;  %1762 = vmatmul.msk.bf16.gmra.mxu2 %vm156_vm2, %v1944_v27  ;;  %1888 = vmatmul.msk.bf16.gmra.mxu3 %vm156_vm2, %v1962_v28  ;;  %v1911_v28 = vld [vmem:[%s2490_s0 + $0x80] sm:$0xff] }
  0xe0   :  { %v1314_v33 = vmax.f32 %v1278_v31, 0.0 }
  0xe1   :  { %v848_v35 = vpop.f32.mrf.mxu2  ;;  %v1164_v36 = vpop.f32.mrf.mxu3 }
  0xe2   :  { %v1990_v37 = vpack.c.bf16 %v1314_v33, %v1313_v32  ;;  %v254_v38 = vpop.f32.mrf.mxu0  ;;  %v534_v39 = vpop.f32.mrf.mxu1  ;;  %v923_v40 = vmax.f32 %v607_v34, %v848_v35  ;;  %v1947_v33 = vld [vmem:[%s2490_s0 + $0x1a0] sm:$0xff]  ;;  %v1965_v34 = vld [vmem:[%s2490_s0 + $0x230] sm:$0xff] }
  0xe3   :  { %v608_v42 = vmax.f32 %v254_v38, %v534_v39 }
  0xe4   :  { %2060 = vst [vmem:[%s2492_s3 + $0x20] sm:$0xff] %v1990_v37   ;;  %v1239_v41 = vmax.f32 %v923_v40, %v1164_v36 }
  0xe6   :  { %v1279_v52 = vadd.f32 %v2253_v53, %v1239_v41 }
  0xe8   :  { %v1315_v56 = vmax.f32 %v1279_v52, 0.0  ;;  %v1930_v52 = vld [vmem:[%s2490_s0 + $0x118] sm:$0xff] }
  0xe9   :  { %v850_v43 = vpop.f32.mrf.mxu2  ;;  %v1166_v44 = vpop.f32.mrf.mxu3 }
  0xea   :  { %v924_v47 = vmax.f32 %v608_v42, %v850_v43  ;;  %v257_v48 = vpop.f32.mrf.mxu0  ;;  %v537_v49 = vpop.f32.mrf.mxu1 }
  0xeb   :  { %v609_v58 = vmax.f32 %v257_v48, %v537_v49 }
  0xec   :  { %v1240_v54 = vmax.f32 %v924_v47, %v1166_v44 }
  0xed   :  { %1511 = vmatmul.msk.bf16.gmra.mxu0 %vm156_vm2, %v1909_v45  ;;  %1637 = vmatmul.msk.bf16.gmra.mxu1 %vm156_vm2, %v1927_v46 }
  0xee   :  { %v1280_v55 = vadd.f32 %v2253_v53, %v1240_v54  ;;  %1763 = vmatmul.msk.bf16.gmra.mxu2 %vm156_vm2, %v1945_v50  ;;  %1889 = vmatmul.msk.bf16.gmra.mxu3 %vm156_vm2, %v1963_v51  ;;  %v1912_v51 = vld [vmem:[%s2490_s0 + $0x88] sm:$0xff] }
  0xf0   :  { %v1316_v57 = vmax.f32 %v1280_v55, 0.0 }
  0xf1   :  { %v853_v59 = vpop.f32.mrf.mxu2  ;;  %v1169_v60 = vpop.f32.mrf.mxu3 }
  0xf2   :  { %v1995_v61 = vpack.c.bf16 %v1316_v57, %v1315_v56  ;;  %v259_v62 = vpop.f32.mrf.mxu0  ;;  %v539_v63 = vpop.f32.mrf.mxu1  ;;  %v925_v0 = vmax.f32 %v609_v58, %v853_v59  ;;  %v1948_v57 = vld [vmem:[%s2490_s0 + $0x1a8] sm:$0xff]  ;;  %v1966_v58 = vld [vmem:[%s2490_s0 + $0x238] sm:$0xff] }
  0xf3   :  { %v610_v2 = vmax.f32 %v259_v62, %v539_v63 }
  0xf4   :  { %2061 = vst [vmem:[%s2492_s3 + $0x28] sm:$0xff] %v1995_v61   ;;  %v1241_v1 = vmax.f32 %v925_v0, %v1169_v60 }
  0xf6   :  { %v1281_v12 = vadd.f32 %v2253_v53, %v1241_v1 }
  0xf8   :  { %v1317_v15 = vmax.f32 %v1281_v12, 0.0 }
  0xf9   :  { %v855_v3 = vpop.f32.mrf.mxu2  ;;  %v1171_v4 = vpop.f32.mrf.mxu3 }
  0xfa   :  { %v926_v7 = vmax.f32 %v610_v2, %v855_v3  ;;  %v262_v8 = vpop.f32.mrf.mxu0  ;;  %v542_v9 = vpop.f32.mrf.mxu1 }
  0xfb   :  { %v611_v17 = vmax.f32 %v262_v8, %v542_v9 }
  0xfc   :  { %v1242_v13 = vmax.f32 %v926_v7, %v1171_v4 }
  0xfd   :  { %1512 = vmatmul.msk.bf16.gmra.mxu0 %vm156_vm2, %v1910_v5  ;;  %1638 = vmatmul.msk.bf16.gmra.mxu1 %vm156_vm2, %v1928_v6 }
  0xfe   :  { %v1282_v14 = vadd.f32 %v2253_v53, %v1242_v13  ;;  %1764 = vmatmul.msk.bf16.gmra.mxu2 %vm156_vm2, %v1946_v10  ;;  %1890 = vmatmul.msk.bf16.gmra.mxu3 %vm156_vm2, %v1964_v11 }
 0x100   :  { %v1318_v16 = vmax.f32 %v1282_v14, 0.0 }
 0x101   :  { %v858_v18 = vpop.f32.mrf.mxu2  ;;  %v1174_v19 = vpop.f32.mrf.mxu3 }
 0x102   :  { %v2000_v20 = vpack.c.bf16 %v1318_v16, %v1317_v15  ;;  %v264_v21 = vpop.f32.mrf.mxu0  ;;  %v544_v22 = vpop.f32.mrf.mxu1  ;;  %v927_v23 = vmax.f32 %v611_v17, %v858_v18 }
 0x103   :  { %v612_v25 = vmax.f32 %v264_v21, %v544_v22 }
 0x104   :  { %2062 = vst [vmem:[%s2492_s3 + $0x30] sm:$0xff] %v2000_v20   ;;  %v1243_v24 = vmax.f32 %v927_v23, %v1174_v19 }
 0x106   :  { %v1283_v35 = vadd.f32 %v2253_v53, %v1243_v24 }
 0x108   :  { %v1319_v38 = vmax.f32 %v1283_v35, 0.0 }
 0x109   :  { %v860_v26 = vpop.f32.mrf.mxu2  ;;  %v1176_v27 = vpop.f32.mrf.mxu3 }
 0x10a   :  { %v928_v30 = vmax.f32 %v612_v25, %v860_v26  ;;  %v267_v31 = vpop.f32.mrf.mxu0  ;;  %v547_v32 = vpop.f32.mrf.mxu1 }
 0x10b   :  { %v613_v40 = vmax.f32 %v267_v31, %v547_v32 }
 0x10c   :  { %v1244_v36 = vmax.f32 %v928_v30, %v1176_v27 }
 0x10d   :  { %1513 = vmatmul.msk.bf16.gmra.mxu0 %vm156_vm2, %v1911_v28  ;;  %1639 = vmatmul.msk.bf16.gmra.mxu1 %vm156_vm2, %v1929_v29 }
 0x10e   :  { %v1284_v37 = vadd.f32 %v2253_v53, %v1244_v36  ;;  %1765 = vmatmul.msk.bf16.gmra.mxu2 %vm156_vm2, %v1947_v33  ;;  %1891 = vmatmul.msk.bf16.gmra.mxu3 %vm156_vm2, %v1965_v34 }
 0x110   :  { %v1320_v39 = vmax.f32 %v1284_v37, 0.0 }
 0x111   :  { %v863_v41 = vpop.f32.mrf.mxu2  ;;  %v1179_v42 = vpop.f32.mrf.mxu3 }
 0x112   :  { %v2005_v43 = vpack.c.bf16 %v1320_v39, %v1319_v38  ;;  %v269_v44 = vpop.f32.mrf.mxu0  ;;  %v549_v45 = vpop.f32.mrf.mxu1  ;;  %v929_v46 = vmax.f32 %v613_v40, %v863_v41 }
 0x113   :  { %v614_v48 = vmax.f32 %v269_v44, %v549_v45 }
 0x114   :  { %2063 = vst [vmem:[%s2492_s3 + $0x38] sm:$0xff] %v2005_v43   ;;  %v1245_v47 = vmax.f32 %v929_v46, %v1179_v42 }
 0x116   :  { %v1285_v59 = vadd.f32 %v2253_v53, %v1245_v47 }
 0x118   :  { %v1321_v62 = vmax.f32 %v1285_v59, 0.0 }
 0x119   :  { %v865_v49 = vpop.f32.mrf.mxu2  ;;  %v1181_v50 = vpop.f32.mrf.mxu3 }
 0x11a   :  { %v930_v54 = vmax.f32 %v614_v48, %v865_v49  ;;  %v272_v55 = vpop.f32.mrf.mxu0  ;;  %v552_v56 = vpop.f32.mrf.mxu1 }
 0x11b   :  { %v615_v0 = vmax.f32 %v272_v55, %v552_v56 }
 0x11c   :  { %v1246_v60 = vmax.f32 %v930_v54, %v1181_v50 }
 0x11d   :  { %1514 = vmatmul.msk.bf16.gmra.mxu0 %vm156_vm2, %v1912_v51  ;;  %1640 = vmatmul.msk.bf16.gmra.mxu1 %vm156_vm2, %v1930_v52 }
 0x11e   :  { %v1286_v61 = vadd.f32 %v2253_v53, %v1246_v60  ;;  %1766 = vmatmul.msk.bf16.gmra.mxu2 %vm156_vm2, %v1948_v57  ;;  %1892 = vmatmul.msk.bf16.gmra.mxu3 %vm156_vm2, %v1966_v58 }
 0x120   :  { %v1322_v63 = vmax.f32 %v1286_v61, 0.0 }
 0x121   :  { %v868_v1 = vpop.f32.mrf.mxu2  ;;  %v1184_v2 = vpop.f32.mrf.mxu3 }
 0x122   :  { %v2010_v3 = vpack.c.bf16 %v1322_v63, %v1321_v62  ;;  %v274_v4 = vpop.f32.mrf.mxu0  ;;  %v554_v5 = vpop.f32.mrf.mxu1  ;;  %v931_v6 = vmax.f32 %v615_v0, %v868_v1 }
 0x123   :  { %v616_v8 = vmax.f32 %v274_v4, %v554_v5 }
 0x124   :  { %2064 = vst [vmem:[%s2492_s3 + $0x40] sm:$0xff] %v2010_v3   ;;  %v1247_v7 = vmax.f32 %v931_v6, %v1184_v2 }
 0x126   :  { %v1287_v14 = vadd.f32 %v2253_v53, %v1247_v7 }
 0x128   :  { %v1323_v17 = vmax.f32 %v1287_v14, 0.0 }
 0x129   :  { %v870_v9 = vpop.f32.mrf.mxu2  ;;  %v1186_v10 = vpop.f32.mrf.mxu3 }
 0x12a   :  { %v932_v11 = vmax.f32 %v616_v8, %v870_v9  ;;  %v277_v12 = vpop.f32.mrf.mxu0  ;;  %v557_v13 = vpop.f32.mrf.mxu1 }
 0x12b   :  { %v617_v19 = vmax.f32 %v277_v12, %v557_v13 }
 0x12c   :  { %v1248_v15 = vmax.f32 %v932_v11, %v1186_v10 }
 0x12e   :  { %v1288_v16 = vadd.f32 %v2253_v53, %v1248_v15 }
 0x130   :  { %v1324_v18 = vmax.f32 %v1288_v16, 0.0 }
 0x131   :  { %v873_v20 = vpop.f32.mrf.mxu2  ;;  %v1189_v21 = vpop.f32.mrf.mxu3 }
 0x132   :  { %v2015_v22 = vpack.c.bf16 %v1324_v18, %v1323_v17  ;;  %v279_v23 = vpop.f32.mrf.mxu0  ;;  %v559_v24 = vpop.f32.mrf.mxu1  ;;  %v933_v25 = vmax.f32 %v617_v19, %v873_v20 }
 0x133   :  { %v618_v27 = vmax.f32 %v279_v23, %v559_v24 }
 0x134   :  { %2065 = vst [vmem:[%s2492_s3 + $0x48] sm:$0xff] %v2015_v22   ;;  %v1249_v26 = vmax.f32 %v933_v25, %v1189_v21 }
 0x136   :  { %v1289_v33 = vadd.f32 %v2253_v53, %v1249_v26 }
 0x138   :  { %v1325_v36 = vmax.f32 %v1289_v33, 0.0 }
 0x139   :  { %v875_v28 = vpop.f32.mrf.mxu2  ;;  %v1191_v29 = vpop.f32.mrf.mxu3 }
 0x13a   :  { %v934_v30 = vmax.f32 %v618_v27, %v875_v28  ;;  %v282_v31 = vpop.f32.mrf.mxu0  ;;  %v562_v32 = vpop.f32.mrf.mxu1 }
 0x13b   :  { %v619_v38 = vmax.f32 %v282_v31, %v562_v32 }
 0x13c   :  { %v1250_v34 = vmax.f32 %v934_v30, %v1191_v29 }
 0x13e   :  { %v1290_v35 = vadd.f32 %v2253_v53, %v1250_v34 }
 0x140   :  { %v1326_v37 = vmax.f32 %v1290_v35, 0.0 }
 0x141   :  { %v878_v39 = vpop.f32.mrf.mxu2  ;;  %v1194_v40 = vpop.f32.mrf.mxu3 }
 0x142   :  { %v2020_v41 = vpack.c.bf16 %v1326_v37, %v1325_v36  ;;  %v284_v42 = vpop.f32.mrf.mxu0  ;;  %v564_v43 = vpop.f32.mrf.mxu1  ;;  %v935_v44 = vmax.f32 %v619_v38, %v878_v39 }
 0x143   :  { %v620_v46 = vmax.f32 %v284_v42, %v564_v43 }
 0x144   :  { %2066 = vst [vmem:[%s2492_s3 + $0x50] sm:$0xff] %v2020_v41   ;;  %v1251_v45 = vmax.f32 %v935_v44, %v1194_v40 }
 0x146   :  { %v1291_v52 = vadd.f32 %v2253_v53, %v1251_v45 }
 0x148   :  { %v1327_v56 = vmax.f32 %v1291_v52, 0.0 }
 0x149   :  { %v880_v47 = vpop.f32.mrf.mxu2  ;;  %v1196_v48 = vpop.f32.mrf.mxu3 }
 0x14a   :  { %v936_v49 = vmax.f32 %v620_v46, %v880_v47  ;;  %v287_v50 = vpop.f32.mrf.mxu0  ;;  %v567_v51 = vpop.f32.mrf.mxu1 }
 0x14b   :  { %v621_v58 = vmax.f32 %v287_v50, %v567_v51 }
 0x14c   :  { %v1252_v54 = vmax.f32 %v936_v49, %v1196_v48 }
 0x14e   :  { %v1292_v55 = vadd.f32 %v2253_v53, %v1252_v54 }
 0x150   :  { %v1328_v57 = vmax.f32 %v1292_v55, 0.0 }
 0x151   :  { %v883_v59 = vpop.f32.mrf.mxu2  ;;  %v1199_v60 = vpop.f32.mrf.mxu3 }
 0x152   :  { %v2025_v61 = vpack.c.bf16 %v1328_v57, %v1327_v56  ;;  %v289_v62 = vpop.f32.mrf.mxu0  ;;  %v569_v63 = vpop.f32.mrf.mxu1  ;;  %v937_v0 = vmax.f32 %v621_v58, %v883_v59 }
 0x153   :  { %v622_v2 = vmax.f32 %v289_v62, %v569_v63 }
 0x154   :  { %2067 = vst [vmem:[%s2492_s3 + $0x58] sm:$0xff] %v2025_v61   ;;  %v1253_v1 = vmax.f32 %v937_v0, %v1199_v60 }
 0x156   :  { %v1293_v8 = vadd.f32 %v2253_v53, %v1253_v1 }
 0x158   :  { %v1329_v11 = vmax.f32 %v1293_v8, 0.0 }
 0x159   :  { %v885_v3 = vpop.f32.mrf.mxu2  ;;  %v1201_v4 = vpop.f32.mrf.mxu3 }
 0x15a   :  { %v938_v5 = vmax.f32 %v622_v2, %v885_v3  ;;  %v292_v6 = vpop.f32.mrf.mxu0  ;;  %v572_v7 = vpop.f32.mrf.mxu1 }
 0x15b   :  { %v623_v13 = vmax.f32 %v292_v6, %v572_v7 }
 0x15c   :  { %v1254_v9 = vmax.f32 %v938_v5, %v1201_v4 }
 0x15e   :  { %v1294_v10 = vadd.f32 %v2253_v53, %v1254_v9 }
 0x160   :  { %v1330_v12 = vmax.f32 %v1294_v10, 0.0 }
 0x161   :  { %v888_v14 = vpop.f32.mrf.mxu2  ;;  %v1204_v15 = vpop.f32.mrf.mxu3 }
 0x162   :  { %v2030_v16 = vpack.c.bf16 %v1330_v12, %v1329_v11  ;;  %v294_v17 = vpop.f32.mrf.mxu0  ;;  %v574_v18 = vpop.f32.mrf.mxu1  ;;  %v939_v19 = vmax.f32 %v623_v13, %v888_v14 }
 0x163   :  { %v624_v21 = vmax.f32 %v294_v17, %v574_v18 }
 0x164   :  { %2068 = vst [vmem:[%s2492_s3 + $0x60] sm:$0xff] %v2030_v16   ;;  %v1255_v20 = vmax.f32 %v939_v19, %v1204_v15 }
 0x166   :  { %v1295_v27 = vadd.f32 %v2253_v53, %v1255_v20 }
 0x168   :  { %v1331_v30 = vmax.f32 %v1295_v27, 0.0 }
 0x169   :  { %v890_v22 = vpop.f32.mrf.mxu2  ;;  %v1206_v23 = vpop.f32.mrf.mxu3 }
 0x16a   :  { %v940_v24 = vmax.f32 %v624_v21, %v890_v22  ;;  %v297_v25 = vpop.f32.mrf.mxu0  ;;  %v577_v26 = vpop.f32.mrf.mxu1 }
 0x16b   :  { %v625_v32 = vmax.f32 %v297_v25, %v577_v26 }
 0x16c   :  { %v1256_v28 = vmax.f32 %v940_v24, %v1206_v23 }
 0x16e   :  { %v1296_v29 = vadd.f32 %v2253_v53, %v1256_v28 }
 0x170   :  { %v1332_v31 = vmax.f32 %v1296_v29, 0.0 }
 0x171   :  { %v893_v33 = vpop.f32.mrf.mxu2  ;;  %v1209_v34 = vpop.f32.mrf.mxu3 }
 0x172   :  { %v2035_v35 = vpack.c.bf16 %v1332_v31, %v1331_v30  ;;  %v299_v36 = vpop.f32.mrf.mxu0  ;;  %v579_v37 = vpop.f32.mrf.mxu1  ;;  %v941_v38 = vmax.f32 %v625_v32, %v893_v33 }
 0x173   :  { %v626_v40 = vmax.f32 %v299_v36, %v579_v37 }
 0x174   :  { %2069 = vst [vmem:[%s2492_s3 + $0x68] sm:$0xff] %v2035_v35   ;;  %v1257_v39 = vmax.f32 %v941_v38, %v1209_v34 }
 0x176   :  { %v1297_v46 = vadd.f32 %v2253_v53, %v1257_v39 }
 0x178   :  { %v1333_v49 = vmax.f32 %v1297_v46, 0.0 }
 0x179   :  { %v895_v41 = vpop.f32.mrf.mxu2  ;;  %v1211_v42 = vpop.f32.mrf.mxu3 }
 0x17a   :  { %v942_v43 = vmax.f32 %v626_v40, %v895_v41  ;;  %v302_v44 = vpop.f32.mrf.mxu0  ;;  %v582_v45 = vpop.f32.mrf.mxu1 }
 0x17b   :  { %v627_v51 = vmax.f32 %v302_v44, %v582_v45 }
 0x17c   :  { %v1258_v47 = vmax.f32 %v942_v43, %v1211_v42 }
 0x17e   :  { %v1298_v48 = vadd.f32 %v2253_v53, %v1258_v47 }
 0x180   :  { %v1334_v50 = vmax.f32 %v1298_v48, 0.0 }
 0x181   :  { %v898_v52 = vpop.f32.mrf.mxu2  ;;  %v1214_v54 = vpop.f32.mrf.mxu3 }
 0x182   :  { %v2040_v55 = vpack.c.bf16 %v1334_v50, %v1333_v49  ;;  %v304_v56 = vpop.f32.mrf.mxu0  ;;  %v584_v57 = vpop.f32.mrf.mxu1  ;;  %v943_v58 = vmax.f32 %v627_v51, %v898_v52 }
 0x183   :  { %v628_v60 = vmax.f32 %v304_v56, %v584_v57 }
 0x184   :  { %2070 = vst [vmem:[%s2492_s3 + $0x70] sm:$0xff] %v2040_v55   ;;  %v1259_v59 = vmax.f32 %v943_v58, %v1214_v54 }
 0x186   :  { %v1299_v2 = vadd.f32 %v2253_v53, %v1259_v59 }
 0x188   :  { %v1335_v5 = vmax.f32 %v1299_v2, 0.0 }
 0x189   :  { %v900_v61 = vpop.f32.mrf.mxu2  ;;  %v1216_v62 = vpop.f32.mrf.mxu3 }
 0x18a   :  { %v944_v63 = vmax.f32 %v628_v60, %v900_v61  ;;  %v307_v0 = vpop.f32.mrf.mxu0  ;;  %v587_v1 = vpop.f32.mrf.mxu1 }
 0x18b   :  { %v629_v7 = vmax.f32 %v307_v0, %v587_v1 }
 0x18c   :  { %v1260_v3 = vmax.f32 %v944_v63, %v1216_v62 }
 0x18e   :  { %v1300_v4 = vadd.f32 %v2253_v53, %v1260_v3 }
 0x190   :  { %v1336_v6 = vmax.f32 %v1300_v4, 0.0 }
 0x191   :  { %v903_v8 = vpop.f32.mrf.mxu2  ;;  %v1219_v9 = vpop.f32.mrf.mxu3 }
 0x192   :  { %v2045_v10 = vpack.c.bf16 %v1336_v6, %v1335_v5  ;;  %v309_v11 = vpop.f32.mrf.mxu0  ;;  %v589_v12 = vpop.f32.mrf.mxu1  ;;  %v945_v13 = vmax.f32 %v629_v7, %v903_v8 }
 0x193   :  { %v630_v15 = vmax.f32 %v309_v11, %v589_v12 }
 0x194   :  { %2071 = vst [vmem:[%s2492_s3 + $0x78] sm:$0xff] %v2045_v10   ;;  %v1261_v14 = vmax.f32 %v945_v13, %v1219_v9 }
 0x196   :  { %v1301_v21 = vadd.f32 %v2253_v53, %v1261_v14 }
 0x198   :  { %v1337_v24 = vmax.f32 %v1301_v21, 0.0 }
 0x199   :  { %v905_v16 = vpop.f32.mrf.mxu2  ;;  %v1221_v17 = vpop.f32.mrf.mxu3 }
 0x19a   :  { %v946_v18 = vmax.f32 %v630_v15, %v905_v16  ;;  %v312_v19 = vpop.f32.mrf.mxu0  ;;  %v592_v20 = vpop.f32.mrf.mxu1 }
 0x19b   :  { %v631_v26 = vmax.f32 %v312_v19, %v592_v20 }
 0x19c   :  { %v1262_v22 = vmax.f32 %v946_v18, %v1221_v17 }
 0x19e   :  { %v1302_v23 = vadd.f32 %v2253_v53, %v1262_v22 }
 0x1a0   :  { %v1338_v25 = vmax.f32 %v1302_v23, 0.0 }
 0x1a1   :  { %v908_v27 = vpop.f32.mrf.mxu2  ;;  %v1224_v28 = vpop.f32.mrf.mxu3 }
 0x1a2   :  { %v2050_v29 = vpack.c.bf16 %v1338_v25, %v1337_v24  ;;  %v947_v30 = vmax.f32 %v631_v26, %v908_v27  ;;  %v314_v31 = vpop.f32.mrf.mxu0  ;;  %v594_v32 = vpop.f32.mrf.mxu1 }
 0x1a3   :  { %v632_v34 = vmax.f32 %v314_v31, %v594_v32 }
 0x1a4   :  { %2072 = vst [vmem:[%s2492_s3 + $0x80] sm:$0xff] %v2050_v29   ;;  %v1263_v33 = vmax.f32 %v947_v30, %v1224_v28 }
 0x1a6   :  { %v1303_v38 = vadd.f32 %v2253_v53, %v1263_v33 }
 0x1a8   :  { %v1339_v41 = vmax.f32 %v1303_v38, 0.0 }
 0x1a9   :  { %v910_v35 = vpop.f32.mrf.mxu2  ;;  %v1226_v37 = vpop.f32.mrf.mxu3 }
 0x1aa   :  { %v948_v36 = vmax.f32 %v632_v34, %v910_v35 }
 0x1ac   :  { %v1264_v39 = vmax.f32 %v948_v36, %v1226_v37 }
 0x1ae   :  { %v1304_v40 = vadd.f32 %v2253_v53, %v1264_v39 }
 0x1b0   :  { %v1340_v42 = vmax.f32 %v1304_v40, 0.0 }
 0x1b2   :  { %v2055_v43 = vpack.c.bf16 %v1340_v42, %v1339_v41 }
 0x1b4   :  { %2073 = vst [vmem:[%s2492_s3 + $0x88] sm:$0xff] %v2055_v43  }

// kernel: forward.4
= control target key start
LH: loop header
LB: loop body
LE: loop exit
PB: predicated region body
PF: predicated region fallthrough
CT: control target
= control target key end

     0   :  { %s1691_s1 = inlined_call_operand.vmem [shape: bf16[512,128], index: 1, kind: input, shape index: {}]   ;;  %s1692_s0 = inlined_call_operand.vmem [shape: bf16[4,32,512], index: 0, kind: input, shape index: {}]   ;;  %s1693_s2 = inlined_call_operand.vmem [shape: f32[1,128], index: 2, kind: input, shape index: {}]   ;;  %s1694_s3 = inlined_call_operand.vmem [shape: bf16[32,128], index: 3, kind: output, shape index: {}]  }
   0x1   :  { %v1184_v0 = vld [vmem:[%s1691_s1 + $0x38] sm:$0xff]  ;;  %v1206_v4 = vld [vmem:[%s1691_s1 + $0x30] sm:$0xff]  ;;  %v1230_v8 = vld [vmem:[%s1691_s1 + $0x28] sm:$0xff] }
   0x2   :  { %v1189_v1 = vld [vmem:[%s1691_s1 + $0x78] sm:$0xff]  ;;  %318 = vmatpush.bf16.msra.mxu0 %v1184_v0  ;;  %v1211_v5 = vld [vmem:[%s1691_s1 + $0x70] sm:$0xff]  ;;  %v1235_v9 = vld [vmem:[%s1691_s1 + $0x68] sm:$0xff] }
   0x3   :  { %v1194_v2 = vld [vmem:[%s1691_s1 + $0xb8] sm:$0xff]  ;;  %337 = vmatpush.bf16.msra.mxu1 %v1189_v1  ;;  %v1218_v6 = vld [vmem:[%s1691_s1 + $0xb0] sm:$0xff]  ;;  %v1242_v10 = vld [vmem:[%s1691_s1 + $0xa8] sm:$0xff] }
   0x4   :  { %v1199_v3 = vld [vmem:[%s1691_s1 + $0xf8] sm:$0xff]  ;;  %356 = vmatpush.bf16.msra.mxu2 %v1194_v2  ;;  %v1223_v7 = vld [vmem:[%s1691_s1 + $0xf0] sm:$0xff]  ;;  %v1247_v11 = vld [vmem:[%s1691_s1 + $0xe8] sm:$0xff] }
   0x5   :  { %375 = vmatpush.bf16.msra.mxu3 %v1199_v3  ;;  %v1254_v12 = vld [vmem:[%s1691_s1 + $0x20] sm:$0xff]  ;;  %v1278_v16 = vld [vmem:[%s1691_s1 + $0x18] sm:$0xff]  ;;  %v1302_v20 = vld [vmem:[%s1691_s1 + $0x10] sm:$0xff] }
   0x6   :  { %319 = vmatpush.bf16.msra.mxu0 %v1206_v4  ;;  %v1259_v13 = vld [vmem:[%s1691_s1 + $0x60] sm:$0xff]  ;;  %v1283_v17 = vld [vmem:[%s1691_s1 + $0x58] sm:$0xff]  ;;  %v1307_v21 = vld [vmem:[%s1691_s1 + $0x50] sm:$0xff] }
   0x7   :  { %338 = vmatpush.bf16.msra.mxu1 %v1211_v5  ;;  %v1266_v14 = vld [vmem:[%s1691_s1 + $0xa0] sm:$0xff]  ;;  %v1290_v18 = vld [vmem:[%s1691_s1 + $0x98] sm:$0xff]  ;;  %v1314_v22 = vld [vmem:[%s1691_s1 + $0x90] sm:$0xff] }
   0x8   :  { %357 = vmatpush.bf16.msra.mxu2 %v1218_v6  ;;  %v1271_v15 = vld [vmem:[%s1691_s1 + $0xe0] sm:$0xff]  ;;  %v1295_v19 = vld [vmem:[%s1691_s1 + $0xd8] sm:$0xff]  ;;  %v1319_v23 = vld [vmem:[%s1691_s1 + $0xd0] sm:$0xff] }
   0x9   :  { %376 = vmatpush.bf16.msra.mxu3 %v1223_v7  ;;  %v1326_v24 = vld [vmem:[%s1691_s1 + $0x8] sm:$0xff]  ;;  %v1348_v28 = vld [vmem:[%s1691_s1] sm:$0xff]  ;;  %v1119_v33 = vld [vmem:[%s1692_s0 + $0xc] sm:$0xf0] }
   0xa   :  { %320 = vmatpush.bf16.msra.mxu0 %v1230_v8  ;;  %v1331_v25 = vld [vmem:[%s1691_s1 + $0x48] sm:$0xff]  ;;  %v1353_v29 = vld [vmem:[%s1691_s1 + $0x40] sm:$0xff]  ;;  %v809_v35 = vld [vmem:[%s1692_s0 + $0x10] sm:$0xf0] }
   0xb   :  { %339 = vmatpush.bf16.msra.mxu1 %v1235_v9  ;;  %v1338_v26 = vld [vmem:[%s1691_s1 + $0x88] sm:$0xff]  ;;  %v1358_v30 = vld [vmem:[%s1691_s1 + $0x80] sm:$0xff]  ;;  %v1120_v37 = vld [vmem:[%s1692_s0 + $0x14] sm:$0xf0] }
   0xc   :  { %358 = vmatpush.bf16.msra.mxu2 %v1242_v10  ;;  %v1343_v27 = vld [vmem:[%s1691_s1 + $0xc8] sm:$0xff]  ;;  %v1363_v31 = vld [vmem:[%s1691_s1 + $0xc0] sm:$0xff]  ;;  %v817_v39 = vld [vmem:[%s1692_s0 + $0x18] sm:$0xf0] }
   0xd   :  { %377 = vmatpush.bf16.msra.mxu3 %v1247_v11  ;;  %v807_v32 = vld [vmem:[%s1692_s0] sm:$0xf]  ;;  %v1117_v34 = vld [vmem:[%s1692_s0 + $0x4] sm:$0xf]  ;;  %v815_v36 = vld [vmem:[%s1692_s0 + $0x8] sm:$0xf] }
   0xe   :  { %321 = vmatpush.bf16.msra.mxu0 %v1254_v12  ;;  %v1118_v38 = vld [vmem:[%s1692_s0 + $0xc] sm:$0xf]  ;;  %v808_v40 = vor.u32 %v1119_v33, %v807_v32  ;;  %v812_v41 = vor.u32 %v1117_v34, %v809_v35  ;;  %v816_v42 = vor.u32 %v1120_v37, %v815_v36  ;;  %v823_v44 = vld [vmem:[%s1692_s0 + $0x20] sm:$0xf]  ;;  %v1123_v45 = vld [vmem:[%s1692_s0 + $0x2c] sm:$0xf0] }
   0xf   :  { %340 = vmatpush.bf16.msra.mxu1 %v1259_v13  ;;  %v820_v43 = vor.u32 %v1118_v38, %v817_v39  ;;  %v1121_v46 = vld [vmem:[%s1692_s0 + $0x24] sm:$0xf]  ;;  %v825_v47 = vld [vmem:[%s1692_s0 + $0x30] sm:$0xf0]  ;;  %v831_v48 = vld [vmem:[%s1692_s0 + $0x28] sm:$0xf]  ;;  %v824_v52 = vor.u32 %v1123_v45, %v823_v44 }
  0x10   :  { %359 = vmatpush.bf16.msra.mxu2 %v1266_v14  ;;  %v1124_v49 = vld [vmem:[%s1692_s0 + $0x34] sm:$0xf0]  ;;  %v1122_v50 = vld [vmem:[%s1692_s0 + $0x2c] sm:$0xf]  ;;  %v833_v51 = vld [vmem:[%s1692_s0 + $0x38] sm:$0xf0]  ;;  %v828_v53 = vor.u32 %v1121_v46, %v825_v47 }
  0x11   :  { %378 = vmatpush.bf16.msra.mxu3 %v1271_v15  ;;  %v832_v54 = vor.u32 %v1124_v49, %v831_v48  ;;  %v836_v55 = vor.u32 %v1122_v50, %v833_v51  ;;  %v975_v56 = vld [vmem:[%s1692_s0 + $0x40] sm:$0xf]  ;;  %v1127_v57 = vld [vmem:[%s1692_s0 + $0x4c] sm:$0xf0]  ;;  %v1125_v58 = vld [vmem:[%s1692_s0 + $0x44] sm:$0xf] }
  0x12   :  { %322 = vmatpush.bf16.msra.mxu0 %v1278_v16  ;;  %v977_v59 = vld [vmem:[%s1692_s0 + $0x50] sm:$0xf0]  ;;  %v983_v60 = vld [vmem:[%s1692_s0 + $0x48] sm:$0xf]  ;;  %v1128_v61 = vld [vmem:[%s1692_s0 + $0x54] sm:$0xf0]  ;;  %v976_v32 = vor.u32 %v1127_v57, %v975_v56 }
  0x13   :  { %341 = vmatpush.bf16.msra.mxu1 %v1283_v17  ;;  %v1126_v62 = vld [vmem:[%s1692_s0 + $0x4c] sm:$0xf]  ;;  %v985_v63 = vld [vmem:[%s1692_s0 + $0x58] sm:$0xf0]  ;;  %v980_v33 = vor.u32 %v1125_v58, %v977_v59  ;;  %v984_v34 = vor.u32 %v1128_v61, %v983_v60  ;;  %v991_v36 = vld [vmem:[%s1692_s0 + $0x60] sm:$0xf] }
  0x14   :  { %360 = vmatpush.bf16.msra.mxu2 %v1290_v18  ;;  %v988_v35 = vor.u32 %v1126_v62, %v985_v63  ;;  %v1131_v37 = vld [vmem:[%s1692_s0 + $0x6c] sm:$0xf0]  ;;  %v1129_v38 = vld [vmem:[%s1692_s0 + $0x64] sm:$0xf]  ;;  %v993_v39 = vld [vmem:[%s1692_s0 + $0x70] sm:$0xf0] }
  0x15   :  { %379 = vmatpush.bf16.msra.mxu3 %v1295_v19  ;;  %v992_v44 = vor.u32 %v1131_v37, %v991_v36  ;;  %v996_v45 = vor.u32 %v1129_v38, %v993_v39  ;;  %v1015_v48 = vld [vmem:[%s1692_s0 + $0x80] sm:$0xf]  ;;  %v1135_v49 = vld [vmem:[%s1692_s0 + $0x8c] sm:$0xf0]  ;;  %v1133_v50 = vld [vmem:[%s1692_s0 + $0x84] sm:$0xf] }
  0x16   :  { %323 = vmatpush.bf16.msra.mxu0 %v1302_v20  ;;  %v1017_v51 = vld [vmem:[%s1692_s0 + $0x90] sm:$0xf0]  ;;  %v1081_v59 = vld [vmem:[%s1692_s0 + $0xf8] sm:$0xf0] }
  0x17   :  { %342 = vmatpush.bf16.msra.mxu1 %v1307_v21  ;;  %v1020_v56 = vor.u32 %v1133_v50, %v1017_v51 }
  0x18   :  { %361 = vmatpush.bf16.msra.mxu2 %v1314_v22 }
  0x19   :  { %380 = vmatpush.bf16.msra.mxu3 %v1319_v23 }
  0x1a   :  { %324 = vmatpush.bf16.msra.mxu0 %v1326_v24 }
  0x1b   :  { %343 = vmatpush.bf16.msra.mxu1 %v1331_v25 }
  0x1c   :  { %362 = vmatpush.bf16.msra.mxu2 %v1338_v26 }
  0x1d   :  { %381 = vmatpush.bf16.msra.mxu3 %v1343_v27 }
  0x1e   :  { %325 = vmatpush.bf16.msra.mxu0 %v1348_v28 }
  0x1f   :  { %344 = vmatpush.bf16.msra.mxu1 %v1353_v29 }
  0x20   :  { %363 = vmatpush.bf16.msra.mxu2 %v1358_v30 }
  0x21   :  { %382 = vmatpush.bf16.msra.mxu3 %v1363_v31  ;;  %326 = vmatmul.bf16.vlgmr.msra.gmra.mxu0 %v808_v40  ;;  %v999_v40 = vld [vmem:[%s1692_s0 + $0x68] sm:$0xf] }
  0x22   :  { %443 = vmatpush.bf16.msrb.mxu0 %v1184_v0  ;;  %345 = vmatmul.bf16.vlgmr.msra.gmra.mxu1 %v812_v41  ;;  %v1132_v41 = vld [vmem:[%s1692_s0 + $0x74] sm:$0xf0] }
  0x23   :  { %364 = vmatmul.bf16.vlgmr.msra.gmra.mxu2 %v816_v42  ;;  %462 = vmatpush.bf16.msrb.mxu1 %v1189_v1  ;;  %v1130_v42 = vld [vmem:[%s1692_s0 + $0x6c] sm:$0xf]  ;;  %v1000_v46 = vor.u32 %v1132_v41, %v999_v40 }
  0x24   :  { %481 = vmatpush.bf16.msrb.mxu2 %v1194_v2  ;;  %383 = vmatmul.bf16.vlgmr.msra.gmra.mxu3 %v820_v43  ;;  %v1001_v43 = vld [vmem:[%s1692_s0 + $0x78] sm:$0xf0] }
  0x25   :  { %500 = vmatpush.bf16.msrb.mxu3 %v1199_v3  ;;  %v1004_v47 = vor.u32 %v1130_v42, %v1001_v43 }
  0x26   :  { %444 = vmatpush.bf16.msrb.mxu0 %v1206_v4 }
  0x27   :  { %463 = vmatpush.bf16.msrb.mxu1 %v1211_v5 }
  0x28   :  { %482 = vmatpush.bf16.msrb.mxu2 %v1218_v6 }
  0x29   :  { %501 = vmatpush.bf16.msrb.mxu3 %v1223_v7 }
  0x2a   :  { %445 = vmatpush.bf16.msrb.mxu0 %v1230_v8 }
  0x2b   :  { %464 = vmatpush.bf16.msrb.mxu1 %v1235_v9 }
  0x2c   :  { %483 = vmatpush.bf16.msrb.mxu2 %v1242_v10 }
  0x2d   :  { %502 = vmatpush.bf16.msrb.mxu3 %v1247_v11 }
  0x2e   :  { %446 = vmatpush.bf16.msrb.mxu0 %v1254_v12 }
  0x2f   :  { %465 = vmatpush.bf16.msrb.mxu1 %v1259_v13 }
  0x30   :  { %484 = vmatpush.bf16.msrb.mxu2 %v1266_v14 }
  0x31   :  { %503 = vmatpush.bf16.msrb.mxu3 %v1271_v15  ;;  %331 = vmatmul.bf16.gmra.mxu0 %v824_v52  ;;  %v1023_v52 = vld [vmem:[%s1692_s0 + $0x88] sm:$0xf] }
  0x32   :  { %447 = vmatpush.bf16.msrb.mxu0 %v1278_v16  ;;  %350 = vmatmul.bf16.gmra.mxu1 %v828_v53  ;;  %v1136_v53 = vld [vmem:[%s1692_s0 + $0x94] sm:$0xf0] }
  0x33   :  { %369 = vmatmul.bf16.gmra.mxu2 %v832_v54  ;;  %466 = vmatpush.bf16.msrb.mxu1 %v1283_v17  ;;  %v1025_v54 = vld [vmem:[%s1692_s0 + $0x98] sm:$0xf0]  ;;  %v1024_v57 = vor.u32 %v1136_v53, %v1023_v52 }
  0x34   :  { %485 = vmatpush.bf16.msrb.mxu2 %v1290_v18  ;;  %388 = vmatmul.bf16.gmra.mxu3 %v836_v55  ;;  %v1016_v55 = vor.u32 %v1135_v49, %v1015_v48 }
  0x35   :  { %504 = vmatpush.bf16.msrb.mxu3 %v1295_v19 }
  0x36   :  { %448 = vmatpush.bf16.msrb.mxu0 %v1302_v20 }
  0x37   :  { %467 = vmatpush.bf16.msrb.mxu1 %v1307_v21 }
  0x38   :  { %486 = vmatpush.bf16.msrb.mxu2 %v1314_v22 }
  0x39   :  { %505 = vmatpush.bf16.msrb.mxu3 %v1319_v23 }
  0x3a   :  { %449 = vmatpush.bf16.msrb.mxu0 %v1326_v24 }
  0x3b   :  { %468 = vmatpush.bf16.msrb.mxu1 %v1331_v25 }
  0x3c   :  { %487 = vmatpush.bf16.msrb.mxu2 %v1338_v26 }
  0x3d   :  { %506 = vmatpush.bf16.msrb.mxu3 %v1343_v27 }
  0x3e   :  { %450 = vmatpush.bf16.msrb.mxu0 %v1348_v28 }
  0x3f   :  { %469 = vmatpush.bf16.msrb.mxu1 %v1353_v29 }
  0x40   :  { %488 = vmatpush.bf16.msrb.mxu2 %v1358_v30 }
  0x41   :  { %507 = vmatpush.bf16.msrb.mxu3 %v1363_v31  ;;  %451 = vmatmul.bf16.vlgmr.msrb.gmra.mxu0 %v976_v32 }
  0x42   :  { %572 = vmatpush.bf16.msra.mxu0 %v1184_v0  ;;  %470 = vmatmul.bf16.vlgmr.msrb.gmra.mxu1 %v980_v33 }
  0x43   :  { %591 = vmatpush.bf16.msra.mxu1 %v1189_v1  ;;  %489 = vmatmul.bf16.vlgmr.msrb.gmra.mxu2 %v984_v34 }
  0x44   :  { %610 = vmatpush.bf16.msra.mxu2 %v1194_v2  ;;  %508 = vmatmul.bf16.vlgmr.msrb.gmra.mxu3 %v988_v35 }
  0x45   :  { %629 = vmatpush.bf16.msra.mxu3 %v1199_v3 }
  0x46   :  { %573 = vmatpush.bf16.msra.mxu0 %v1206_v4 }
  0x47   :  { %592 = vmatpush.bf16.msra.mxu1 %v1211_v5 }
  0x48   :  { %611 = vmatpush.bf16.msra.mxu2 %v1218_v6 }
  0x49   :  { %630 = vmatpush.bf16.msra.mxu3 %v1223_v7 }
  0x4a   :  { %574 = vmatpush.bf16.msra.mxu0 %v1230_v8 }
  0x4b   :  { %593 = vmatpush.bf16.msra.mxu1 %v1235_v9 }
  0x4c   :  { %612 = vmatpush.bf16.msra.mxu2 %v1242_v10 }
  0x4d   :  { %631 = vmatpush.bf16.msra.mxu3 %v1247_v11 }
  0x4e   :  { %575 = vmatpush.bf16.msra.mxu0 %v1254_v12 }
  0x4f   :  { %594 = vmatpush.bf16.msra.mxu1 %v1259_v13 }
  0x50   :  { %613 = vmatpush.bf16.msra.mxu2 %v1266_v14 }
  0x51   :  { %632 = vmatpush.bf16.msra.mxu3 %v1271_v15  ;;  %456 = vmatmul.bf16.gmra.mxu0 %v992_v44 }
  0x52   :  { %576 = vmatpush.bf16.msra.mxu0 %v1278_v16  ;;  %475 = vmatmul.bf16.gmra.mxu1 %v996_v45 }
  0x53   :  { %595 = vmatpush.bf16.msra.mxu1 %v1283_v17  ;;  %494 = vmatmul.bf16.gmra.mxu2 %v1000_v46 }
  0x54   :  { %614 = vmatpush.bf16.msra.mxu2 %v1290_v18  ;;  %513 = vmatmul.bf16.gmra.mxu3 %v1004_v47 }
  0x55   :  { %633 = vmatpush.bf16.msra.mxu3 %v1295_v19 }
  0x56   :  { %577 = vmatpush.bf16.msra.mxu0 %v1302_v20 }
  0x57   :  { %596 = vmatpush.bf16.msra.mxu1 %v1307_v21 }
  0x58   :  { %615 = vmatpush.bf16.msra.mxu2 %v1314_v22 }
  0x59   :  { %634 = vmatpush.bf16.msra.mxu3 %v1319_v23 }
  0x5a   :  { %578 = vmatpush.bf16.msra.mxu0 %v1326_v24 }
  0x5b   :  { %597 = vmatpush.bf16.msra.mxu1 %v1331_v25 }
  0x5c   :  { %616 = vmatpush.bf16.msra.mxu2 %v1338_v26 }
  0x5d   :  { %635 = vmatpush.bf16.msra.mxu3 %v1343_v27 }
  0x5e   :  { %579 = vmatpush.bf16.msra.mxu0 %v1348_v28 }
  0x5f   :  { %598 = vmatpush.bf16.msra.mxu1 %v1353_v29 }
  0x60   :  { %617 = vmatpush.bf16.msra.mxu2 %v1358_v30 }
  0x61   :  { %636 = vmatpush.bf16.msra.mxu3 %v1363_v31  ;;  %580 = vmatmul.bf16.vlgmr.msra.gmra.mxu0 %v1016_v55 }
  0x62   :  { %701 = vmatpush.bf16.msrb.mxu0 %v1184_v0  ;;  %599 = vmatmul.bf16.vlgmr.msra.gmra.mxu1 %v1020_v56  ;;  %v1031_v0 = vld [vmem:[%s1692_s0 + $0xa0] sm:$0xf] }
  0x63   :  { %720 = vmatpush.bf16.msrb.mxu1 %v1189_v1  ;;  %618 = vmatmul.bf16.vlgmr.msra.gmra.mxu2 %v1024_v57  ;;  %v1139_v1 = vld [vmem:[%s1692_s0 + $0xac] sm:$0xf0] }
  0x64   :  { %739 = vmatpush.bf16.msrb.mxu2 %v1194_v2  ;;  %v1134_v2 = vld [vmem:[%s1692_s0 + $0x8c] sm:$0xf] }
  0x65   :  { %758 = vmatpush.bf16.msrb.mxu3 %v1199_v3  ;;  %v1028_v58 = vor.u32 %v1134_v2, %v1025_v54  ;;  %v1137_v3 = vld [vmem:[%s1692_s0 + $0xa4] sm:$0xf] }
  0x66   :  { %702 = vmatpush.bf16.msrb.mxu0 %v1206_v4  ;;  %v1033_v4 = vld [vmem:[%s1692_s0 + $0xb0] sm:$0xf0] }
  0x67   :  { %721 = vmatpush.bf16.msrb.mxu1 %v1211_v5  ;;  %637 = vmatmul.bf16.vlgmr.msra.gmra.mxu3 %v1028_v58  ;;  %v1039_v5 = vld [vmem:[%s1692_s0 + $0xa8] sm:$0xf] }
  0x68   :  { %740 = vmatpush.bf16.msrb.mxu2 %v1218_v6  ;;  %v1140_v6 = vld [vmem:[%s1692_s0 + $0xb4] sm:$0xf0] }
  0x69   :  { %759 = vmatpush.bf16.msrb.mxu3 %v1223_v7  ;;  %v1138_v7 = vld [vmem:[%s1692_s0 + $0xac] sm:$0xf] }
  0x6a   :  { %703 = vmatpush.bf16.msrb.mxu0 %v1230_v8  ;;  %v1041_v8 = vld [vmem:[%s1692_s0 + $0xb8] sm:$0xf0] }
  0x6b   :  { %722 = vmatpush.bf16.msrb.mxu1 %v1235_v9  ;;  %v1032_v9 = vor.u32 %v1139_v1, %v1031_v0 }
  0x6c   :  { %741 = vmatpush.bf16.msrb.mxu2 %v1242_v10  ;;  %v1036_v10 = vor.u32 %v1137_v3, %v1033_v4 }
  0x6d   :  { %760 = vmatpush.bf16.msrb.mxu3 %v1247_v11  ;;  %v1040_v11 = vor.u32 %v1140_v6, %v1039_v5 }
  0x6e   :  { %704 = vmatpush.bf16.msrb.mxu0 %v1254_v12  ;;  %v1044_v12 = vor.u32 %v1138_v7, %v1041_v8 }
  0x6f   :  { %723 = vmatpush.bf16.msrb.mxu1 %v1259_v13  ;;  %v1055_v13 = vld [vmem:[%s1692_s0 + $0xc0] sm:$0xf] }
  0x70   :  { %742 = vmatpush.bf16.msrb.mxu2 %v1266_v14  ;;  %v1143_v14 = vld [vmem:[%s1692_s0 + $0xcc] sm:$0xf0] }
  0x71   :  { %761 = vmatpush.bf16.msrb.mxu3 %v1271_v15  ;;  %585 = vmatmul.bf16.gmra.mxu0 %v1032_v9  ;;  %v1141_v15 = vld [vmem:[%s1692_s0 + $0xc4] sm:$0xf] }
  0x72   :  { %705 = vmatpush.bf16.msrb.mxu0 %v1278_v16  ;;  %604 = vmatmul.bf16.gmra.mxu1 %v1036_v10  ;;  %v1057_v16 = vld [vmem:[%s1692_s0 + $0xd0] sm:$0xf0] }
  0x73   :  { %724 = vmatpush.bf16.msrb.mxu1 %v1283_v17  ;;  %623 = vmatmul.bf16.gmra.mxu2 %v1040_v11  ;;  %v1063_v17 = vld [vmem:[%s1692_s0 + $0xc8] sm:$0xf] }
  0x74   :  { %743 = vmatpush.bf16.msrb.mxu2 %v1290_v18  ;;  %v1144_v18 = vld [vmem:[%s1692_s0 + $0xd4] sm:$0xf0] }
  0x75   :  { %762 = vmatpush.bf16.msrb.mxu3 %v1295_v19  ;;  %v1142_v19 = vld [vmem:[%s1692_s0 + $0xcc] sm:$0xf] }
  0x76   :  { %706 = vmatpush.bf16.msrb.mxu0 %v1302_v20  ;;  %v1065_v20 = vld [vmem:[%s1692_s0 + $0xd8] sm:$0xf0] }
  0x77   :  { %725 = vmatpush.bf16.msrb.mxu1 %v1307_v21  ;;  %642 = vmatmul.bf16.gmra.mxu3 %v1044_v12  ;;  %v1056_v21 = vor.u32 %v1143_v14, %v1055_v13 }
  0x78   :  { %744 = vmatpush.bf16.msrb.mxu2 %v1314_v22  ;;  %v1060_v22 = vor.u32 %v1141_v15, %v1057_v16 }
  0x79   :  { %763 = vmatpush.bf16.msrb.mxu3 %v1319_v23  ;;  %v1064_v23 = vor.u32 %v1144_v18, %v1063_v17 }
  0x7a   :  { %707 = vmatpush.bf16.msrb.mxu0 %v1326_v24  ;;  %v1068_v24 = vor.u32 %v1142_v19, %v1065_v20 }
  0x7b   :  { %726 = vmatpush.bf16.msrb.mxu1 %v1331_v25  ;;  %v1071_v25 = vld [vmem:[%s1692_s0 + $0xe0] sm:$0xf] }
  0x7c   :  { %745 = vmatpush.bf16.msrb.mxu2 %v1338_v26  ;;  %v1147_v26 = vld [vmem:[%s1692_s0 + $0xec] sm:$0xf0] }
  0x7d   :  { %764 = vmatpush.bf16.msrb.mxu3 %v1343_v27  ;;  %v1145_v27 = vld [vmem:[%s1692_s0 + $0xe4] sm:$0xf]  ;;  %v1072_v60 = vor.u32 %v1147_v26, %v1071_v25 }
  0x7e   :  { %708 = vmatpush.bf16.msrb.mxu0 %v1348_v28  ;;  %v1073_v28 = vld [vmem:[%s1692_s0 + $0xf0] sm:$0xf0] }
  0x7f   :  { %727 = vmatpush.bf16.msrb.mxu1 %v1353_v29  ;;  %v1079_v29 = vld [vmem:[%s1692_s0 + $0xe8] sm:$0xf]  ;;  %v1076_v61 = vor.u32 %v1145_v27, %v1073_v28 }
  0x80   :  { %746 = vmatpush.bf16.msrb.mxu2 %v1358_v30  ;;  %v1148_v30 = vld [vmem:[%s1692_s0 + $0xf4] sm:$0xf0] }
  0x81   :  { %765 = vmatpush.bf16.msrb.mxu3 %v1363_v31  ;;  %709 = vmatmul.bf16.vlgmr.msrb.gmra.mxu0 %v1056_v21  ;;  %v1146_v31 = vld [vmem:[%s1692_s0 + $0xec] sm:$0xf]  ;;  %v1080_v62 = vor.u32 %v1148_v30, %v1079_v29 }
  0x82   :  { %728 = vmatmul.bf16.vlgmr.msrb.gmra.mxu1 %v1060_v22  ;;  %v1084_v63 = vor.u32 %v1146_v31, %v1081_v59 }
  0x83   :  { %747 = vmatmul.bf16.vlgmr.msrb.gmra.mxu2 %v1064_v23 }
  0x87   :  { %766 = vmatmul.bf16.vlgmr.msrb.gmra.mxu3 %v1068_v24 }
  0x91   :  { %714 = vmatmul.bf16.gmra.mxu0 %v1072_v60 }
  0x92   :  { %733 = vmatmul.bf16.gmra.mxu1 %v1076_v61 }
  0x93   :  { %752 = vmatmul.bf16.gmra.mxu2 %v1080_v62 }
  0x97   :  { %771 = vmatmul.bf16.gmra.mxu3 %v1084_v63 }
  0x9e   :  { %v327_v32 = vpop.f32.mrf.mxu0 }
  0x9f   :  { %v346_v33 = vpop.f32.mrf.mxu1 }
  0xa0   :  { %v347_v34 = vadd.f32 %v346_v33, %v327_v32 }
  0xa6   :  { %v365_v35 = vpop.f32.mrf.mxu2  ;;  %v329_v38 = vpop.f32.mrf.mxu0 }
  0xa7   :  { %v384_v36 = vpop.f32.mrf.mxu3  ;;  %v366_v37 = vadd.f32 %v365_v35, %v347_v34  ;;  %v348_v39 = vpop.f32.mrf.mxu1 }
  0xa8   :  { %v349_v40 = vadd.f32 %v348_v39, %v329_v38 }
  0xa9   :  { %v1661_v41 = vadd.f32 %v384_v36, %v366_v37 }
  0xae   :  { %v367_v42 = vpop.f32.mrf.mxu2  ;;  %v332_v45 = vpop.f32.mrf.mxu0 }
  0xaf   :  { %v386_v43 = vpop.f32.mrf.mxu3  ;;  %v368_v44 = vadd.f32 %v367_v42, %v349_v40  ;;  %v351_v46 = vpop.f32.mrf.mxu1 }
  0xb0   :  { %v352_v47 = vadd.f32 %v351_v46, %v332_v45 }
  0xb1   :  { %v1663_v48 = vadd.f32 %v386_v43, %v368_v44 }
  0xb6   :  { %v370_v49 = vpop.f32.mrf.mxu2  ;;  %v334_v52 = vpop.f32.mrf.mxu0 }
  0xb7   :  { %v389_v50 = vpop.f32.mrf.mxu3  ;;  %v371_v51 = vadd.f32 %v370_v49, %v352_v47  ;;  %v353_v53 = vpop.f32.mrf.mxu1 }
  0xb8   :  { %v354_v2 = vadd.f32 %v353_v53, %v334_v52 }
  0xb9   :  { %v1665_v54 = vadd.f32 %v389_v50, %v371_v51 }
  0xbe   :  { %v372_v55 = vpop.f32.mrf.mxu2  ;;  %v452_v58 = vpop.f32.mrf.mxu0 }
  0xbf   :  { %v391_v56 = vpop.f32.mrf.mxu3  ;;  %v373_v57 = vadd.f32 %v372_v55, %v354_v2  ;;  %v471_v0 = vpop.f32.mrf.mxu1 }
  0xc0   :  { %v472_v3 = vadd.f32 %v471_v0, %v452_v58 }
  0xc1   :  { %v1667_v1 = vadd.f32 %v391_v56, %v373_v57 }
  0xc6   :  { %v490_v4 = vpop.f32.mrf.mxu2  ;;  %v454_v7 = vpop.f32.mrf.mxu0 }
  0xc7   :  { %v491_v5 = vadd.f32 %v490_v4, %v472_v3  ;;  %v509_v6 = vpop.f32.mrf.mxu3  ;;  %v473_v8 = vpop.f32.mrf.mxu1  ;;  %v1160_v3 = vld [vmem:[%s1693_s2] ss:$0 sm:$0xff] }
  0xc8   :  { %v474_v40 = vadd.f32 %v473_v8, %v454_v7 }
  0xc9   :  { %v510_v9 = vadd.f32 %v509_v6, %v491_v5 }
  0xcb   :  { %v519_v10 = vmax.f32 %v1661_v41, %v510_v9 }
  0xce   :  { %v492_v11 = vpop.f32.mrf.mxu2  ;;  %v457_v13 = vpop.f32.mrf.mxu0 }
  0xcf   :  { %v511_v12 = vpop.f32.mrf.mxu3  ;;  %v476_v14 = vpop.f32.mrf.mxu1  ;;  %v493_v43 = vadd.f32 %v492_v11, %v474_v40 }
  0xd0   :  { %v477_v15 = vadd.f32 %v476_v14, %v457_v13 }
  0xd1   :  { %v512_v52 = vadd.f32 %v511_v12, %v493_v43 }
  0xd3   :  { %v520_v58 = vmax.f32 %v1663_v48, %v512_v52 }
  0xd6   :  { %v495_v16 = vpop.f32.mrf.mxu2  ;;  %v459_v19 = vpop.f32.mrf.mxu0 }
  0xd7   :  { %v496_v17 = vadd.f32 %v495_v16, %v477_v15  ;;  %v514_v18 = vpop.f32.mrf.mxu3  ;;  %v478_v20 = vpop.f32.mrf.mxu1 }
  0xd8   :  { %v479_v14 = vadd.f32 %v478_v20, %v459_v19 }
  0xd9   :  { %v1670_v21 = vadd.f32 %v514_v18, %v496_v17 }
  0xdb   :  { %v521_v22 = vmax.f32 %v1665_v54, %v1670_v21 }
  0xde   :  { %v497_v23 = vpop.f32.mrf.mxu2  ;;  %v581_v25 = vpop.f32.mrf.mxu0 }
  0xdf   :  { %v1674_v24 = vpop.f32.mrf.mxu3  ;;  %v600_v26 = vpop.f32.mrf.mxu1  ;;  %v498_v17 = vadd.f32 %v497_v23, %v479_v14 }
  0xe0   :  { %v601_v38 = vadd.f32 %v600_v26, %v581_v25 }
  0xe6   :  { %v619_v27 = vpop.f32.mrf.mxu2  ;;  %v583_v29 = vpop.f32.mrf.mxu0 }
  0xe7   :  { %v602_v30 = vpop.f32.mrf.mxu1  ;;  %v620_v41 = vadd.f32 %v619_v27, %v601_v38 }
  0xe8   :  { %v603_v44 = vadd.f32 %v602_v30, %v583_v29 }
  0xea   :  { %v638_v28 = vpop.f32.mrf.mxu3 }
  0xeb   :  { %v639_v50 = vadd.f32 %v638_v28, %v620_v41 }
  0xed   :  { %v648_v2 = vmax.f32 %v519_v10, %v639_v50 }
  0xee   :  { %v621_v31 = vpop.f32.mrf.mxu2  ;;  %v586_v60 = vpop.f32.mrf.mxu0 }
  0xef   :  { %v605_v61 = vpop.f32.mrf.mxu1  ;;  %v622_v51 = vadd.f32 %v621_v31, %v603_v44 }
  0xf0   :  { %v606_v9 = vadd.f32 %v605_v61, %v586_v60  ;;  %v517_v60 = vadd.f32 %v1674_v24, %v498_v17 }
  0xf2   :  { %v640_v59 = vpop.f32.mrf.mxu3 }
  0xf3   :  { %v641_v55 = vadd.f32 %v640_v59, %v622_v51 }
  0xf5   :  { %v649_v8 = vmax.f32 %v520_v58, %v641_v55 }
  0xf6   :  { %v624_v62 = vpop.f32.mrf.mxu2  ;;  %v588_v32 = vpop.f32.mrf.mxu0 }
  0xf7   :  { %v607_v33 = vpop.f32.mrf.mxu1  ;;  %v625_v15 = vadd.f32 %v624_v62, %v606_v9 }
  0xf8   :  { %v608_v18 = vadd.f32 %v607_v33, %v588_v32 }
  0xfa   :  { %v643_v63 = vpop.f32.mrf.mxu3 }
  0xfb   :  { %v644_v29 = vadd.f32 %v643_v63, %v625_v15  ;;  %v522_v63 = vmax.f32 %v1667_v1, %v517_v60 }
  0xfd   :  { %v650_v20 = vmax.f32 %v521_v22, %v644_v29 }
  0xfe   :  { %v626_v34 = vpop.f32.mrf.mxu2  ;;  %v710_v36 = vpop.f32.mrf.mxu0 }
  0xff   :  { %v729_v37 = vpop.f32.mrf.mxu1  ;;  %v627_v30 = vadd.f32 %v626_v34, %v608_v18 }
 0x100   :  { %v730_v39 = vadd.f32 %v729_v37, %v710_v36 }
 0x102   :  { %v645_v35 = vpop.f32.mrf.mxu3 }
 0x103   :  { %v646_v23 = vadd.f32 %v645_v35, %v627_v30 }
 0x105   :  { %v651_v37 = vmax.f32 %v522_v63, %v646_v23 }
 0x106   :  { %v748_v42 = vpop.f32.mrf.mxu2  ;;  %v712_v47 = vpop.f32.mrf.mxu0 }
 0x107   :  { %v749_v45 = vadd.f32 %v748_v42, %v730_v39  ;;  %v731_v49 = vpop.f32.mrf.mxu1 }
 0x108   :  { %v732_v56 = vadd.f32 %v731_v49, %v712_v47 }
 0x10a   :  { %v767_v46 = vpop.f32.mrf.mxu3 }
 0x10b   :  { %v768_v53 = vadd.f32 %v767_v46, %v749_v45 }
 0x10d   :  { %v777_v0 = vmax.f32 %v648_v2, %v768_v53 }
 0x10e   :  { %v750_v57 = vpop.f32.mrf.mxu2  ;;  %v715_v6 = vpop.f32.mrf.mxu0 }
 0x10f   :  { %v751_v4 = vadd.f32 %v750_v57, %v732_v56  ;;  %v734_v7 = vpop.f32.mrf.mxu1  ;;  %v785_v12 = vadd.f32 %v1160_v3, %v777_v0 }
 0x110   :  { %v735_v10 = vadd.f32 %v734_v7, %v715_v6 }
 0x111   :  { %v789_v25 = vmax.f32 %v785_v12, 0.0 }
 0x112   :  { %v769_v5 = vpop.f32.mrf.mxu3 }
 0x113   :  { %v770_v11 = vadd.f32 %v769_v5, %v751_v4 }
 0x115   :  { %v778_v13 = vmax.f32 %v649_v8, %v770_v11 }
 0x116   :  { %v753_v48 = vpop.f32.mrf.mxu2  ;;  %v717_v59 = vpop.f32.mrf.mxu0 }
 0x117   :  { %v786_v16 = vadd.f32 %v1160_v3, %v778_v13  ;;  %v754_v27 = vadd.f32 %v753_v48, %v735_v10  ;;  %v736_v36 = vpop.f32.mrf.mxu1 }
 0x118   :  { %v737_v61 = vadd.f32 %v736_v36, %v717_v59 }
 0x119   :  { %v790_v26 = vmax.f32 %v786_v16, 0.0 }
 0x11a   :  { %v772_v28 = vpop.f32.mrf.mxu3 }
 0x11b   :  { %v1152_v31 = vpack.c.bf16 %v790_v26, %v789_v25  ;;  %v773_v19 = vadd.f32 %v772_v28, %v754_v27 }
 0x11d   :  { %1153 = vst [vmem:[%s1694_s3] sm:$0xff] %v1152_v31   ;;  %v779_v32 = vmax.f32 %v650_v20, %v773_v19 }
 0x11e   :  { %v755_v62 = vpop.f32.mrf.mxu2 }
 0x11f   :  { %v756_v33 = vadd.f32 %v755_v62, %v737_v61  ;;  %v787_v24 = vadd.f32 %v1160_v3, %v779_v32 }
 0x121   :  { %v791_v41 = vmax.f32 %v787_v24, 0.0 }
 0x122   :  { %v774_v34 = vpop.f32.mrf.mxu3 }
 0x123   :  { %v775_v38 = vadd.f32 %v774_v34, %v756_v33 }
 0x125   :  { %v780_v39 = vmax.f32 %v651_v37, %v775_v38 }
 0x127   :  { %v788_v40 = vadd.f32 %v1160_v3, %v780_v39 }
 0x129   :  { %v792_v42 = vmax.f32 %v788_v40, 0.0 }
 0x12b   :  { %v1157_v43 = vpack.c.bf16 %v792_v42, %v791_v41 }
 0x12d   :  { %1159 = vst [vmem:[%s1694_s3 + $0x8] sm:$0xff] %v1157_v43  }

// kernel: forward.5
= control target key start
LH: loop header
LB: loop body
LE: loop exit
PB: predicated region body
PF: predicated region fallthrough
CT: control target
= control target key end

     0   :  { %s4947_s0 = inlined_call_operand.vmem [shape: bf16[2,16,512], index: 0, kind: input, shape index: {}]   ;;  %s4948_s1 = inlined_call_operand.vmem [shape: bf16[512,128], index: 1, kind: input, shape index: {}]   ;;  %s4949_s2 = inlined_call_operand.vmem [shape: f32[1,128], index: 2, kind: input, shape index: {}]   ;;  %s4950_s3 = inlined_call_operand.vmem [shape: bf16[512,512], index: 3, kind: input, shape index: {}]   ;;  %s4951_s4 = inlined_call_operand.vmem [shape: f32[1,512], index: 4, kind: input, shape index: {}]   ;;  %s4952_s5 = inlined_call_operand.vmem [shape: bf16[128,512], index: 5, kind: input, shape index: {}]   ;;  %s4953_s6 = inlined_call_operand.vmem [shape: f32[1,512], index: 6, kind: input, shape index: {}]   ;;  %s4954_s7 = inlined_call_operand.vmem [shape: bf16[512,128], index: 7, kind: input, shape index: {}]   ;;  %s4955_s8 = inlined_call_operand.vmem [shape: f32[1,128], index: 8, kind: input, shape index: {}]   ;;  %s4956_s9 = inlined_call_operand.hbm [shape: f32[2,1,128], index: 9, kind: output, shape index: {}]  }
   0x1   :  { %4957 = sst [smem:[#allocation5_spill]] %s4947_s0 }
   0x2   :  { %14 = vsyncpa [#allocation3], 0 }
   0x3   :  { %16 = vsyncpa [#allocation3 + $0x1], 0  ;;  %s3635_s30 = smov 0   ;;  %s3637_s10 = smov 0  }
   0x4   :  { %s3639_s11 = smov 0   ;;  %s3641_s12 = smov 0  }
   0x5 LB: > { %s3656_s13 = sadd.s32 4294967295, %s3583_s12   ;;  %s2332_s14 = sadd.s32 4294967294, %s3583_s12   ;;  %s3583_s12 = sphi %s3641_s12, %s4964_s12   ;;  %s3579_s11 = sphi %s3639_s11, %s4963_s11   ;;  %s3575_s10 = sphi %s3637_s10, %s4962_s10   ;;  %s3571_s30 = sphi %s3635_s30, %s4961_s30  }
   0x6   : > { %s3660_s15 = sadd.s32 1, %s3583_s12   ;;  %s223_s16 = sadd.s32 1, %s3579_s11 }
   0x7   : > { %s220_s17 = ssub.s32 %s3583_s12, %s3660_s15  ;;  %p233_p0 = scmp.ne.s32.totalorder %s3579_s11, %s3575_s10 }
   0x8   : > { %p221_p1 = scmp.eq.s32.totalorder %s220_s17, 0  ;;  %p234_p2 = scmp.eq.s32.totalorder %s3656_s13, 1 }
   0x9   : > { %p239_p3 = scmp.ne.s32.totalorder %s3575_s10, %s3571_s30  ;;  %p240_p4 = scmp.eq.s32.totalorder %s2332_s14, 1 }
   0xa   : > { %s3671_s18 = scalar_select %p221_p1, %s3579_s11, %s223_s16  }
   0xb   : > { %p3673_p5 = por %p234_p2, %p233_p0  ;;  %p3677_p6 = por %p240_p4, %p239_p3 }
   0xc   : > { %p2335_p7 = scmp.ge.s32.totalorder %s3583_s12, 1  ;;  %p290_p8 = scmp.lt.s32.totalorder %s3583_s12, 3 }
   0xe   : > { %p291_p9 = pnand %p2335_p7, %p290_p8 }
   0xf   : > { %p325_p10 = scmp.lt.s32.totalorder (!%p291_p9), %s3656_s13, 1  ;;  %s4960_s0 = sld [smem:[#allocation5_spill]] (!%p291_p9) }
  0x10   : > { %294 = sbr.rel (%p291_p9) target bundleno = 698 (0x2ba), region = 56  ;;  %s323_s29 = sand.u32 (!%p291_p9), 1, %s3575_s10  }
  0x11   : > { %s2273_s17 = scalar_lea.hbm (!%p291_p9), %s4956_s9, %s3656_s13  ;;  %s324_s22 = scalar_lea.vmem (!%p291_p9), [#allocation2], %s323_s29 }
  0x12   : > { %s2275_s23 = sshll.u32 (!%p291_p9), %s324_s22, 4  ;;  %s3541_s28 = scalar_lea.hbm (!%p291_p9), %s4956_s9, 2  ;;  %s2276_s23 = int_to_ptr.vmem [resolvable:$true] %s2275_s23 }
  0x15   : > { %v3264_v0 = vld [vmem:[%s4948_s1 + $0x38] sm:$0xff]  ;;  %v3263_v4 = vld [vmem:[%s4948_s1 + $0x30] sm:$0xff]  ;;  %v3262_v8 = vld [vmem:[%s4948_s1 + $0x28] sm:$0xff]  ;;  %s326_s21 = scalar_select %p325_p10, %s3656_s13, 1 }
  0x16   : > { %v3272_v1 = vld [vmem:[%s4948_s1 + $0x78] sm:$0xff]  ;;  %614 = vmatpush.bf16.msra.mxu0 %v3264_v0  ;;  %v3271_v5 = vld [vmem:[%s4948_s1 + $0x70] sm:$0xff]  ;;  %v3270_v9 = vld [vmem:[%s4948_s1 + $0x68] sm:$0xff] }
  0x17   : > { %v3280_v2 = vld [vmem:[%s4948_s1 + $0xb8] sm:$0xff]  ;;  %628 = vmatpush.bf16.msra.mxu1 %v3272_v1  ;;  %v3279_v6 = vld [vmem:[%s4948_s1 + $0xb0] sm:$0xff]  ;;  %v3278_v10 = vld [vmem:[%s4948_s1 + $0xa8] sm:$0xff]  ;;  %s3252_s14 = sshll.u32 %s326_s21, 5 }
  0x18   : > { %v3288_v3 = vld [vmem:[%s4948_s1 + $0xf8] sm:$0xff]  ;;  %642 = vmatpush.bf16.msra.mxu2 %v3280_v2  ;;  %v3287_v7 = vld [vmem:[%s4948_s1 + $0xf0] sm:$0xff]  ;;  %v3286_v11 = vld [vmem:[%s4948_s1 + $0xe8] sm:$0xff]  ;;  %s329_s26 = scalar_lea.vmem %s4960_s0, %s3252_s14  ;;  %s2277_s14 = sshll.u32 %s2273_s17, 4  ;;  %s2278_s14 = int_to_ptr.hbm [resolvable:$true] %s2277_s14 }
  0x19   : > { %656 = vmatpush.bf16.msra.mxu3 %v3288_v3  ;;  %v3261_v12 = vld [vmem:[%s4948_s1 + $0x20] sm:$0xff]  ;;  %v3260_v16 = vld [vmem:[%s4948_s1 + $0x18] sm:$0xff]  ;;  %v3259_v20 = vld [vmem:[%s4948_s1 + $0x10] sm:$0xff]  ;;  %s3535_s24 = sshra.s32 %s2278_s14, 4  ;;  %s3536_s24 = int_to_ptr.hbm [resolvable:$true] %s3535_s24 }
  0x1a   : > { %615 = vmatpush.bf16.msra.mxu0 %v3263_v4  ;;  %v3269_v13 = vld [vmem:[%s4948_s1 + $0x60] sm:$0xff]  ;;  %v3268_v17 = vld [vmem:[%s4948_s1 + $0x58] sm:$0xff]  ;;  %v3267_v21 = vld [vmem:[%s4948_s1 + $0x50] sm:$0xff]  ;;  %s3537_s25 = scalar_lea.hbm %s3536_s24, 1  ;;  %p3542_p0 = scmp.lt.s32.totalorder %s3536_s24, %s4956_s9 }
  0x1b   : > { %629 = vmatpush.bf16.msra.mxu1 %v3271_v5  ;;  %v3277_v14 = vld [vmem:[%s4948_s1 + $0xa0] sm:$0xff]  ;;  %v3276_v18 = vld [vmem:[%s4948_s1 + $0x98] sm:$0xff]  ;;  %v3275_v22 = vld [vmem:[%s4948_s1 + $0x90] sm:$0xff]  ;;  %p3538_p11 = scmp.ne.s32.totalorder %s3536_s24, %s3537_s25  ;;  %p3543_p1 = scmp.lt.s32.totalorder %s3541_s28, %s3537_s25 }
  0x1c   : > { %643 = vmatpush.bf16.msra.mxu2 %v3279_v6  ;;  %v3285_v15 = vld [vmem:[%s4948_s1 + $0xe0] sm:$0xff]  ;;  %v3284_v19 = vld [vmem:[%s4948_s1 + $0xd8] sm:$0xff]  ;;  %v3283_v23 = vld [vmem:[%s4948_s1 + $0xd0] sm:$0xff] }
  0x1d   : > { %657 = vmatpush.bf16.msra.mxu3 %v3287_v7  ;;  %v3258_v24 = vld [vmem:[%s4948_s1 + $0x8] sm:$0xff]  ;;  %v3257_v28 = vld [vmem:[%s4948_s1] sm:$0xff]  ;;  %v3255_v31 = vld [vmem:[%s329_s26 + $0xc] sm:$0xf0]  ;;  %p3539_p12 = pnand %p3538_p11, %p3673_p5  ;;  %p3544_p2 = por %p3543_p1, %p3542_p0 }
  0x1e   : > { %616 = vmatpush.bf16.msra.mxu0 %v3262_v8  ;;  %v3266_v25 = vld [vmem:[%s4948_s1 + $0x48] sm:$0xff]  ;;  %v3265_v29 = vld [vmem:[%s4948_s1 + $0x40] sm:$0xff]  ;;  %v2342_v33 = vld [vmem:[%s329_s26 + $0x10] sm:$0xf0] }
  0x1f   : > { %630 = vmatpush.bf16.msra.mxu1 %v3270_v9  ;;  %v3274_v26 = vld [vmem:[%s4948_s1 + $0x88] sm:$0xff]  ;;  %v2340_v30 = vld [vmem:[%s329_s26] sm:$0xf]  ;;  %v3253_v32 = vld [vmem:[%s329_s26 + $0x4] sm:$0xf]  ;;  %p3540_p13 = pneg %p3539_p12 }
  0x20   : > { %644 = vmatpush.bf16.msra.mxu2 %v3278_v10  ;;  %v3282_v27 = vld [vmem:[%s4948_s1 + $0xc8] sm:$0xff]  ;;  %v2596_v34 = vld [vmem:[%s4950_s3 + $0xe0] sm:$0xf]  ;;  %v3319_v37 = vld [vmem:[%s4950_s3 + $0xec] sm:$0xf0]  ;;  %v2341_v51 = vor.u32 %v3255_v31, %v2340_v30  ;;  %v2345_v52 = vor.u32 %v3253_v32, %v2342_v33 }
  0x21   : > { %658 = vmatpush.bf16.msra.mxu3 %v3286_v11  ;;  %v3273_v35 = vld [vmem:[%s4948_s1 + $0x80] sm:$0xff]  ;;  %v3351_v39 = vld [vmem:[%s4950_s3 + $0x1ec] sm:$0xf0]  ;;  %v2348_v40 = vld [vmem:[%s329_s26 + $0x8] sm:$0xf]  ;;  %v2597_v46 = vor.u32 %v3319_v37, %v2596_v34  ;;  %p3545_p3 = pnand %p3544_p2, %p3540_p13 }
  0x22   : > { %617 = vmatpush.bf16.msra.mxu0 %v3261_v12  ;;  %v3281_v36 = vld [vmem:[%s4948_s1 + $0xc0] sm:$0xff]  ;;  %v3256_v41 = vld [vmem:[%s329_s26 + $0x14] sm:$0xf0]  ;;  %v3254_v42 = vld [vmem:[%s329_s26 + $0xc] sm:$0xf] }
  0x23   : > { %631 = vmatpush.bf16.msra.mxu1 %v3269_v13  ;;  %v2724_v38 = vld [vmem:[%s4950_s3 + $0x1e0] sm:$0xf]  ;;  %v2350_v43 = vld [vmem:[%s329_s26 + $0x18] sm:$0xf0]  ;;  %v3383_v48 = vld [vmem:[%s4950_s3 + $0x2ec] sm:$0xf0]  ;;  %v2349_v56 = vor.u32 %v3256_v41, %v2348_v40 }
  0x24   : > { %645 = vmatpush.bf16.msra.mxu2 %v3277_v14  ;;  %v2580_v44 = vld [vmem:[%s4950_s3 + $0xc0] sm:$0xf]  ;;  %v2725_v47 = vor.u32 %v3351_v39, %v2724_v38  ;;  %v3415_v50 = vld [vmem:[%s4950_s3 + $0x3ec] sm:$0xf0]  ;;  %v2353_v57 = vor.u32 %v3254_v42, %v2350_v43  ;;  %s2265_s26 = scalar_lea.sflag [#allocation3], %s323_s29 }
  0x25   : > { %659 = vmatpush.bf16.msra.mxu3 %v3285_v15  ;;  %v2852_v45 = vld [vmem:[%s4950_s3 + $0x2e0] sm:$0xf]  ;;  %v3315_v53 = vld [vmem:[%s4950_s3 + $0xcc] sm:$0xf0] }
  0x26   : > { %618 = vmatpush.bf16.msra.mxu0 %v3260_v16  ;;  %v2980_v49 = vld [vmem:[%s4950_s3 + $0x3e0] sm:$0xf]  ;;  %v3347_v55 = vld [vmem:[%s4950_s3 + $0x1cc] sm:$0xf0]  ;;  %v2853_v59 = vor.u32 %v3383_v48, %v2852_v45  ;;  %v2581_v62 = vor.u32 %v3315_v53, %v2580_v44 }
  0x27   : > { %632 = vmatpush.bf16.msra.mxu1 %v3268_v17  ;;  %v2708_v54 = vld [vmem:[%s4950_s3 + $0x1c0] sm:$0xf]  ;;  %v2981_v60 = vor.u32 %v3415_v50, %v2980_v49  ;;  %v3379_v0 = vld [vmem:[%s4950_s3 + $0x2cc] sm:$0xf0] }
  0x28   : > { %646 = vmatpush.bf16.msra.mxu2 %v3276_v18  ;;  %v2564_v58 = vld [vmem:[%s4950_s3 + $0xa0] sm:$0xf]  ;;  %v2709_v63 = vor.u32 %v3347_v55, %v2708_v54  ;;  %v3411_v2 = vld [vmem:[%s4950_s3 + $0x3cc] sm:$0xf0] }
  0x29   : > { %660 = vmatpush.bf16.msra.mxu3 %v3284_v19  ;;  %v2836_v61 = vld [vmem:[%s4950_s3 + $0x2c0] sm:$0xf]  ;;  %v3311_v3 = vld [vmem:[%s4950_s3 + $0xac] sm:$0xf0] }
  0x2a   : > { %619 = vmatpush.bf16.msra.mxu0 %v3259_v20  ;;  %v2964_v1 = vld [vmem:[%s4950_s3 + $0x3c0] sm:$0xf]  ;;  %v3343_v5 = vld [vmem:[%s4950_s3 + $0x1ac] sm:$0xf0]  ;;  %v2837_v7 = vor.u32 %v3379_v0, %v2836_v61  ;;  %v2565_v10 = vor.u32 %v3311_v3, %v2564_v58  ;;  %v3317_v0 = vld [vmem:[%s4950_s3 + $0xe4] sm:$0xf] }
  0x2b   : > { %633 = vmatpush.bf16.msra.mxu1 %v3267_v21  ;;  %v2692_v4 = vld [vmem:[%s4950_s3 + $0x1a0] sm:$0xf]  ;;  %v2965_v8 = vor.u32 %v3411_v2, %v2964_v1  ;;  %v3375_v12 = vld [vmem:[%s4950_s3 + $0x2ac] sm:$0xf0]  ;;  %v2598_v3 = vld [vmem:[%s4950_s3 + $0xf0] sm:$0xf0] }
  0x2c   : > { %647 = vmatpush.bf16.msra.mxu2 %v3275_v22  ;;  %v2548_v6 = vld [vmem:[%s4950_s3 + $0x80] sm:$0xf]  ;;  %v2693_v11 = vor.u32 %v3343_v5, %v2692_v4  ;;  %v3407_v14 = vld [vmem:[%s4950_s3 + $0x3ac] sm:$0xf0]  ;;  %v3349_v4 = vld [vmem:[%s4950_s3 + $0x1e4] sm:$0xf] }
  0x2d   : > { %661 = vmatpush.bf16.msra.mxu3 %v3283_v23  ;;  %v2820_v9 = vld [vmem:[%s4950_s3 + $0x2a0] sm:$0xf]  ;;  %v3307_v15 = vld [vmem:[%s4950_s3 + $0x8c] sm:$0xf0]  ;;  %v2726_v5 = vld [vmem:[%s4950_s3 + $0x1f0] sm:$0xf0] }
  0x2e   : > { %620 = vmatpush.bf16.msra.mxu0 %v3258_v24  ;;  %v2948_v13 = vld [vmem:[%s4950_s3 + $0x3a0] sm:$0xf]  ;;  %v3339_v17 = vld [vmem:[%s4950_s3 + $0x18c] sm:$0xf0]  ;;  %v2821_v19 = vor.u32 %v3375_v12, %v2820_v9  ;;  %v2549_v22 = vor.u32 %v3307_v15, %v2548_v6  ;;  %v3313_v12 = vld [vmem:[%s4950_s3 + $0xc4] sm:$0xf] }
  0x2f   : > { %634 = vmatpush.bf16.msra.mxu1 %v3266_v25  ;;  %v2676_v16 = vld [vmem:[%s4950_s3 + $0x180] sm:$0xf]  ;;  %v2949_v20 = vor.u32 %v3407_v14, %v2948_v13  ;;  %v3371_v24 = vld [vmem:[%s4950_s3 + $0x28c] sm:$0xf0]  ;;  %v2582_v13 = vld [vmem:[%s4950_s3 + $0xd0] sm:$0xf0] }
  0x30   : > { %648 = vmatpush.bf16.msra.mxu2 %v3274_v26  ;;  %v2532_v18 = vld [vmem:[%s4950_s3 + $0x60] sm:$0xf]  ;;  %v2677_v23 = vor.u32 %v3339_v17, %v2676_v16  ;;  %v3403_v26 = vld [vmem:[%s4950_s3 + $0x38c] sm:$0xf0]  ;;  %v2585_v14 = vor.u32 %v3313_v12, %v2582_v13  ;;  %v3345_v15 = vld [vmem:[%s4950_s3 + $0x1c4] sm:$0xf] }
  0x31   : > { %662 = vmatpush.bf16.msra.mxu3 %v3282_v27  ;;  %v2804_v21 = vld [vmem:[%s4950_s3 + $0x280] sm:$0xf]  ;;  %v3303_v27 = vld [vmem:[%s4950_s3 + $0x6c] sm:$0xf0]  ;;  %v2710_v16 = vld [vmem:[%s4950_s3 + $0x1d0] sm:$0xf0] }
  0x32   : > { %621 = vmatpush.bf16.msra.mxu0 %v3257_v28  ;;  %v2932_v25 = vld [vmem:[%s4950_s3 + $0x380] sm:$0xf]  ;;  %v2805_v31 = vor.u32 %v3371_v24, %v2804_v21  ;;  %v2533_v34 = vor.u32 %v3303_v27, %v2532_v18  ;;  %v3399_v38 = vld [vmem:[%s4950_s3 + $0x36c] sm:$0xf0]  ;;  %v2713_v17 = vor.u32 %v3345_v15, %v2710_v16  ;;  %v3309_v21 = vld [vmem:[%s4950_s3 + $0xa4] sm:$0xf] }
  0x33   : > { %635 = vmatpush.bf16.msra.mxu1 %v3265_v29  ;;  %v2660_v28 = vld [vmem:[%s4950_s3 + $0x160] sm:$0xf]  ;;  %v3335_v29 = vld [vmem:[%s4950_s3 + $0x16c] sm:$0xf0]  ;;  %v2933_v32 = vor.u32 %v3403_v26, %v2932_v25  ;;  %v2854_v25 = vld [vmem:[%s4950_s3 + $0x2f0] sm:$0xf0] }
  0x34   : > { %649 = vmatpush.bf16.msra.mxu2 %v3273_v35  ;;  %v2516_v30 = vld [vmem:[%s4950_s3 + $0x40] sm:$0xf]  ;;  %v2661_v35 = vor.u32 %v3335_v29, %v2660_v28  ;;  %v3299_v39 = vld [vmem:[%s4950_s3 + $0x4c] sm:$0xf0]  ;;  %v2790_v12 = vld [vmem:[%s4950_s3 + $0x270] sm:$0xf0] }
  0x35   : > { %663 = vmatpush.bf16.msra.mxu3 %v3281_v36  ;;  %622 = vmatmul.bf16.vlgmr.msra.gmra.mxu0 %v2341_v51  ;;  %v2788_v33 = vld [vmem:[%s4950_s3 + $0x260] sm:$0xf]  ;;  %v3367_v36 = vld [vmem:[%s4950_s3 + $0x26c] sm:$0xf0]  ;;  %v2630_v15 = vld [vmem:[%s4950_s3 + $0x130] sm:$0xf0] }
  0x36   : > { %1476 = vmatpush.bf16.msrb.mxu0 %v2597_v46  ;;  %636 = vmatmul.bf16.vlgmr.msra.gmra.mxu1 %v2345_v52  ;;  %v2916_v37 = vld [vmem:[%s4950_s3 + $0x360] sm:$0xf]  ;;  %v3331_v41 = vld [vmem:[%s4950_s3 + $0x14c] sm:$0xf0]  ;;  %v2789_v43 = vor.u32 %v3367_v36, %v2788_v33  ;;  %v2517_v46 = vor.u32 %v3299_v39, %v2516_v30  ;;  %v3341_v30 = vld [vmem:[%s4950_s3 + $0x1a4] sm:$0xf] }
  0x37   : > { %1489 = vmatpush.bf16.msrb.mxu1 %v2725_v47  ;;  %650 = vmatmul.bf16.vlgmr.msra.gmra.mxu2 %v2349_v56  ;;  %v2644_v40 = vld [vmem:[%s4950_s3 + $0x140] sm:$0xf]  ;;  %v2917_v44 = vor.u32 %v3399_v38, %v2916_v37  ;;  %v3363_v48 = vld [vmem:[%s4950_s3 + $0x24c] sm:$0xf0]  ;;  %v3305_v36 = vld [vmem:[%s4950_s3 + $0x84] sm:$0xf] }
  0x38   : > { %664 = vmatmul.bf16.vlgmr.msra.gmra.mxu3 %v2353_v57  ;;  %1502 = vmatpush.bf16.msrb.mxu2 %v2853_v59  ;;  %v2500_v42 = vld [vmem:[%s4950_s3 + $0x20] sm:$0xf]  ;;  %v2645_v47 = vor.u32 %v3331_v41, %v2644_v40  ;;  %v3395_v50 = vld [vmem:[%s4950_s3 + $0x34c] sm:$0xf0]  ;;  %v2550_v37 = vld [vmem:[%s4950_s3 + $0x90] sm:$0xf0] }
  0x39   : > { %1515 = vmatpush.bf16.msrb.mxu3 %v2981_v60  ;;  %v2772_v45 = vld [vmem:[%s4950_s3 + $0x240] sm:$0xf]  ;;  %v3295_v51 = vld [vmem:[%s4950_s3 + $0x2c] sm:$0xf0]  ;;  %v3377_v38 = vld [vmem:[%s4950_s3 + $0x2c4] sm:$0xf]  ;;  %v2553_v39 = vor.u32 %v3305_v36, %v2550_v37 }
  0x3a   : > { %1477 = vmatpush.bf16.msrb.mxu0 %v2581_v62  ;;  %v2900_v49 = vld [vmem:[%s4950_s3 + $0x340] sm:$0xf]  ;;  %v3327_v53 = vld [vmem:[%s4950_s3 + $0x12c] sm:$0xf0]  ;;  %v2773_v56 = vor.u32 %v3363_v48, %v2772_v45  ;;  %v2501_v59 = vor.u32 %v3295_v51, %v2500_v42  ;;  %v2838_v40 = vld [vmem:[%s4950_s3 + $0x2d0] sm:$0xf0] }
  0x3b   : > { %1490 = vmatpush.bf16.msrb.mxu1 %v2709_v63  ;;  %v2628_v52 = vld [vmem:[%s4950_s3 + $0x120] sm:$0xf]  ;;  %v3291_v55 = vld [vmem:[%s4950_s3 + $0xc] sm:$0xf0]  ;;  %v2901_v57 = vor.u32 %v3395_v50, %v2900_v49  ;;  %v2841_v41 = vor.u32 %v3377_v38, %v2838_v40  ;;  %v3337_v42 = vld [vmem:[%s4950_s3 + $0x184] sm:$0xf] }
  0x3c   : > { %1503 = vmatpush.bf16.msrb.mxu2 %v2837_v7  ;;  %v2484_v54 = vld [vmem:[%s4950_s3] sm:$0xf]  ;;  %v2629_v60 = vor.u32 %v3327_v53, %v2628_v52  ;;  %v3359_v61 = vld [vmem:[%s4950_s3 + $0x22c] sm:$0xf0]  ;;  %v3301_v48 = vld [vmem:[%s4950_s3 + $0x64] sm:$0xf] }
  0x3d   : > { %1516 = vmatpush.bf16.msrb.mxu3 %v2965_v8  ;;  %v2756_v58 = vld [vmem:[%s4950_s3 + $0x220] sm:$0xf]  ;;  %v3391_v63 = vld [vmem:[%s4950_s3 + $0x32c] sm:$0xf0]  ;;  %v2485_v8 = vor.u32 %v3291_v55, %v2484_v54  ;;  %v2534_v49 = vld [vmem:[%s4950_s3 + $0x70] sm:$0xf0] }
  0x3e   : > { %1478 = vmatpush.bf16.msrb.mxu0 %v2565_v10  ;;  %v2884_v62 = vld [vmem:[%s4950_s3 + $0x320] sm:$0xf]  ;;  %v3323_v2 = vld [vmem:[%s4950_s3 + $0x10c] sm:$0xf0]  ;;  %v2757_v6 = vor.u32 %v3359_v61, %v2756_v58  ;;  %v2601_v10 = vor.u32 %v3317_v0, %v2598_v3  ;;  %v3373_v50 = vld [vmem:[%s4950_s3 + $0x2a4] sm:$0xf]  ;;  %v2537_v51 = vor.u32 %v3301_v48, %v2534_v49 }
  0x3f   : > { %1491 = vmatpush.bf16.msrb.mxu1 %v2693_v11  ;;  %v2612_v1 = vld [vmem:[%s4950_s3 + $0x100] sm:$0xf]  ;;  %v2885_v7 = vor.u32 %v3391_v63, %v2884_v62  ;;  %v2729_v11 = vor.u32 %v3349_v4, %v2726_v5  ;;  %v3387_v27 = vld [vmem:[%s4950_s3 + $0x30c] sm:$0xf0]  ;;  %v2822_v52 = vld [vmem:[%s4950_s3 + $0x2b0] sm:$0xf0] }
  0x40   : > { %1504 = vmatpush.bf16.msrb.mxu2 %v2821_v19  ;;  %v2613_v9 = vor.u32 %v3323_v2, %v2612_v1  ;;  %v2740_v18 = vld [vmem:[%s4950_s3 + $0x200] sm:$0xf]  ;;  %v3355_v19 = vld [vmem:[%s4950_s3 + $0x20c] sm:$0xf0]  ;;  %v2825_v53 = vor.u32 %v3373_v50, %v2822_v52  ;;  %v3333_v54 = vld [vmem:[%s4950_s3 + $0x164] sm:$0xf] }
  0x41   : > { %1517 = vmatpush.bf16.msrb.mxu3 %v2949_v20  ;;  %v2741_v20 = vor.u32 %v3355_v19, %v2740_v18  ;;  %v2868_v26 = vld [vmem:[%s4950_s3 + $0x300] sm:$0xf]  ;;  %v2662_v55 = vld [vmem:[%s4950_s3 + $0x170] sm:$0xf0]  ;;  %v3369_v62 = vld [vmem:[%s4950_s3 + $0x284] sm:$0xf] }
  0x42   : > { %1479 = vmatpush.bf16.msrb.mxu0 %v2549_v22  ;;  %v2566_v22 = vld [vmem:[%s4950_s3 + $0xb0] sm:$0xf0]  ;;  %v2869_v29 = vor.u32 %v3387_v27, %v2868_v26  ;;  %v3329_v2 = vld [vmem:[%s4950_s3 + $0x144] sm:$0xf]  ;;  %v3520_v38 = vld [vmem:[%s4949_s2] ss:$0 sm:$0xff] }
  0x43   : > { %1492 = vmatpush.bf16.msrb.mxu1 %v2677_v23  ;;  %v3381_v23 = vld [vmem:[%s4950_s3 + $0x2e4] sm:$0xf]  ;;  %v2569_v24 = vor.u32 %v3309_v21, %v2566_v22  ;;  %v2950_v58 = vld [vmem:[%s4950_s3 + $0x3b0] sm:$0xf0] }
  0x44   : > { %1505 = vmatpush.bf16.msrb.mxu2 %v2805_v31  ;;  %v2857_v28 = vor.u32 %v3381_v23, %v2854_v25  ;;  %v2694_v31 = vld [vmem:[%s4950_s3 + $0x1b0] sm:$0xf0]  ;;  %v3401_v4 = vld [vmem:[%s4950_s3 + $0x384] sm:$0xf] }
  0x45   : > { %1518 = vmatpush.bf16.msrb.mxu3 %v2933_v32  ;;  %v3413_v32 = vld [vmem:[%s4950_s3 + $0x3e4] sm:$0xf]  ;;  %v2697_v33 = vor.u32 %v3341_v30, %v2694_v31  ;;  %v2518_v61 = vld [vmem:[%s4950_s3 + $0x50] sm:$0xf0] }
  0x46   : > { %1480 = vmatpush.bf16.msrb.mxu0 %v2533_v34  ;;  %v2982_v34 = vld [vmem:[%s4950_s3 + $0x3f0] sm:$0xf0]  ;;  %v3397_v16 = vld [vmem:[%s4950_s3 + $0x364] sm:$0xf] }
  0x47   : > { %1493 = vmatpush.bf16.msrb.mxu1 %v2661_v35  ;;  %v2985_v35 = vor.u32 %v3413_v32, %v2982_v34  ;;  %v2806_v0 = vld [vmem:[%s4950_s3 + $0x290] sm:$0xf0]  ;;  %v3361_v22 = vld [vmem:[%s4950_s3 + $0x244] sm:$0xf] }
  0x48   : > { %1506 = vmatpush.bf16.msrb.mxu2 %v2789_v43  ;;  %v2678_v43 = vld [vmem:[%s4950_s3 + $0x190] sm:$0xf0]  ;;  %v2809_v1 = vor.u32 %v3369_v62, %v2806_v0  ;;  %v3321_v26 = vld [vmem:[%s4950_s3 + $0x104] sm:$0xf] }
  0x49   : > { %1519 = vmatpush.bf16.msrb.mxu3 %v2917_v44  ;;  %v3409_v44 = vld [vmem:[%s4950_s3 + $0x3c4] sm:$0xf]  ;;  %v2681_v45 = vor.u32 %v3337_v42, %v2678_v43  ;;  %v2646_v3 = vld [vmem:[%s4950_s3 + $0x150] sm:$0xf0] }
  0x4a   : > { %1481 = vmatpush.bf16.msrb.mxu0 %v2517_v46  ;;  %v2966_v46 = vld [vmem:[%s4950_s3 + $0x3d0] sm:$0xf0]  ;;  %v2649_v5 = vor.u32 %v3329_v2, %v2646_v3  ;;  %v3357_v32 = vld [vmem:[%s4950_s3 + $0x224] sm:$0xf]  ;;  %v3320_v2 = vld [vmem:[%s4950_s3 + $0xf4] sm:$0xf0] }
  0x4b   : > { %1494 = vmatpush.bf16.msrb.mxu1 %v2645_v47  ;;  %v2969_v47 = vor.u32 %v3409_v44, %v2966_v46  ;;  %v2918_v18 = vld [vmem:[%s4950_s3 + $0x370] sm:$0xf0]  ;;  %v3385_v42 = vld [vmem:[%s4950_s3 + $0x304] sm:$0xf] }
  0x4c   : > { %1507 = vmatpush.bf16.msrb.mxu2 %v2773_v56  ;;  %v3405_v56 = vld [vmem:[%s4950_s3 + $0x3a4] sm:$0xf]  ;;  %v2921_v19 = vor.u32 %v3397_v16, %v2918_v18  ;;  %v2486_v21 = vld [vmem:[%s4950_s3 + $0x10] sm:$0xf0]  ;;  %v2716_v16 = vld [vmem:[%s4950_s3 + $0x1c8] sm:$0xf] }
  0x4d   : > { %1520 = vmatpush.bf16.msrb.mxu3 %v2901_v57  ;;  %v2665_v57 = vor.u32 %v3333_v54, %v2662_v55  ;;  %v2614_v27 = vld [vmem:[%s4950_s3 + $0x110] sm:$0xf0] }
  0x4e   : > { %1482 = vmatpush.bf16.msrb.mxu0 %v2501_v59  ;;  %v2953_v59 = vor.u32 %v3405_v56, %v2950_v58  ;;  %v2902_v30 = vld [vmem:[%s4950_s3 + $0x350] sm:$0xf0] }
  0x4f   : > { %1495 = vmatpush.bf16.msrb.mxu1 %v2629_v60  ;;  %v3297_v60 = vld [vmem:[%s4950_s3 + $0x44] sm:$0xf]  ;;  %v2886_v36 = vld [vmem:[%s4950_s3 + $0x330] sm:$0xf0] }
  0x50   : > { %1508 = vmatpush.bf16.msrb.mxu2 %v2757_v6  ;;  %v2521_v63 = vor.u32 %v3297_v60, %v2518_v61  ;;  %v2934_v6 = vld [vmem:[%s4950_s3 + $0x390] sm:$0xf0] }
  0x51   : > { %1521 = vmatpush.bf16.msrb.mxu3 %v2885_v7  ;;  %v2937_v7 = vor.u32 %v3401_v4, %v2934_v6  ;;  %v2742_v40 = vld [vmem:[%s4950_s3 + $0x210] sm:$0xf0]  ;;  %v3352_v6 = vld [vmem:[%s4950_s3 + $0x1f4] sm:$0xf0] }
  0x52   : > { %1483 = vmatpush.bf16.msrb.mxu0 %v2485_v8  ;;  %v3293_v8 = vld [vmem:[%s4950_s3 + $0x24] sm:$0xf]  ;;  %v2870_v43 = vld [vmem:[%s4950_s3 + $0x310] sm:$0xf0] }
  0x53   : > { %1496 = vmatpush.bf16.msrb.mxu1 %v2613_v9  ;;  %v2502_v9 = vld [vmem:[%s4950_s3 + $0x30] sm:$0xf0] }
  0x54   : > { %1509 = vmatpush.bf16.msrb.mxu2 %v2741_v20  ;;  %v3289_v20 = vld [vmem:[%s4950_s3 + $0x4] sm:$0xf] }
  0x55   : > { %1522 = vmatpush.bf16.msrb.mxu3 %v2869_v29  ;;  %v2489_v23 = vor.u32 %v3289_v20, %v2486_v21  ;;  %v2617_v29 = vor.u32 %v3321_v26, %v2614_v27  ;;  %v3312_v20 = vld [vmem:[%s4950_s3 + $0xb4] sm:$0xf0] }
  0x56   : > { %1528 = vmatpush.bf16.msra.mxu0 %v2601_v10  ;;  %v3365_v10 = vld [vmem:[%s4950_s3 + $0x264] sm:$0xf]  ;;  %v3344_v27 = vld [vmem:[%s4950_s3 + $0x1b4] sm:$0xf0] }
  0x57   : > { %1541 = vmatpush.bf16.msra.mxu1 %v2729_v11  ;;  %v2505_v11 = vor.u32 %v3293_v8, %v2502_v9  ;;  %v2793_v13 = vor.u32 %v3365_v10, %v2790_v12  ;;  %v3316_v12 = vld [vmem:[%s4950_s3 + $0xd4] sm:$0xf0] }
  0x58   : > { %1554 = vmatpush.bf16.msra.mxu2 %v2857_v28  ;;  %v3393_v28 = vld [vmem:[%s4950_s3 + $0x344] sm:$0xf] }
  0x59   : > { %1567 = vmatpush.bf16.msra.mxu3 %v2985_v35  ;;  %v2905_v31 = vor.u32 %v3393_v28, %v2902_v30  ;;  %v3389_v35 = vld [vmem:[%s4950_s3 + $0x324] sm:$0xf]  ;;  %v2988_v28 = vld [vmem:[%s4950_s3 + $0x3e8] sm:$0xf] }
  0x5a   : > { %1529 = vmatpush.bf16.msra.mxu0 %v2585_v14  ;;  %v3325_v14 = vld [vmem:[%s4950_s3 + $0x124] sm:$0xf]  ;;  %v2889_v37 = vor.u32 %v3389_v35, %v2886_v36  ;;  %v2844_v36 = vld [vmem:[%s4950_s3 + $0x2c8] sm:$0xf] }
  0x5b   : > { %1542 = vmatpush.bf16.msra.mxu1 %v2713_v17  ;;  %v2633_v17 = vor.u32 %v3325_v14, %v2630_v15 }
  0x5c   : > { %1555 = vmatpush.bf16.msra.mxu2 %v2841_v41 }
  0x5d   : > { %1568 = vmatpush.bf16.msra.mxu3 %v2969_v47 }
  0x5e   : > { %1530 = vmatpush.bf16.msra.mxu0 %v2569_v24  ;;  %v2774_v24 = vld [vmem:[%s4950_s3 + $0x250] sm:$0xf0] }
  0x5f   : > { %1543 = vmatpush.bf16.msra.mxu1 %v2697_v33  ;;  %v2777_v25 = vor.u32 %v3361_v22, %v2774_v24  ;;  %v2758_v33 = vld [vmem:[%s4950_s3 + $0x230] sm:$0xf0]  ;;  %v2860_v22 = vld [vmem:[%s4950_s3 + $0x2e8] sm:$0xf] }
  0x60   : > { %1556 = vmatpush.bf16.msra.mxu2 %v2825_v53  ;;  %v2761_v34 = vor.u32 %v3357_v32, %v2758_v33  ;;  %v2556_v32 = vld [vmem:[%s4950_s3 + $0x88] sm:$0xf]  ;;  %v3308_v33 = vld [vmem:[%s4950_s3 + $0x94] sm:$0xf0] }
  0x61   : > { %1569 = vmatpush.bf16.msra.mxu3 %v2953_v59 }
  0x62   : > { %1531 = vmatpush.bf16.msra.mxu0 %v2553_v39  ;;  %v3353_v39 = vld [vmem:[%s4950_s3 + $0x204] sm:$0xf] }
  0x63   : > { %1544 = vmatpush.bf16.msra.mxu1 %v2681_v45  ;;  %v2745_v41 = vor.u32 %v3353_v39, %v2742_v40  ;;  %v2873_v45 = vor.u32 %v3385_v42, %v2870_v43  ;;  %v2684_v40 = vld [vmem:[%s4950_s3 + $0x188] sm:$0xf]  ;;  %v3340_v42 = vld [vmem:[%s4950_s3 + $0x194] sm:$0xf0] }
  0x64   : > { %1557 = vmatpush.bf16.msra.mxu2 %v2809_v1  ;;  %v2604_v1 = vld [vmem:[%s4950_s3 + $0xe8] sm:$0xf] }
  0x65   : > { %1570 = vmatpush.bf16.msra.mxu3 %v2937_v7  ;;  %v2605_v7 = vor.u32 %v3320_v2, %v2604_v1  ;;  %v2972_v43 = vld [vmem:[%s4950_s3 + $0x3c8] sm:$0xf]  ;;  %v3332_v2 = vld [vmem:[%s4950_s3 + $0x154] sm:$0xf0] }
  0x66   : > { %1532 = vmatpush.bf16.msra.mxu0 %v2537_v51  ;;  %v2652_v1 = vld [vmem:[%s4950_s3 + $0x148] sm:$0xf] }
  0x67   : > { %1545 = vmatpush.bf16.msra.mxu1 %v2665_v57 }
  0x68   : > { %1558 = vmatpush.bf16.msra.mxu2 %v2793_v13 }
  0x69   : > { %1571 = vmatpush.bf16.msra.mxu3 %v2921_v19  ;;  %v2572_v19 = vld [vmem:[%s4950_s3 + $0xa8] sm:$0xf] }
  0x6a   : > { %1533 = vmatpush.bf16.msra.mxu0 %v2521_v63  ;;  %v2573_v30 = vor.u32 %v3312_v20, %v2572_v19 }
  0x6b   : > { %1546 = vmatpush.bf16.msra.mxu1 %v2649_v5  ;;  %v2732_v5 = vld [vmem:[%s4950_s3 + $0x1e8] sm:$0xf] }
  0x6c   : > { %1559 = vmatpush.bf16.msra.mxu2 %v2777_v25  ;;  %v2733_v13 = vor.u32 %v3352_v6, %v2732_v5  ;;  %v2700_v25 = vld [vmem:[%s4950_s3 + $0x1a8] sm:$0xf] }
  0x6d   : > { %1572 = vmatpush.bf16.msra.mxu3 %v2905_v31 }
  0x6e   : > { %1534 = vmatpush.bf16.msra.mxu0 %v2505_v11  ;;  %v2588_v11 = vld [vmem:[%s4950_s3 + $0xc8] sm:$0xf] }
  0x6f   : > { %1547 = vmatpush.bf16.msra.mxu1 %v2633_v17  ;;  %v3348_v17 = vld [vmem:[%s4950_s3 + $0x1d4] sm:$0xf0]  ;;  %v2589_v18 = vor.u32 %v3316_v12, %v2588_v11  ;;  %v2653_v12 = vor.u32 %v3332_v2, %v2652_v1  ;;  %v2702_v1 = vld [vmem:[%s4950_s3 + $0x1b8] sm:$0xf0]  ;;  %v3414_v2 = vld [vmem:[%s4950_s3 + $0x3ec] sm:$0xf] }
  0x70   : > { %1560 = vmatpush.bf16.msra.mxu2 %v2761_v34  ;;  %v2717_v24 = vor.u32 %v3348_v17, %v2716_v16  ;;  %v3368_v11 = vld [vmem:[%s4950_s3 + $0x274] sm:$0xf0]  ;;  %v2924_v17 = vld [vmem:[%s4950_s3 + $0x368] sm:$0xf] }
  0x71   : > { %1573 = vmatpush.bf16.msra.mxu3 %v2889_v37  ;;  %v3380_v37 = vld [vmem:[%s4950_s3 + $0x2d4] sm:$0xf0] }
  0x72   : > { %1535 = vmatpush.bf16.msra.mxu0 %v2489_v23  ;;  %v3384_v23 = vld [vmem:[%s4950_s3 + $0x2f4] sm:$0xf0] }
  0x73   : > { %1548 = vmatpush.bf16.msra.mxu1 %v2617_v29  ;;  %v3416_v29 = vld [vmem:[%s4950_s3 + $0x3f4] sm:$0xf0]  ;;  %v2861_v31 = vor.u32 %v3384_v23, %v2860_v22  ;;  %v2780_v23 = vld [vmem:[%s4950_s3 + $0x248] sm:$0xf] }
  0x74   : > { %1561 = vmatpush.bf16.msra.mxu2 %v2745_v41  ;;  %v2989_v39 = vor.u32 %v3416_v29, %v2988_v28  ;;  %v3328_v16 = vld [vmem:[%s4950_s3 + $0x134] sm:$0xf0]  ;;  %v2606_v28 = vld [vmem:[%s4950_s3 + $0xf8] sm:$0xf0]  ;;  %v2620_v29 = vld [vmem:[%s4950_s3 + $0x108] sm:$0xf] }
  0x75   : > { %1574 = vmatpush.bf16.msra.mxu3 %v2873_v45  ;;  %v2557_v45 = vor.u32 %v3308_v33, %v2556_v32  ;;  %v3292_v22 = vld [vmem:[%s4950_s3 + $0x14] sm:$0xf0] }
  0x76   : > { %v3396_v32 = vld [vmem:[%s4950_s3 + $0x354] sm:$0xf0] }
  0xb2   : > { %v623_v44 = vpop.f32.mrf.mxu0 }
  0xb3   : > { %v624_v46 = vadd.f32 %v3520_v38, %v623_v44  ;;  %v637_v47 = vpop.f32.mrf.mxu1  ;;  %v3412_v44 = vld [vmem:[%s4950_s3 + $0x3d4] sm:$0xf0] }
  0xb5   : > { %v638_v48 = vadd.f32 %v637_v47, %v624_v46  ;;  %v2845_v46 = vor.u32 %v3380_v37, %v2844_v36  ;;  %v2540_v47 = vld [vmem:[%s4950_s3 + $0x68] sm:$0xf]  ;;  %v3350_v36 = vld [vmem:[%s4950_s3 + $0x1ec] sm:$0xf]  ;;  %v2734_v37 = vld [vmem:[%s4950_s3 + $0x1f8] sm:$0xf0] }
  0xba   : > { %v651_v49 = vpop.f32.mrf.mxu2  ;;  %v625_v52 = vpop.f32.mrf.mxu0 }
  0xbb   : > { %v665_v50 = vpop.f32.mrf.mxu3  ;;  %v652_v51 = vadd.f32 %v651_v49, %v638_v48  ;;  %v626_v54 = vadd.f32 %v3520_v38, %v625_v52  ;;  %v639_v56 = vpop.f32.mrf.mxu1  ;;  %v2701_v38 = vor.u32 %v3344_v27, %v2700_v25  ;;  %v3304_v48 = vld [vmem:[%s4950_s3 + $0x74] sm:$0xf0]  ;;  %v2828_v49 = vld [vmem:[%s4950_s3 + $0x2a8] sm:$0xf]  ;;  %v2973_v52 = vor.u32 %v3412_v44, %v2972_v43  ;;  %v3318_v27 = vld [vmem:[%s4950_s3 + $0xec] sm:$0xf] }
  0xbc   : > { %v3314_v44 = vld [vmem:[%s4950_s3 + $0xcc] sm:$0xf] }
  0xbd   : > { %v666_v53 = vadd.f32 %v665_v50, %v652_v51  ;;  %v640_v58 = vadd.f32 %v639_v56, %v626_v54  ;;  %v3376_v50 = vld [vmem:[%s4950_s3 + $0x2b4] sm:$0xf0]  ;;  %v2685_v51 = vor.u32 %v3340_v42, %v2684_v40 }
  0xbe   : > { %v3336_v54 = vld [vmem:[%s4950_s3 + $0x174] sm:$0xf0] }
  0xbf   : > { %v670_v55 = vmax.f32 %v666_v53, 0.0  ;;  %v2668_v53 = vld [vmem:[%s4950_s3 + $0x168] sm:$0xf]  ;;  %v3408_v56 = vld [vmem:[%s4950_s3 + $0x3b4] sm:$0xf0] }
  0xc0   : > { %v3360_v40 = vld [vmem:[%s4950_s3 + $0x234] sm:$0xf0] }
  0xc1   : > { %v673_v57 = vrot.slane %v670_v55, 1 }
  0xc2   : > { %v653_v59 = vpop.f32.mrf.mxu2 }
  0xc3   : > { %v675_v60 = vmax.f32 %v670_v55, %v673_v57  ;;  %v654_v61 = vadd.f32 %v653_v59, %v640_v58  ;;  %v667_v62 = vpop.f32.mrf.mxu3  ;;  %v2956_v55 = vld [vmem:[%s4950_s3 + $0x3a8] sm:$0xf]  ;;  %v2541_v57 = vor.u32 %v3304_v48, %v2540_v47  ;;  %v2829_v58 = vor.u32 %v3376_v50, %v2828_v49  ;;  %v3392_v48 = vld [vmem:[%s4950_s3 + $0x334] sm:$0xf0]  ;;  %v3346_v50 = vld [vmem:[%s4950_s3 + $0x1cc] sm:$0xf] }
  0xc4   : > { %v2524_v59 = vld [vmem:[%s4950_s3 + $0x48] sm:$0xf] }
  0xc5   : > { %v677_v63 = vrot.slane %v675_v60, 4  ;;  %v668_v0 = vadd.f32 %v667_v62, %v654_v61  ;;  %v2812_v61 = vld [vmem:[%s4950_s3 + $0x288] sm:$0xf]  ;;  %v3372_v62 = vld [vmem:[%s4950_s3 + $0x294] sm:$0xf0] }
  0xc6   : > { %v2813_v6 = vor.u32 %v3372_v62, %v2812_v61  ;;  %v2892_v47 = vld [vmem:[%s4950_s3 + $0x328] sm:$0xf]  ;;  %v3388_v62 = vld [vmem:[%s4950_s3 + $0x314] sm:$0xf0] }
  0xc7   : > { %v679_v3 = vmax.f32 %v675_v60, %v677_v63  ;;  %v671_v4 = vmax.f32 %v668_v0, 0.0  ;;  %v3300_v60 = vld [vmem:[%s4950_s3 + $0x54] sm:$0xf0]  ;;  %v2669_v63 = vor.u32 %v3336_v54, %v2668_v53  ;;  %v2957_v0 = vor.u32 %v3408_v56, %v2956_v55  ;;  %v2748_v53 = vld [vmem:[%s4950_s3 + $0x208] sm:$0xf] }
  0xc8   : > { %v2525_v5 = vor.u32 %v3300_v60, %v2524_v59  ;;  %v3356_v54 = vld [vmem:[%s4950_s3 + $0x214] sm:$0xf0]  ;;  %v3310_v55 = vld [vmem:[%s4950_s3 + $0xac] sm:$0xf]  ;;  %v2893_v56 = vor.u32 %v3392_v48, %v2892_v47  ;;  %v2862_v59 = vld [vmem:[%s4950_s3 + $0x2f8] sm:$0xf0] }
  0xc9   : > { %v689_v8 = vrot.slane %v679_v3, 2  ;;  %v4183_v9 = vpack.c.bf16 %v679_v3, %v679_v3  ;;  %v681_v10 = vrot.slane %v671_v4, 1  ;;  %v2940_v3 = vld [vmem:[%s4950_s3 + $0x388] sm:$0xf]  ;;  %v3294_v47 = vld [vmem:[%s4950_s3 + $0x2c] sm:$0xf] }
  0xca   : > { %v2876_v61 = vld [vmem:[%s4950_s3 + $0x308] sm:$0xf]  ;;  %v2510_v48 = vld [vmem:[%s4950_s3 + $0x38] sm:$0xf0] }
  0xcb   : > { %v683_v14 = vmax.f32 %v671_v4, %v681_v10  ;;  %1484 = vmatmul.bf16.vlgmr.msrb.gmra.mxu0 %v4183_v9  ;;  %v4192_v15 = vpack.c.bf16 %v689_v8, %v689_v8  ;;  %v3404_v4 = vld [vmem:[%s4950_s3 + $0x394] sm:$0xf0]  ;;  %v2796_v10 = vld [vmem:[%s4950_s3 + $0x268] sm:$0xf] }
  0xcc   : > { %1580 = vmatpush.bf16.msrb.mxu0 %v2605_v7  ;;  %v2508_v7 = vld [vmem:[%s4950_s3 + $0x28] sm:$0xf]  ;;  %v3296_v8 = vld [vmem:[%s4950_s3 + $0x34] sm:$0xf0]  ;;  %v2797_v20 = vor.u32 %v3368_v11, %v2796_v10  ;;  %v3378_v10 = vld [vmem:[%s4950_s3 + $0x2cc] sm:$0xf] }
  0xcd   : > { %v685_v21 = vrot.slane %v683_v14, 4  ;;  %1497 = vmatmul.bf16.vlgmr.msrb.gmra.mxu1 %v4192_v15  ;;  %v2509_v19 = vor.u32 %v3296_v8, %v2508_v7  ;;  %v2877_v7 = vor.u32 %v3388_v62, %v2876_v61  ;;  %v2558_v8 = vld [vmem:[%s4950_s3 + $0x98] sm:$0xf0]  ;;  %v3362_v61 = vld [vmem:[%s4950_s3 + $0x24c] sm:$0xf] }
  0xce   : > { %1593 = vmatpush.bf16.msrb.mxu1 %v2733_v13  ;;  %v2941_v13 = vor.u32 %v3404_v4, %v2940_v3  ;;  %v2990_v3 = vld [vmem:[%s4950_s3 + $0x3f8] sm:$0xf0] }
  0xcf   : > { %v687_v26 = vmax.f32 %v683_v14, %v685_v21  ;;  %v2636_v14 = vld [vmem:[%s4950_s3 + $0x128] sm:$0xf]  ;;  %v2846_v11 = vld [vmem:[%s4950_s3 + $0x2d8] sm:$0xf0] }
  0xd0   : > { %1581 = vmatpush.bf16.msrb.mxu0 %v2589_v18  ;;  %v3400_v18 = vld [vmem:[%s4950_s3 + $0x374] sm:$0xf0]  ;;  %v2492_v21 = vld [vmem:[%s4950_s3 + $0x8] sm:$0xf]  ;;  %v2637_v25 = vor.u32 %v3328_v16, %v2636_v14  ;;  %v3338_v14 = vld [vmem:[%s4950_s3 + $0x18c] sm:$0xf] }
  0xd1   : > { %v692_v34 = vrot.slane %v687_v26, 2  ;;  %v4231_v35 = vpack.c.bf16 %v687_v26, %v687_v26  ;;  %v2925_v26 = vor.u32 %v3400_v18, %v2924_v17  ;;  %v2493_v33 = vor.u32 %v3292_v22, %v2492_v21  ;;  %v2686_v16 = vld [vmem:[%s4950_s3 + $0x198] sm:$0xf0]  ;;  %v3410_v17 = vld [vmem:[%s4950_s3 + $0x3cc] sm:$0xf] }
  0xd2   : > { %1594 = vmatpush.bf16.msrb.mxu1 %v2717_v24  ;;  %v3364_v24 = vld [vmem:[%s4950_s3 + $0x254] sm:$0xf0]  ;;  %v2974_v18 = vld [vmem:[%s4950_s3 + $0x3d8] sm:$0xf0]  ;;  %v3302_v21 = vld [vmem:[%s4950_s3 + $0x6c] sm:$0xf] }
  0xd3   : > { %1510 = vmatmul.bf16.vlgmr.msrb.gmra.mxu2 %v4231_v35  ;;  %v4243_v41 = vpack.c.bf16 %v692_v34, %v692_v34  ;;  %v2781_v34 = vor.u32 %v3364_v24, %v2780_v23  ;;  %v2542_v22 = vld [vmem:[%s4950_s3 + $0x78] sm:$0xf0]  ;;  %v3374_v23 = vld [vmem:[%s4950_s3 + $0x2ac] sm:$0xf] }
  0xd4   : > { %1582 = vmatpush.bf16.msrb.mxu0 %v2573_v30  ;;  %1606 = vmatpush.bf16.msrb.mxu2 %v2861_v31  ;;  %v3324_v30 = vld [vmem:[%s4950_s3 + $0x114] sm:$0xf0]  ;;  %v2908_v31 = vld [vmem:[%s4950_s3 + $0x348] sm:$0xf]  ;;  %v2830_v24 = vld [vmem:[%s4950_s3 + $0x2b8] sm:$0xf0] }
  0xd5   : > { %1523 = vmatmul.bf16.vlgmr.msrb.gmra.mxu3 %v4243_v41  ;;  %v2621_v42 = vor.u32 %v3324_v30, %v2620_v29  ;;  %v2909_v43 = vor.u32 %v3396_v32, %v2908_v31  ;;  %v3406_v29 = vld [vmem:[%s4950_s3 + $0x3ac] sm:$0xf]  ;;  %v2958_v30 = vld [vmem:[%s4950_s3 + $0x3b8] sm:$0xf0]  ;;  %v2545_v31 = vor.u32 %v3302_v21, %v2542_v22  ;;  %v2833_v32 = vor.u32 %v3374_v23, %v2830_v24 }
  0xd6   : > { %1595 = vmatpush.bf16.msrb.mxu1 %v2701_v38  ;;  %1619 = vmatpush.bf16.msrb.mxu3 %v2989_v39  ;;  %v2609_v38 = vor.u32 %v3318_v27, %v2606_v28  ;;  %v2764_v39 = vld [vmem:[%s4950_s3 + $0x228] sm:$0xf]  ;;  %v3334_v27 = vld [vmem:[%s4950_s3 + $0x16c] sm:$0xf]  ;;  %v2670_v28 = vld [vmem:[%s4950_s3 + $0x178] sm:$0xf0] }
  0xd7   : > { %v2765_v49 = vor.u32 %v3360_v40, %v2764_v39  ;;  %v2961_v39 = vor.u32 %v3406_v29, %v2958_v30  ;;  %v3330_v40 = vld [vmem:[%s4950_s3 + $0x14c] sm:$0xf]  ;;  %v2782_v62 = vld [vmem:[%s4950_s3 + $0x258] sm:$0xf0] }
  0xd8   : > { %1583 = vmatpush.bf16.msrb.mxu0 %v2557_v45  ;;  %1607 = vmatpush.bf16.msrb.mxu2 %v2845_v46  ;;  %v2590_v45 = vld [vmem:[%s4950_s3 + $0xd8] sm:$0xf0]  ;;  %v2737_v46 = vor.u32 %v3350_v36, %v2734_v37  ;;  %v3370_v36 = vld [vmem:[%s4950_s3 + $0x28c] sm:$0xf] }
  0xd9   : > { %v2814_v37 = vld [vmem:[%s4950_s3 + $0x298] sm:$0xf0] }
  0xda   : > { %1596 = vmatpush.bf16.msrb.mxu1 %v2685_v51  ;;  %1620 = vmatpush.bf16.msrb.mxu3 %v2973_v52  ;;  %v2718_v51 = vld [vmem:[%s4950_s3 + $0x1d8] sm:$0xf0]  ;;  %v2593_v52 = vor.u32 %v3314_v44, %v2590_v45 }
  0xdb   : > { %1536 = vmatmul.bf16.vlgmr.msra.gmra.mxu0 %v4183_v9  ;;  %v2721_v60 = vor.u32 %v3346_v50, %v2718_v51  ;;  %v2942_v44 = vld [vmem:[%s4950_s3 + $0x398] sm:$0xf0] }
  0xdc   : > { %1584 = vmatpush.bf16.msrb.mxu0 %v2541_v57  ;;  %1608 = vmatpush.bf16.msrb.mxu2 %v2829_v58  ;;  %v2574_v57 = vld [vmem:[%s4950_s3 + $0xb8] sm:$0xf0]  ;;  %v3382_v58 = vld [vmem:[%s4950_s3 + $0x2ec] sm:$0xf] }
  0xdd   : > { %1549 = vmatmul.bf16.vlgmr.msra.gmra.mxu1 %v4192_v15  ;;  %v2577_v4 = vor.u32 %v3310_v55, %v2574_v57  ;;  %v2798_v50 = vld [vmem:[%s4950_s3 + $0x278] sm:$0xf0]  ;;  %v3398_v55 = vld [vmem:[%s4950_s3 + $0x36c] sm:$0xf]  ;;  %v2513_v57 = vor.u32 %v3294_v47, %v2510_v48 }
  0xde   : > { %1597 = vmatpush.bf16.msrb.mxu1 %v2669_v63  ;;  %1621 = vmatpush.bf16.msrb.mxu3 %v2957_v0  ;;  %v3342_v63 = vld [vmem:[%s4950_s3 + $0x1ac] sm:$0xf]  ;;  %v2749_v0 = vor.u32 %v3356_v54, %v2748_v53  ;;  %v2638_v54 = vld [vmem:[%s4950_s3 + $0x138] sm:$0xf0] }
  0xdf   : > { %v3326_v53 = vld [vmem:[%s4950_s3 + $0x12c] sm:$0xf] }
  0xe0   : > { %1585 = vmatpush.bf16.msrb.mxu0 %v2525_v5  ;;  %1609 = vmatpush.bf16.msrb.mxu2 %v2813_v6  ;;  %v2865_v5 = vor.u32 %v3382_v58, %v2862_v59  ;;  %v3306_v6 = vld [vmem:[%s4950_s3 + $0x8c] sm:$0xf] }
  0xe1   : > { %v3290_v59 = vld [vmem:[%s4950_s3 + $0xc] sm:$0xf] }
  0xe2   : > { %1598 = vmatpush.bf16.msrb.mxu1 %v2653_v12  ;;  %1622 = vmatpush.bf16.msrb.mxu3 %v2941_v13  ;;  %v2705_v12 = vor.u32 %v3342_v63, %v2702_v1  ;;  %v2993_v13 = vor.u32 %v3414_v2, %v2990_v3  ;;  %v2641_v63 = vor.u32 %v3326_v53, %v2638_v54  ;;  %v3322_v1 = vld [vmem:[%s4950_s3 + $0x10c] sm:$0xf]  ;;  %v2622_v2 = vld [vmem:[%s4950_s3 + $0x118] sm:$0xf0]  ;;  %v3094_v53 = vld [vmem:[%s4952_s5 + $0xd0] sm:$0xf0] }
  0xe3   : > { %1562 = vmatmul.bf16.vlgmr.msra.gmra.mxu2 %v4231_v35  ;;  %v3394_v3 = vld [vmem:[%s4950_s3 + $0x34c] sm:$0xf]  ;;  %v3100_v54 = vld [vmem:[%s4952_s5 + $0xc8] sm:$0xf] }
  0xe4   : > { %1586 = vmatpush.bf16.msrb.mxu0 %v2509_v19  ;;  %1610 = vmatpush.bf16.msrb.mxu2 %v2797_v20  ;;  %v2561_v19 = vor.u32 %v3306_v6, %v2558_v8  ;;  %v2849_v20 = vor.u32 %v3378_v10, %v2846_v11  ;;  %v2785_v6 = vor.u32 %v3362_v61, %v2782_v62  ;;  %v2766_v8 = vld [vmem:[%s4950_s3 + $0x238] sm:$0xf0]  ;;  %v3076_v62 = vld [vmem:[%s4952_s5 + $0xa0] sm:$0xf] }
  0xe5   : > { %1575 = vmatmul.bf16.vlgmr.msra.gmra.mxu3 %v4243_v41  ;;  %v2625_v10 = vor.u32 %v3322_v1, %v2622_v2  ;;  %v3078_v2 = vld [vmem:[%s4952_s5 + $0xb0] sm:$0xf0] }
  0xe6   : > { %1599 = vmatpush.bf16.msrb.mxu1 %v2637_v25  ;;  %1623 = vmatpush.bf16.msrb.mxu3 %v2925_v26  ;;  %v2689_v25 = vor.u32 %v3338_v14, %v2686_v16  ;;  %v2977_v26 = vor.u32 %v3410_v17, %v2974_v18  ;;  %v3354_v16 = vld [vmem:[%s4950_s3 + $0x20c] sm:$0xf]  ;;  %v2750_v17 = vld [vmem:[%s4950_s3 + $0x218] sm:$0xf0] }
  0xe7   : > { %v2753_v21 = vor.u32 %v3354_v16, %v2750_v17  ;;  %v3435_v16 = vld [vmem:[%s4952_s5 + $0x8c] sm:$0xf0]  ;;  %v3433_v17 = vld [vmem:[%s4952_s5 + $0x84] sm:$0xf] }
  0xe8   : > { %1587 = vmatpush.bf16.msrb.mxu0 %v2493_v33  ;;  %1611 = vmatpush.bf16.msrb.mxu2 %v2781_v34  ;;  %v3298_v33 = vld [vmem:[%s4950_s3 + $0x4c] sm:$0xf]  ;;  %v2526_v34 = vld [vmem:[%s4950_s3 + $0x58] sm:$0xf0] }
  0xe9   : > { %v2529_v45 = vor.u32 %v3298_v33, %v2526_v34  ;;  %v3447_v33 = vld [vmem:[%s4952_s5 + $0xec] sm:$0xf0]  ;;  %v3445_v34 = vld [vmem:[%s4952_s5 + $0xe4] sm:$0xf] }
  0xea   : > { %1600 = vmatpush.bf16.msrb.mxu1 %v2621_v42  ;;  %1624 = vmatpush.bf16.msrb.mxu3 %v2909_v43  ;;  %v2654_v42 = vld [vmem:[%s4950_s3 + $0x158] sm:$0xf0]  ;;  %v3402_v43 = vld [vmem:[%s4950_s3 + $0x38c] sm:$0xf] }
  0xeb   : > { %1588 = vmatmul.bf16.vlgmr.msrb.gmra.mxu0 %v4183_v9  ;;  %v2657_v51 = vor.u32 %v3330_v40, %v2654_v42 }
  0xec   : > { %1632 = vmatpush.bf16.msra.mxu0 %v2609_v38  ;;  %1612 = vmatpush.bf16.msrb.mxu2 %v2765_v49  ;;  %v2673_v38 = vor.u32 %v3334_v27, %v2670_v28  ;;  %v3366_v49 = vld [vmem:[%s4950_s3 + $0x26c] sm:$0xf] }
  0xed   : > { %1601 = vmatmul.bf16.vlgmr.msrb.gmra.mxu1 %v4192_v15  ;;  %v2801_v58 = vor.u32 %v3366_v49, %v2798_v50  ;;  %v3092_v49 = vld [vmem:[%s4952_s5 + $0xc0] sm:$0xf]  ;;  %v3443_v50 = vld [vmem:[%s4952_s5 + $0xcc] sm:$0xf0] }
  0xee   : > { %1645 = vmatpush.bf16.msra.mxu1 %v2737_v46  ;;  %1625 = vmatpush.bf16.msrb.mxu3 %v2893_v56  ;;  %v2817_v46 = vor.u32 %v3370_v36, %v2814_v37  ;;  %v2926_v56 = vld [vmem:[%s4950_s3 + $0x378] sm:$0xf0]  ;;  %v3110_v37 = vld [vmem:[%s4952_s5 + $0xf0] sm:$0xf0] }
  0xf0   : > { %1633 = vmatpush.bf16.msra.mxu0 %v2593_v52  ;;  %1613 = vmatpush.bf16.msrb.mxu2 %v2749_v0  ;;  %v2945_v52 = vor.u32 %v3402_v43, %v2942_v44  ;;  %v2929_v0 = vor.u32 %v3398_v55, %v2926_v56  ;;  %v3113_v43 = vor.u32 %v3445_v34, %v3110_v37  ;;  %v3444_v55 = vld [vmem:[%s4952_s5 + $0xd4] sm:$0xf0]  ;;  %v3046_v34 = vld [vmem:[%s4952_s5 + $0x70] sm:$0xf0] }
  0xf1   : > { %v3432_v37 = vld [vmem:[%s4952_s5 + $0x74] sm:$0xf0] }
  0xf2   : > { %1646 = vmatpush.bf16.msra.mxu1 %v2721_v60  ;;  %1626 = vmatpush.bf16.msrb.mxu3 %v2877_v7  ;;  %v2494_v60 = vld [vmem:[%s4950_s3 + $0x18] sm:$0xf0]  ;;  %v3358_v7 = vld [vmem:[%s4950_s3 + $0x22c] sm:$0xf] }
  0xf3   : > { %1614 = vmatmul.bf16.vlgmr.msrb.gmra.mxu2 %v4231_v35  ;;  %v2769_v14 = vor.u32 %v3358_v7, %v2766_v8 }
  0xf4   : > { %1634 = vmatpush.bf16.msra.mxu0 %v2577_v4  ;;  %1658 = vmatpush.bf16.msra.mxu2 %v2865_v5  ;;  %v2910_v4 = vld [vmem:[%s4950_s3 + $0x358] sm:$0xf0]  ;;  %v2497_v5 = vor.u32 %v3290_v59, %v2494_v60 }
  0xf5   : > { %1627 = vmatmul.bf16.vlgmr.msrb.gmra.mxu3 %v4243_v41  ;;  %v2913_v11 = vor.u32 %v3394_v3, %v2910_v4  ;;  %v3102_v59 = vld [vmem:[%s4952_s5 + $0xd8] sm:$0xf0]  ;;  %v3084_v3 = vld [vmem:[%s4952_s5 + $0xa8] sm:$0xf]  ;;  %v3440_v4 = vld [vmem:[%s4952_s5 + $0xb4] sm:$0xf0] }
  0xf6   : > { %1647 = vmatpush.bf16.msra.mxu1 %v2705_v12  ;;  %1671 = vmatpush.bf16.msra.mxu3 %v2993_v13  ;;  %v3390_v12 = vld [vmem:[%s4950_s3 + $0x32c] sm:$0xf]  ;;  %v2894_v13 = vld [vmem:[%s4950_s3 + $0x338] sm:$0xf0]  ;;  %v3085_v8 = vor.u32 %v3440_v4, %v3084_v3  ;;  %v3424_v3 = vld [vmem:[%s4952_s5 + $0x34] sm:$0xf0] }
  0xf7   : > { %v2897_v18 = vor.u32 %v3390_v12, %v2894_v13 }
  0xf8   : > { %1635 = vmatpush.bf16.msra.mxu0 %v2561_v19  ;;  %1659 = vmatpush.bf16.msra.mxu2 %v2849_v20  ;;  %v3386_v19 = vld [vmem:[%s4950_s3 + $0x30c] sm:$0xf]  ;;  %v2878_v20 = vld [vmem:[%s4950_s3 + $0x318] sm:$0xf0] }
  0xf9   : > { %v2881_v22 = vor.u32 %v3386_v19, %v2878_v20  ;;  %v3062_v19 = vld [vmem:[%s4952_s5 + $0x90] sm:$0xf0]  ;;  %v3068_v20 = vld [vmem:[%s4952_s5 + $0x88] sm:$0xf] }
  0xfa   : > { %1648 = vmatpush.bf16.msra.mxu1 %v2689_v25  ;;  %1672 = vmatpush.bf16.msra.mxu3 %v2977_v26 }
  0xfc   : > { %1636 = vmatpush.bf16.msra.mxu0 %v2545_v31  ;;  %1660 = vmatpush.bf16.msra.mxu2 %v2833_v32  ;;  %v3108_v32 = vld [vmem:[%s4952_s5 + $0xe0] sm:$0xf] }
  0xfd   : > { %v3109_v36 = vor.u32 %v3447_v33, %v3108_v32  ;;  %v3429_v32 = vld [vmem:[%s4952_s5 + $0x64] sm:$0xf] }
  0xfe   : > { %1649 = vmatpush.bf16.msra.mxu1 %v2673_v38  ;;  %1673 = vmatpush.bf16.msra.mxu3 %v2961_v39  ;;  %v3116_v38 = vld [vmem:[%s4952_s5 + $0xe8] sm:$0xf]  ;;  %v3448_v39 = vld [vmem:[%s4952_s5 + $0xf4] sm:$0xf0] }
  0xff   : > { %v3117_v44 = vor.u32 %v3448_v39, %v3116_v38 }
 0x100   : > { %1637 = vmatpush.bf16.msra.mxu0 %v2529_v45  ;;  %1661 = vmatpush.bf16.msra.mxu2 %v2817_v46  ;;  %v3446_v45 = vld [vmem:[%s4952_s5 + $0xec] sm:$0xf]  ;;  %v3118_v46 = vld [vmem:[%s4952_s5 + $0xf8] sm:$0xf0] }
 0x101   : > { %v3121_v47 = vor.u32 %v3446_v45, %v3118_v46 }
 0x102   : > { %1650 = vmatpush.bf16.msra.mxu1 %v2657_v51  ;;  %1674 = vmatpush.bf16.msra.mxu3 %v2945_v52  ;;  %v3441_v51 = vld [vmem:[%s4952_s5 + $0xc4] sm:$0xf]  ;;  %v3093_v52 = vor.u32 %v3443_v50, %v3092_v49 }
 0x103   : > { %v3097_v56 = vor.u32 %v3441_v51, %v3094_v53  ;;  %v3425_v49 = vld [vmem:[%s4952_s5 + $0x44] sm:$0xf]  ;;  %v3030_v51 = vld [vmem:[%s4952_s5 + $0x50] sm:$0xf0]  ;;  %v3428_v53 = vld [vmem:[%s4952_s5 + $0x54] sm:$0xf0] }
 0x104   : > { %1638 = vmatpush.bf16.msra.mxu0 %v2513_v57  ;;  %1662 = vmatpush.bf16.msra.mxu2 %v2801_v58  ;;  %v3101_v57 = vor.u32 %v3444_v55, %v3100_v54  ;;  %v3442_v58 = vld [vmem:[%s4952_s5 + $0xcc] sm:$0xf]  ;;  %v3033_v54 = vor.u32 %v3425_v49, %v3030_v51 }
 0x105   : > { %v3105_v60 = vor.u32 %v3442_v58, %v3102_v59  ;;  %v3012_v59 = vld [vmem:[%s4952_s5 + $0x20] sm:$0xf]  ;;  %v3478_v49 = vld [vmem:[%s4954_s7 + $0xe8] sm:$0xff] }
 0x106   : > { %1651 = vmatpush.bf16.msra.mxu1 %v2641_v63  ;;  %1675 = vmatpush.bf16.msra.mxu3 %v2929_v0  ;;  %v3439_v63 = vld [vmem:[%s4952_s5 + $0xac] sm:$0xf0]  ;;  %v3437_v0 = vld [vmem:[%s4952_s5 + $0xa4] sm:$0xf] }
 0x107   : > { %v3077_v1 = vor.u32 %v3439_v63, %v3076_v62  ;;  %v3081_v7 = vor.u32 %v3437_v0, %v3078_v2  ;;  %v3421_v62 = vld [vmem:[%s4952_s5 + $0x24] sm:$0xf]  ;;  %v3020_v2 = vld [vmem:[%s4952_s5 + $0x28] sm:$0xf] }
 0x108   : > { %1639 = vmatpush.bf16.msra.mxu0 %v2497_v5  ;;  %1663 = vmatpush.bf16.msra.mxu2 %v2785_v6 }
 0x10a   : > { %1652 = vmatpush.bf16.msra.mxu1 %v2625_v10  ;;  %1676 = vmatpush.bf16.msra.mxu3 %v2913_v11  ;;  %v3438_v10 = vld [vmem:[%s4952_s5 + $0xac] sm:$0xf]  ;;  %v3086_v11 = vld [vmem:[%s4952_s5 + $0xb8] sm:$0xf0] }
 0x10b   : > { %1640 = vmatmul.bf16.vlgmr.msra.gmra.mxu0 %v4183_v9  ;;  %v4582_v9 = vld [vmem:[%s4951_s4] sm:$0xf]  ;;  %v3089_v12 = vor.u32 %v3438_v10, %v3086_v11  ;;  %v3022_v10 = vld [vmem:[%s4952_s5 + $0x38] sm:$0xf0] }
 0x10c   : > { %1664 = vmatpush.bf16.msra.mxu2 %v2769_v14  ;;  %v1468_v23 = vperm.slane %v4582_v9, 0  ;;  %1894 = vmatpush.bf16.msrb.mxu0 %v3109_v36  ;;  %v3060_v14 = vld [vmem:[%s4952_s5 + $0x80] sm:$0xf]  ;;  %v3052_v36 = vld [vmem:[%s4952_s5 + $0x68] sm:$0xf]  ;;  %v1471_v51 = vperm.slane %v4582_v9, 3 }
 0x10d   : > { %1653 = vmatmul.bf16.vlgmr.msra.gmra.mxu1 %v4192_v15 }
 0x10e   : > { %1677 = vmatpush.bf16.msra.mxu3 %v2897_v18  ;;  %1907 = vmatpush.bf16.msrb.mxu1 %v3113_v43  ;;  %v3061_v18 = vor.u32 %v3435_v16, %v3060_v14  ;;  %v3430_v43 = vld [vmem:[%s4952_s5 + $0x6c] sm:$0xf]  ;;  %v2996_v14 = vld [vmem:[%s4952_s5] sm:$0xf]  ;;  %v3419_v16 = vld [vmem:[%s4952_s5 + $0xc] sm:$0xf0] }
 0x110   : > { %1665 = vmatpush.bf16.msra.mxu2 %v2753_v21  ;;  %1895 = vmatpush.bf16.msrb.mxu0 %v3093_v52  ;;  %v3065_v21 = vor.u32 %v3433_v17, %v3062_v19  ;;  %v3036_v52 = vld [vmem:[%s4952_s5 + $0x48] sm:$0xf]  ;;  %v3417_v17 = vld [vmem:[%s4952_s5 + $0x4] sm:$0xf]  ;;  %v2998_v19 = vld [vmem:[%s4952_s5 + $0x10] sm:$0xf0] }
 0x111   : > { %v3037_v55 = vor.u32 %v3428_v53, %v3036_v52  ;;  %v3461_v52 = vld [vmem:[%s4954_s7 + $0x60] sm:$0xff] }
 0x112   : > { %1678 = vmatpush.bf16.msra.mxu3 %v2881_v22  ;;  %1908 = vmatpush.bf16.msrb.mxu1 %v3097_v56  ;;  %v3436_v22 = vld [vmem:[%s4952_s5 + $0x94] sm:$0xf0]  ;;  %v3426_v56 = vld [vmem:[%s4952_s5 + $0x4c] sm:$0xf] }
 0x113   : > { %1666 = vmatmul.bf16.vlgmr.msra.gmra.mxu2 %v4231_v35 }
 0x114   : > { %1920 = vmatpush.bf16.msrb.mxu2 %v3117_v44  ;;  %1896 = vmatpush.bf16.msrb.mxu0 %v3077_v1  ;;  %v3054_v44 = vld [vmem:[%s4952_s5 + $0x78] sm:$0xf0]  ;;  %v3014_v1 = vld [vmem:[%s4952_s5 + $0x30] sm:$0xf0] }
 0x115   : > { %1679 = vmatmul.bf16.vlgmr.msra.gmra.mxu3 %v4243_v41  ;;  %v3057_v45 = vor.u32 %v3430_v43, %v3054_v44  ;;  %v3017_v4 = vor.u32 %v3421_v62, %v3014_v1  ;;  %v1470_v43 = vperm.slane %v4582_v9, 2 }
 0x116   : > { %1933 = vmatpush.bf16.msrb.mxu3 %v3121_v47  ;;  %1909 = vmatpush.bf16.msrb.mxu1 %v3081_v7  ;;  %v3028_v47 = vld [vmem:[%s4952_s5 + $0x40] sm:$0xf]  ;;  %v3021_v7 = vor.u32 %v3424_v3, %v3020_v2 }
 0x118   : > { %1921 = vmatpush.bf16.msrb.mxu2 %v3101_v57  ;;  %1897 = vmatpush.bf16.msrb.mxu0 %v3061_v18  ;;  %v3038_v57 = vld [vmem:[%s4952_s5 + $0x58] sm:$0xf0]  ;;  %v2997_v18 = vor.u32 %v3419_v16, %v2996_v14 }
 0x119   : > { %v3041_v58 = vor.u32 %v3426_v56, %v3038_v57 }
 0x11a   : > { %1934 = vmatpush.bf16.msrb.mxu3 %v3105_v60  ;;  %1910 = vmatpush.bf16.msrb.mxu1 %v3065_v21  ;;  %v3423_v60 = vld [vmem:[%s4952_s5 + $0x2c] sm:$0xf0]  ;;  %v3420_v21 = vld [vmem:[%s4952_s5 + $0x14] sm:$0xf0] }
 0x11b   : > { %v3013_v0 = vor.u32 %v3423_v60, %v3012_v59  ;;  %v3460_v59 = vld [vmem:[%s4954_s7 + $0x58] sm:$0xff] }
 0x11c   : > { %1922 = vmatpush.bf16.msrb.mxu2 %v3085_v8  ;;  %v3422_v8 = vld [vmem:[%s4952_s5 + $0x2c] sm:$0xf] }
 0x11e   : > { %1935 = vmatpush.bf16.msrb.mxu3 %v3089_v12  ;;  %v3025_v12 = vor.u32 %v3422_v8, %v3022_v10 }
 0x148   : > { %v1485_v24 = vpop.f32.mrf.mxu0 }
 0x149   : > { %v1486_v25 = vadd.f32 %v1485_v24, %v1468_v23  ;;  %v3434_v23 = vld [vmem:[%s4952_s5 + $0x8c] sm:$0xf]  ;;  %v3070_v24 = vld [vmem:[%s4952_s5 + $0x98] sm:$0xf0] }
 0x14a   : > { %v1498_v26 = vpop.f32.mrf.mxu1 }
 0x14b   : > { %v4585_v27 = vadd.f32 %v1498_v26, %v1486_v25  ;;  %v3069_v25 = vor.u32 %v3436_v22, %v3068_v20  ;;  %v3073_v26 = vor.u32 %v3434_v23, %v3070_v24  ;;  %v3004_v20 = vld [vmem:[%s4952_s5 + $0x8] sm:$0xf]  ;;  %v3001_v22 = vor.u32 %v3417_v17, %v2998_v19  ;;  %v3418_v24 = vld [vmem:[%s4952_s5 + $0xc] sm:$0xf] }
 0x14c   : > { %v3005_v23 = vor.u32 %v3420_v21, %v3004_v20 }
 0x14d   : > { %1923 = vmatpush.bf16.msrb.mxu2 %v3069_v25  ;;  %1936 = vmatpush.bf16.msrb.mxu3 %v3073_v26  ;;  %v3006_v25 = vld [vmem:[%s4952_s5 + $0x18] sm:$0xf0] }
 0x14e   : > { %v3009_v26 = vor.u32 %v3418_v24, %v3006_v25  ;;  %v3449_v24 = vld [vmem:[%s4954_s7] sm:$0xff] }
 0x14f   : > { %v3457_v25 = vld [vmem:[%s4954_s7 + $0x40] sm:$0xff] }
 0x150   : > { %v1487_v15 = vpop.f32.mrf.mxu0 }
 0x151   : > { %1937 = vmatpush.bf16.msrb.mxu3 %v3057_v45  ;;  %v3454_v45 = vld [vmem:[%s4954_s7 + $0x28] sm:$0xff] }
 0x152   : > { %v1500_v28 = vpop.f32.mrf.mxu1 }
 0x153   : > { %v3044_v28 = vld [vmem:[%s4952_s5 + $0x60] sm:$0xf] }
 0x155   : > { %1938 = vmatpush.bf16.msrb.mxu3 %v3041_v58 }
 0x156   : > { %v4587_v29 = vpop.f32.mrf.mxu2 }
 0x157   : > { %v1512_v60 = vadd.f32 %v4587_v29, %v4585_v27  ;;  %v3451_v27 = vld [vmem:[%s4954_s7 + $0x10] sm:$0xff] }
 0x158   : > { %v4589_v30 = vpop.f32.mrf.mxu3  ;;  %v4591_v35 = vpop.f32.mrf.mxu0  ;;  %v3459_v29 = vld [vmem:[%s4954_s7 + $0x50] sm:$0xff] }
 0x159   : > { %1939 = vmatpush.bf16.msrb.mxu3 %v3025_v12 }
 0x15a   : > { %v4593_v41 = vpop.f32.mrf.mxu1 }
 0x15d   : > { %1940 = vmatpush.bf16.msrb.mxu3 %v3009_v26  ;;  %v3466_v26 = vld [vmem:[%s4954_s7 + $0x88] sm:$0xff] }
 0x15e   : > { %v1513_v31 = vpop.f32.mrf.mxu2 }
 0x15f   : > { %v3431_v31 = vld [vmem:[%s4952_s5 + $0x6c] sm:$0xf0] }
 0x160   : > { %v1526_v40 = vpop.f32.mrf.mxu3  ;;  %v1539_v42 = vpop.f32.mrf.mxu0  ;;  %v3045_v33 = vor.u32 %v3431_v31, %v3044_v28  ;;  %v3456_v31 = vld [vmem:[%s4954_s7 + $0x38] sm:$0xff] }
 0x161   : > { %v3049_v40 = vor.u32 %v3429_v32, %v3046_v34  ;;  %v3053_v42 = vor.u32 %v3432_v37, %v3052_v36  ;;  %v3464_v32 = vld [vmem:[%s4954_s7 + $0x78] sm:$0xff]  ;;  %v3455_v36 = vld [vmem:[%s4954_s7 + $0x30] sm:$0xff] }
 0x162   : > { %v1552_v48 = vpop.f32.mrf.mxu1  ;;  %1898 = vmatpush.bf16.msrb.mxu0 %v3045_v33  ;;  %v3472_v33 = vld [vmem:[%s4954_s7 + $0xb8] sm:$0xff]  ;;  %v3463_v37 = vld [vmem:[%s4954_s7 + $0x70] sm:$0xff] }
 0x163   : > { %1911 = vmatpush.bf16.msrb.mxu1 %v3049_v40  ;;  %v3427_v48 = vld [vmem:[%s4952_s5 + $0x4c] sm:$0xf0]  ;;  %1924 = vmatpush.bf16.msrb.mxu2 %v3053_v42  ;;  %v3480_v34 = vld [vmem:[%s4954_s7 + $0xf8] sm:$0xff] }
 0x164   : > { %v3029_v50 = vor.u32 %v3427_v48, %v3028_v47  ;;  %2250 = vmatpush.bf16.msra.mxu3 %v3480_v34  ;;  %v3479_v40 = vld [vmem:[%s4954_s7 + $0xf0] sm:$0xff]  ;;  %v3470_v48 = vld [vmem:[%s4954_s7 + $0xa8] sm:$0xff] }
 0x166   : > { %v4643_v61 = vpop.f32.mrf.mxu2  ;;  %1899 = vmatpush.bf16.msrb.mxu0 %v3029_v50 }
 0x167   : > { %1912 = vmatpush.bf16.msrb.mxu1 %v3033_v54  ;;  %1925 = vmatpush.bf16.msrb.mxu2 %v3037_v55 }
 0x168   : > { %v4663_v5 = vpop.f32.mrf.mxu3  ;;  %v4665_v6 = vpop.f32.mrf.mxu0  ;;  %2251 = vmatpush.bf16.msra.mxu3 %v3479_v40 }
 0x169   : > { %v1590_v50 = vadd.f32 %v4665_v6, %v1470_v43  ;;  %v3469_v6 = vld [vmem:[%s4954_s7 + $0xa0] sm:$0xff] }
 0x16a   : > { %v4673_v13 = vpop.f32.mrf.mxu1  ;;  %1900 = vmatpush.bf16.msrb.mxu0 %v3013_v0 }
 0x16b   : > { %1913 = vmatpush.bf16.msrb.mxu1 %v3017_v4  ;;  %1926 = vmatpush.bf16.msrb.mxu2 %v3021_v7  ;;  %v1603_v56 = vadd.f32 %v4673_v13, %v1590_v50  ;;  %v3476_v13 = vld [vmem:[%s4954_s7 + $0xd8] sm:$0xff] }
 0x16c   : > { %2252 = vmatpush.bf16.msra.mxu3 %v3478_v49 }
 0x16e   : > { %v1565_v15 = vpop.f32.mrf.mxu2  ;;  %1901 = vmatpush.bf16.msrb.mxu0 %v2997_v18 }
 0x16f   : > { %1914 = vmatpush.bf16.msrb.mxu1 %v3001_v22  ;;  %1927 = vmatpush.bf16.msrb.mxu2 %v3005_v23  ;;  %v3467_v22 = vld [vmem:[%s4954_s7 + $0x90] sm:$0xff] }
 0x170   : > { %v1578_v38 = vpop.f32.mrf.mxu3  ;;  %v1591_v39 = vpop.f32.mrf.mxu0  ;;  %v3475_v23 = vld [vmem:[%s4954_s7 + $0xd0] sm:$0xff] }
 0x171   : > { %v1469_v38 = vperm.slane %v4582_v9, 1  ;;  %v3471_v39 = vld [vmem:[%s4954_s7 + $0xb0] sm:$0xff]  ;;  %v3477_v9 = vld [vmem:[%s4954_s7 + $0xe0] sm:$0xff] }
 0x172   : > { %v1604_v46 = vpop.f32.mrf.mxu1  ;;  %2211 = vmatpush.bf16.msra.mxu0 %v3456_v31  ;;  %2253 = vmatpush.bf16.msra.mxu3 %v3477_v9  ;;  %v3473_v31 = vld [vmem:[%s4954_s7 + $0xc0] sm:$0xff] }
 0x173   : > { %2224 = vmatpush.bf16.msra.mxu1 %v3464_v32  ;;  %2237 = vmatpush.bf16.msra.mxu2 %v3472_v33  ;;  %v3462_v46 = vld [vmem:[%s4954_s7 + $0x68] sm:$0xff]  ;;  %v1538_v47 = vadd.f32 %v4591_v35, %v1469_v38  ;;  %v3453_v35 = vld [vmem:[%s4954_s7 + $0x20] sm:$0xff] }
 0x174   : > { %v1724_v32 = vld [vmem:[%s4953_s6] sm:$0xf] }
 0x175   : > { %v1551_v53 = vadd.f32 %v4593_v41, %v1538_v47  ;;  %v3452_v41 = vld [vmem:[%s4954_s7 + $0x18] sm:$0xff]  ;;  %v1886_v33 = vperm.slane %v1724_v32, 0  ;;  %v1887_v34 = vperm.slane %v1724_v32, 1  ;;  %v1888_v43 = vperm.slane %v1724_v32, 2 }
 0x176   : > { %v4756_v63 = vpop.f32.mrf.mxu2  ;;  %2212 = vmatpush.bf16.msra.mxu0 %v3455_v36  ;;  %2254 = vmatpush.bf16.msra.mxu3 %v3476_v13 }
 0x177   : > { %2225 = vmatpush.bf16.msra.mxu1 %v3463_v37  ;;  %2238 = vmatpush.bf16.msra.mxu2 %v3471_v39  ;;  %v1564_v55 = vadd.f32 %v4643_v61, %v1551_v53  ;;  %v1616_v62 = vadd.f32 %v4756_v63, %v1603_v56  ;;  %v3468_v61 = vld [vmem:[%s4954_s7 + $0x98] sm:$0xff]  ;;  %v1525_v63 = vadd.f32 %v4589_v30, %v1512_v60  ;;  %v3450_v30 = vld [vmem:[%s4954_s7 + $0x8] sm:$0xff] }
 0x178   : > { %v4773_v11 = vpop.f32.mrf.mxu3 }
 0x179   : > { %v1577_v0 = vadd.f32 %v4663_v5, %v1564_v55  ;;  %v1629_v3 = vadd.f32 %v4773_v11, %v1616_v62  ;;  %v1684_v10 = vmax.f32 %v1525_v63, 0.0  ;;  %v3458_v11 = vld [vmem:[%s4954_s7 + $0x48] sm:$0xff] }
 0x17a   : > { %2213 = vmatpush.bf16.msra.mxu0 %v3454_v45  ;;  %2255 = vmatpush.bf16.msra.mxu3 %v3475_v23 }
 0x17b   : > { %2226 = vmatpush.bf16.msra.mxu1 %v3462_v46  ;;  %2239 = vmatpush.bf16.msra.mxu2 %v3470_v48  ;;  %v1685_v7 = vmax.f32 %v1577_v0, 0.0  ;;  %v1686_v12 = vmax.f32 %v1629_v3, 0.0 }
 0x17d   : > { %v1688_v16 = vmax.f32 %v1684_v10, %v1685_v7 }
 0x17e   : > { %v1617_v15 = vpop.f32.mrf.mxu2  ;;  %2214 = vmatpush.bf16.msra.mxu0 %v3453_v35 }
 0x17f   : > { %2227 = vmatpush.bf16.msra.mxu1 %v3461_v52  ;;  %2240 = vmatpush.bf16.msra.mxu2 %v3469_v6  ;;  %v3474_v15 = vld [vmem:[%s4954_s7 + $0xc8] sm:$0xff] }
 0x180   : > { %v1630_v28 = vpop.f32.mrf.mxu3  ;;  %2256 = vmatpush.bf16.msra.mxu3 %v3474_v15 }
 0x181   : > { %v3465_v28 = vld [vmem:[%s4954_s7 + $0x80] sm:$0xff] }
 0x182   : > { %2215 = vmatpush.bf16.msra.mxu0 %v3452_v41 }
 0x183   : > { %2228 = vmatpush.bf16.msra.mxu1 %v3460_v59  ;;  %2241 = vmatpush.bf16.msra.mxu2 %v3468_v61 }
 0x184   : > { %2257 = vmatpush.bf16.msra.mxu3 %v3473_v31 }
 0x186   : > { %2216 = vmatpush.bf16.msra.mxu0 %v3451_v27 }
 0x187   : > { %2229 = vmatpush.bf16.msra.mxu1 %v3459_v29  ;;  %2242 = vmatpush.bf16.msra.mxu2 %v3467_v22 }
 0x188   : > { %v1641_v42 = vpop.f32.mrf.mxu0 }
 0x189   : > { %v1642_v57 = vadd.f32 %v1641_v42, %v1471_v51 }
 0x18a   : > { %v1654_v44 = vpop.f32.mrf.mxu1  ;;  %2217 = vmatpush.bf16.msra.mxu0 %v3450_v30 }
 0x18b   : > { %v1655_v1 = vadd.f32 %v1654_v44, %v1642_v57  ;;  %2230 = vmatpush.bf16.msra.mxu1 %v3458_v11  ;;  %2243 = vmatpush.bf16.msra.mxu2 %v3466_v26  ;;  %v1889_v44 = vperm.slane %v1724_v32, 3 }
 0x18e   : > { %2218 = vmatpush.bf16.msra.mxu0 %v3449_v24 }
 0x18f   : > { %2231 = vmatpush.bf16.msra.mxu1 %v3457_v25  ;;  %2244 = vmatpush.bf16.msra.mxu2 %v3465_v28 }
 0x190   : > { %v1643_v54 = vpop.f32.mrf.mxu0 }
 0x192   : > { %v1656_v58 = vpop.f32.mrf.mxu1 }
 0x193   : > { %v2018_v58 = vld [vmem:[%s4955_s8] sm:$0x1] }
 0x196   : > { %v1667_v2 = vpop.f32.mrf.mxu2 }
 0x197   : > { %v1668_v4 = vadd.f32 %v1667_v2, %v1655_v1 }
 0x198   : > { %v1680_v5 = vpop.f32.mrf.mxu3 }
 0x199   : > { %v1681_v8 = vadd.f32 %v1680_v5, %v1668_v4 }
 0x19b   : > { %v1687_v14 = vmax.f32 %v1681_v8, 0.0 }
 0x19d   : > { %v1689_v17 = vmax.f32 %v1686_v12, %v1687_v14 }
 0x19e   : > { %v1669_v18 = vpop.f32.mrf.mxu2 }
 0x19f   : > { %v1690_v19 = vmax.f32 %v1688_v16, %v1689_v17 }
 0x1a0   : > { %v1682_v20 = vpop.f32.mrf.mxu3 }
 0x1a1   : > { %v1691_v21 = vpack.c.bf16 %v1690_v19, %v1690_v19 }
 0x1a3   : > { %1902 = vmatmul.bf16.vlgmr.msrb.gmra.mxu0 %v1691_v21  ;;  %1915 = vmatmul.bf16.vlgmr.msrb.gmra.mxu1 %v1691_v21 }
 0x1a4   : > { %1928 = vmatmul.bf16.vlgmr.msrb.gmra.mxu2 %v1691_v21  ;;  %1941 = vmatmul.bf16.vlgmr.msrb.gmra.mxu3 %v1691_v21 }
 0x220   : > { %v1903_v36 = vpop.f32.mrf.mxu0  ;;  %v1916_v37 = vpop.f32.mrf.mxu1 }
 0x221   : > { %v1904_v38 = vadd.f32 %v1903_v36, %v1886_v33  ;;  %v1917_v39 = vadd.f32 %v1916_v37, %v1887_v34 }
 0x223   : > { %v1946_v40 = vmax.f32 %v1904_v38, 0.0  ;;  %v1947_v42 = vmax.f32 %v1917_v39, 0.0 }
 0x225   : > { %v1950_v45 = vpack.c.bf16 %v1946_v40, %v1946_v40  ;;  %v1951_v46 = vpack.c.bf16 %v1947_v42, %v1947_v42 }
 0x227   : > { %v1929_v47 = vpop.f32.mrf.mxu2  ;;  %v1942_v48 = vpop.f32.mrf.mxu3  ;;  %2219 = vmatmul.bf16.vlgmr.msra.gmra.mxu0 %v1950_v45  ;;  %2232 = vmatmul.bf16.vlgmr.msra.gmra.mxu1 %v1951_v46 }
 0x228   : > { %v1930_v49 = vadd.f32 %v1929_v47, %v1888_v43  ;;  %v1943_v50 = vadd.f32 %v1942_v48, %v1889_v44  ;;  %v1905_v51 = vpop.f32.mrf.mxu0  ;;  %v1918_v35 = vpop.f32.mrf.mxu1 }
 0x22a   : > { %v1948_v52 = vmax.f32 %v1930_v49, 0.0  ;;  %v1949_v53 = vmax.f32 %v1943_v50, 0.0 }
 0x22c   : > { %v1952_v6 = vpack.c.bf16 %v1948_v52, %v1948_v52  ;;  %v1953_v9 = vpack.c.bf16 %v1949_v53, %v1949_v53 }
 0x22e   : > { %2245 = vmatmul.bf16.vlgmr.msra.gmra.mxu2 %v1952_v6  ;;  %2258 = vmatmul.bf16.vlgmr.msra.gmra.mxu3 %v1953_v9 }
 0x22f   : > { %v1931_v54 = vpop.f32.mrf.mxu2  ;;  %v1944_v55 = vpop.f32.mrf.mxu3 }
 0x2a4   : > { %v2220_v56 = vpop.f32.mrf.mxu0  ;;  %v2233_v57 = vpop.f32.mrf.mxu1 }
 0x2a5   : > { %v2221_v41 = vadd.f32 %v2220_v56, %v2018_v58 }
 0x2a7   : > { %v2234_v62 = vadd.f32 %v2233_v57, %v2221_v41 }
 0x2ac   : > { %v2222_v59 = vpop.f32.mrf.mxu0  ;;  %v2235_v60 = vpop.f32.mrf.mxu1 }
 0x2b1   : > { %v2246_v61 = vpop.f32.mrf.mxu2  ;;  %v2259_v13 = vpop.f32.mrf.mxu3 }
 0x2b2   : > { %v2247_v0 = vadd.f32 %v2246_v61, %v2234_v62 }
 0x2b4   : > { %v2260_v1 = vadd.f32 %v2259_v13, %v2247_v0 }
 0x2b6   : > { %2263 = vst [vmem:[%s324_s22] sm:$0x1] %v2260_v1 }
 0x2b7   : > { %3548 = shalt.err (!%p3545_p3)
}
 0x2b8   : > { %3481 = dma.vmem_to_hbm [thread:$0]  (%p3673_p5), %s2276_s23, 16, %s2278_s14, %s2265_s26  }
 0x2b9   : > { %v2248_v2 = vpop.f32.mrf.mxu2  ;;  %v2261_v27 = vpop.f32.mrf.mxu3 }
 0x2ba PF: > { %p3487_p4 = scmp.ge.s32.totalorder %s3583_s12, 2  ;;  %s2289_s29 = sand.u32 1, %s3571_s30  }
 0x2bb   : > { %s2290_s0 = scalar_lea.sflag [#allocation3], %s2289_s29 }
 0x2bc   : > { %p3484_p7 = pnand %p3487_p4, %p3677_p6 }
 0x2be   : > { %p3485_p8 = pneg %p3484_p7 }
 0x2c0   : > { %3566 = dma.done.wait (%p3485_p8), %s2290_s0, 16  }
 0x2c1   : > { %3568 = vsyncadd (%p3485_p8), %s2290_s0, 4294967280  ;;  %p19_p5 = scmp.ge.s32.totalorder %s3660_s15, 4   ;;  %s4961_s30 = smov %s3575_s10 }
 0x2c2   : > { %s4962_s10 = smov %s3579_s11  ;;  %s4963_s11 = smov %s3671_s18 }
 0x2c3   : > { %s4964_s12 = smov %s3660_s15  ;;  %21 = sbr.rel (!%p19_p5) target bundleno = 5 (0x5), region = 91 }
 0x2c8   :  { %2295 = vsyncpa [#allocation3], 1 }
 0x2c9   :  { %2297 = vsyncpa [#allocation3 + $0x1], 1 }

</bundles_post_ra>
